<compile_context>
chip_gen: v7x
topology: tpu7x:2x2x1
jax: 0.10.0
libtpu: 0.0.40
codegen_flags: <defaults>
</compile_context>

<pallas_src>
import functools

import numpy as np
import jax
import jax.numpy as jnp
from jax.experimental import pallas as pl
from jax.experimental.pallas import tpu as pltpu

# ----------------------------- configuration --------------------------------
OBS_LEN = 8
PRED_LEN = 4
N_AGENTS = 6                      # total agents (batch)
SEQ_START_END = ((0, 3), (3, 6))  # two interaction groups of 3 agents each
N_GROUPS = len(SEQ_START_END)
GROUP_SIZE = N_AGENTS // N_GROUPS
GOAL_IN_DIM = 16                  # goal_decoder_input_dim
ACT_IN_DIM = 16                   # action_decoder_input_dim
HID_DIM = 32                      # goal/action decoder hidden dim (must match)
DIST_EMB_DIM = 16                 # distance_embedding_dim
N_HEAD = 4                        # GAT hard-codes self.n_heads = 4

VSPEC = pl.BlockSpec(memory_space=pltpu.MemorySpace.VMEM)


# ------------------------------ fused kernel ---------------------------------
def _decoder_kernel(
    hidden0_ref, pose0_ref, lstm_ref, emb_ref, h2g_ref, h2a_ref,
    gat_proj_ref, head_sel_ref, dist_ref, gfc_ref,
    row_sel_ref, col_sel_ref, diag_sel_ref, row_agg_ref,
    out_ref, *, pred_len, hid, n_head):
  f32 = jnp.float32
  H = hid
  N = hidden0_ref.shape[0]

  def mm(x, w):
    return jnp.dot(x, w, preferred_element_type=f32)

  # ---- prologue: load packed slabs once; all slices are loop-invariant -----
  hidden0 = hidden0_ref[...]                  # (N, 2H) = [goal_h | action_h]
  goal_h = hidden0[:, 0:H]
  action_h = hidden0[:, H:2 * H]
  u_prev = pose0_ref[...]                     # (N, 4)  = [traj_xy | act_xy]
  traj_out = u_prev[:, 0:2]

  emb_sl = emb_ref[...]                       # (6, EMBW)
  EMBW = emb_sl.shape[1]
  emb_w = emb_sl[0:4, :]                      # block-diag [goal_emb | act_emb]
  emb_b = emb_sl[4:5, :]
  gat_bias = emb_sl[5:6, 0:H]

  XW = EMBW + H                               # fused LSTM input width
  lstm = lstm_ref[...]                        # (2*XW + 2, 4H)
  Wg = lstm[0:XW, :]
  Wa = lstm[XW:2 * XW, :]
  bg = lstm[2 * XW:2 * XW + 1, :]
  ba = lstm[2 * XW + 1:2 * XW + 2, :]

  h2g = h2g_ref[...]                          # (H+1, 2)
  h2g_w = h2g[0:H, :]
  h2g_b = h2g[H:H + 1, :]
  h2a = h2a_ref[...]
  h2a_w = h2a[0:H, :]
  h2a_b = h2a[H:H + 1, :]

  gp = gat_proj_ref[...]                      # (136, K)
  Wself = gp[0:H, :]                          # stacked-head self projection
  Wother = gp[H:2 * H, :]                     # stacked-head other projection
  hsfc_b = gp[2 * H:2 * H + 1, :]             # tiled hidden_state_fc bias
  tile_T = gp[72:72 + 2 * H, :]               # (2H, K) broadcast-across-heads

  head_sel_a = head_sel_ref[...]              # (K, n_head), attn vec folded in
  dw = dist_ref[...]                          # (9, Dd)
  Dd = dw.shape[1]
  de_w_row = dw[0:4, :]
  de_w_col = dw[4:8, :]
  de_b = dw[8:9, :]
  gfc = gfc_ref[...]                          # (Dd+1, 2H)
  gfc_w = gfc[0:Dd, :]
  gfc_b = gfc[Dd:Dd + 1, :]

  row_sel = row_sel_ref[...]                  # (P, N) one-hot: pair -> row agent
  col_sel = col_sel_ref[...]                  # (P, N) one-hot: pair -> col agent
  diag_sel = diag_sel_ref[...]                # (P, N) one-hot on diagonal pairs
  row_agg = row_agg_ref[...]                  # (N, P) = row_sel^T

  goal_c = jnp.zeros((N, H), f32)
  action_c = jnp.zeros((N, H), f32)
  inv_heads = 1.0 / n_head

  def lstm_gates(xh, W, b, c):
    """torch.nn.LSTMCell semantics, gate order [i, f, g, o], fused [x,h] @ W."""
    gates = mm(xh, W) + b                     # (N, 4H)
    i = jax.nn.sigmoid(gates[:, 0:H])
    f = jax.nn.sigmoid(gates[:, H:2 * H])
    g = jnp.tanh(gates[:, 2 * H:3 * H])
    o = jax.nn.sigmoid(gates[:, 3 * H:4 * H])
    c_new = f * c + i * g
    return o * jnp.tanh(c_new), c_new

  step_outs = []
  for _ in range(pred_len):                   # static unrolled recurrence
    # fused goal/action input embedding: (N,4) @ block-diag, then ReLU
    emb = jnp.maximum(mm(u_prev, emb_w) + emb_b, 0.0)              # (N, EMBW)

    # ---- goal LSTM (action-embedding rows of Wg are zero) ------------------
    goal_h, goal_c = lstm_gates(jnp.concatenate([emb, goal_h], axis=1),
                                Wg, bg, goal_c)
    goal_out = mm(goal_h, h2g_w) + h2g_b                           # (N, 2)

    # ---- interaction / GAT over all groups, flat (P, .) pair layout --------
    ug = jnp.concatenate([traj_out, goal_out], axis=1)             # (N, 4)
    emb_row = mm(ug, de_w_row) + de_b                              # (N, Dd)
    emb_col = mm(ug, de_w_col)                                     # (N, Dd)
    g_pre = mm(row_sel, emb_row) + mm(col_sel, emb_col)            # (P, Dd)
    g_elu = jnp.where(g_pre > 0, g_pre,
                      jnp.exp(jnp.minimum(g_pre, 0.0)) - 1.0)      # ELU
    gate = jax.nn.sigmoid(mm(g_elu, gfc_w) + gfc_b)                # (P, 2H)
    gate_t = mm(gate, tile_T)                                      # (P, K)

    ah_self = mm(action_h, Wself)                                  # (N, K)
    ah_other = mm(action_h, Wother)                                # (N, K)
    gh_other = mm(goal_h, Wother)                                  # (N, K)

    # "self" column (no gate); per-head scores via one MXU matmul
    temp0 = jnp.tanh(ah_self + ah_other + hsfc_b)                  # (N, K)
    s_self = mm(temp0, head_sel_a)                                 # (N, n_head)

    # "other" columns (gated); diagonal handled with a single correction
    pre_other = (mm(row_sel, ah_self) + mm(col_sel, ah_other)
                 + mm(diag_sel, gh_other - ah_other) + hsfc_b)     # (P, K)
    s_other = mm(gate_t * jnp.tanh(pre_other), head_sel_a)         # (P, n_head)

    # LeakyReLU(0.2) + softmax over the (n+1) columns per (agent, head)
    s_self = jnp.where(s_self > 0, s_self, 0.2 * s_self)
    s_other = jnp.where(s_other > 0, s_other, 0.2 * s_other)
    m = jnp.maximum(jnp.max(s_self, axis=0, keepdims=True),
                    jnp.max(s_other, axis=0, keepdims=True))       # (1, n_head)
    m = jnp.max(m, axis=1, keepdims=True)                          # global max
    e_self = jnp.exp(s_self - m)                                   # (N, n_head)
    e_other = jnp.exp(s_other - m)                                 # (P, n_head)
    inv = 1.0 / (e_self + mm(row_agg, e_other))                    # (N, n_head)
    a_self = jnp.sum(e_self * inv, axis=-1, keepdims=True)         # (N, 1)
    a_other = jnp.sum(e_other * mm(row_sel, inv),
                      axis=-1, keepdims=True)                      # (P, 1)

    # aggregation with the UN-projected h_other (as in the reference)
    gated_h = mm(col_sel, action_h) + mm(diag_sel, goal_h - action_h)  # (P, H)
    agg = a_self * action_h + mm(row_agg, a_other * gated_h)       # (N, H)
    action_h = jnp.maximum(agg * inv_heads, 0.0) + gat_bias        # (N, H)

    # ---- action LSTM + output head -----------------------------------------
    action_h, action_c = lstm_gates(jnp.concatenate([emb, action_h], axis=1),
                                    Wa, ba, action_c)
    act_out = mm(action_h, h2a_w) + h2a_b                          # (N, 2)
    traj_out = traj_out + act_out
    u_prev = jnp.concatenate([traj_out, act_out], axis=1)          # (N, 4)
    step_outs.append(act_out)

  # single store; wrapper reshapes (N, pred_len*2) -> (pred_len, N, 2)
  out_ref[...] = jnp.concatenate(step_outs, axis=1)


# -------------------- host-side packing / precomputation ---------------------
def pack_params(params):
  f32 = jnp.float32
  H = HID_DIM
  K = N_HEAD * 2 * H
  EMBW = GOAL_IN_DIM + ACT_IN_DIM
  XW = EMBW + H

  # GAT head projections folded through hidden_state_fc halves, stacked in lanes
  A = params["hsfc_w"][:H, :]                 # multiplies h_self_prime
  B = params["hsfc_w"][H:, :]                 # multiplies h_other_prime
  Wself = jnp.concatenate([params["gat_w"][k] @ A for k in range(N_HEAD)], axis=1)
  Wother = jnp.concatenate([params["gat_w"][k] @ B for k in range(N_HEAD)], axis=1)
  hsfc_b_stk = jnp.tile(params["hsfc_b"], (1, N_HEAD))             # (1, K)
  tile_T = jnp.tile(jnp.eye(2 * H, dtype=f32), (1, N_HEAD))        # (2H, K)
  a_vec = params["gat_a"][0]                                       # (2H,)
  head_sel_a = jnp.concatenate(
      [jnp.zeros((2 * H, N_HEAD), f32).at[:, k].set(a_vec) for k in range(N_HEAD)],
      axis=0)                                                      # (K, n_head)

  gat_proj = jnp.zeros((136, K), f32)
  gat_proj = gat_proj.at[0:H].set(Wself)
  gat_proj = gat_proj.at[H:2 * H].set(Wother)
  gat_proj = gat_proj.at[2 * H:2 * H + 1].set(hsfc_b_stk)
  gat_proj = gat_proj.at[72:72 + 2 * H].set(tile_T)

  # fused + zero-padded LSTM weights: input = [emb(EMBW) | h(H)]
  Wg = jnp.zeros((XW, 4 * H), f32)
  Wg = Wg.at[0:GOAL_IN_DIM].set(params["g_wih"]).at[EMBW:XW].set(params["g_whh"])
  Wa = jnp.zeros((XW, 4 * H), f32)
  Wa = Wa.at[GOAL_IN_DIM:EMBW].set(params["a_wih"]).at[EMBW:XW].set(params["a_whh"])
  lstm_wb = jnp.zeros((2 * XW + 2, 4 * H), f32)
  lstm_wb = lstm_wb.at[0:XW].set(Wg).at[XW:2 * XW].set(Wa)
  lstm_wb = lstm_wb.at[2 * XW:2 * XW + 1].set(params["g_b"])
  lstm_wb = lstm_wb.at[2 * XW + 1:2 * XW + 2].set(params["a_b"])

  # block-diag input embeddings + biases + GAT output bias
  emb_slab = jnp.zeros((6, EMBW), f32)
  emb_slab = emb_slab.at[0:2, 0:GOAL_IN_DIM].set(params["goal_emb_w"])
  emb_slab = emb_slab.at[2:4, GOAL_IN_DIM:EMBW].set(params["act_emb_w"])
  emb_slab = emb_slab.at[4:5, 0:GOAL_IN_DIM].set(params["goal_emb_b"])
  emb_slab = emb_slab.at[4:5, GOAL_IN_DIM:EMBW].set(params["act_emb_b"])
  emb_slab = emb_slab.at[5:6, 0:H].set(params["gat_bias"])

  h2g = jnp.concatenate([params["h2g_w"], params["h2g_b"]], axis=0)     # (H+1, 2)
  h2a = jnp.concatenate([params["h2a_w"], params["h2a_b"]], axis=0)     # (H+1, 2)
  dist_w = jnp.concatenate([params["de_w"], params["de_b"]], axis=0)    # (9, Dd)
  gate_fc = jnp.concatenate([params["gfc_w"], params["gfc_b"]], axis=0)  # (Dd+1, 2H)

  return dict(lstm_wb=lstm_wb, emb_slab=emb_slab, h2g=h2g, h2a=h2a,
              gat_proj=gat_proj, head_sel_a=head_sel_a,
              dist_w=dist_w, gate_fc=gate_fc)


def build_selectors(n_groups, group_size):
  G, n = n_groups, group_size
  N = G * n
  P = G * n * n
  row_sel = np.zeros((P, N), np.float32)
  col_sel = np.zeros((P, N), np.float32)
  diag_sel = np.zeros((P, N), np.float32)
  for g in range(G):
    for i in range(n):
      for j in range(n):
        p = (g * n + i) * n + j
        row_sel[p, g * n + i] = 1.0
        col_sel[p, g * n + j] = 1.0
        if i == j:
          diag_sel[p, g * n + i] = 1.0
  return (jnp.asarray(row_sel), jnp.asarray(col_sel),
          jnp.asarray(diag_sel), jnp.asarray(row_sel.T))


# ------------------------------ forward wrapper -------------------------------
def decoder_forward(params, goal_input_hidden_state, action_input_hidden_state,
                    traj_real, action_real,
                    obs_len=OBS_LEN, pred_len=PRED_LEN):
  packed = pack_params(params)
  row_sel, col_sel, diag_sel, row_agg = build_selectors(N_GROUPS, GROUP_SIZE)

  hidden0 = jnp.concatenate([goal_input_hidden_state,
                             action_input_hidden_state], axis=1)     # (N, 2H)
  pose0 = jnp.concatenate([traj_real[obs_len - 1],
                           action_real[obs_len - 1]], axis=1)        # (N, 4)
  N = hidden0.shape[0]

  kernel = functools.partial(_decoder_kernel, pred_len=pred_len,
                             hid=HID_DIM, n_head=N_HEAD)
  args = (hidden0, pose0, packed["lstm_wb"], packed["emb_slab"],
          packed["h2g"], packed["h2a"], packed["gat_proj"],
          packed["head_sel_a"], packed["dist_w"], packed["gate_fc"],
          row_sel, col_sel, diag_sel, row_agg)
  out2d = pl.pallas_call(
      kernel,
      out_shape=jax.ShapeDtypeStruct((N, pred_len * 2), jnp.float32),
      in_specs=[VSPEC] * len(args),
      out_specs=VSPEC,
  )(*args)
  # layout plumbing outside the kernel: (N, pred_len*2) -> (pred_len, N, 2)
  return out2d.reshape(N, pred_len, 2).transpose(1, 0, 2)


# ------------------------- parameter initialization --------------------------
def init_params(key):
  ks = iter(jax.random.split(key, 32))
  s = 0.1

  def mat(shape):
    return (s * jax.random.normal(next(ks), shape)).astype(jnp.float32)

  p = {}
  # LSTMCells: weights stored transposed (in, 4H); bias = bias_ih + bias_hh;
  # gate order [i, f, g, o].
  p["g_wih"] = mat((GOAL_IN_DIM, 4 * HID_DIM))
  p["g_whh"] = mat((HID_DIM, 4 * HID_DIM))
  p["g_b"] = jnp.zeros((1, 4 * HID_DIM), jnp.float32)
  p["a_wih"] = mat((ACT_IN_DIM, 4 * HID_DIM))
  p["a_whh"] = mat((HID_DIM, 4 * HID_DIM))
  p["a_b"] = jnp.zeros((1, 4 * HID_DIM), jnp.float32)
  # Linear layers (stored as (in, out); bias as (1, out))
  p["goal_emb_w"] = mat((2, GOAL_IN_DIM)); p["goal_emb_b"] = jnp.zeros((1, GOAL_IN_DIM), jnp.float32)
  p["act_emb_w"] = mat((2, ACT_IN_DIM));   p["act_emb_b"] = jnp.zeros((1, ACT_IN_DIM), jnp.float32)
  p["h2g_w"] = mat((HID_DIM, 2));          p["h2g_b"] = jnp.zeros((1, 2), jnp.float32)
  p["h2a_w"] = mat((HID_DIM, 2));          p["h2a_b"] = jnp.zeros((1, 2), jnp.float32)
  # GraphAttentionLayer params
  p["gat_w"] = mat((N_HEAD, HID_DIM, HID_DIM))     # torch (n_head, 1, f_in, f_out)
  p["gat_a"] = mat((1, 2 * HID_DIM))               # torch (1, 1, 2*f_out, 1)
  p["gat_bias"] = jnp.zeros((1, HID_DIM), jnp.float32)
  p["de_w"] = mat((8, DIST_EMB_DIM));  p["de_b"] = jnp.zeros((1, DIST_EMB_DIM), jnp.float32)
  p["gfc_w"] = mat((DIST_EMB_DIM, 2 * HID_DIM)); p["gfc_b"] = jnp.zeros((1, 2 * HID_DIM), jnp.float32)
  p["hsfc_w"] = mat((2 * HID_DIM, 2 * HID_DIM)); p["hsfc_b"] = jnp.zeros((1, 2 * HID_DIM), jnp.float32)
  return p


# ----------------------------------- main -------------------------------------
if __name__ == "__main__":
  key = jax.random.PRNGKey(0)
  k_par, k1, k2, k3, k4 = jax.random.split(key, 5)

  params = init_params(k_par)

  T = OBS_LEN + PRED_LEN
  goal_input_hidden_state = (0.1 * jax.random.normal(k1, (N_AGENTS, HID_DIM))).astype(jnp.float32)
  action_input_hidden_state = (0.1 * jax.random.normal(k2, (N_AGENTS, HID_DIM))).astype(jnp.float32)
  traj_real = jax.random.normal(k3, (T, N_AGENTS, 2)).astype(jnp.float32)
  action_real = jax.random.normal(k4, (T, N_AGENTS, 2)).astype(jnp.float32)

  out = decoder_forward(params, goal_input_hidden_state,
                        action_input_hidden_state, traj_real, action_real)
  out = jax.block_until_ready(out)
  assert out.shape == (PRED_LEN, N_AGENTS, 2)
  assert bool(jnp.all(jnp.isfinite(out)))
  print("KERNEL_OK")
</pallas_src>

<mosaic_0001>
module attributes {stable_mosaic.version = 11 : i64} {
  func.func @_decoder_kernel(%arg0: memref<6x64xf32, #tpu.memory_space<vmem>>, %arg1: memref<6x4xf32, #tpu.memory_space<vmem>>, %arg2: memref<130x128xf32, #tpu.memory_space<vmem>>, %arg3: memref<6x32xf32, #tpu.memory_space<vmem>>, %arg4: memref<33x2xf32, #tpu.memory_space<vmem>>, %arg5: memref<33x2xf32, #tpu.memory_space<vmem>>, %arg6: memref<136x256xf32, #tpu.memory_space<vmem>>, %arg7: memref<256x4xf32, #tpu.memory_space<vmem>>, %arg8: memref<9x16xf32, #tpu.memory_space<vmem>>, %arg9: memref<17x64xf32, #tpu.memory_space<vmem>>, %arg10: memref<18x6xf32, #tpu.memory_space<vmem>>, %arg11: memref<18x6xf32, #tpu.memory_space<vmem>>, %arg12: memref<18x6xf32, #tpu.memory_space<vmem>>, %arg13: memref<6x18xf32, #tpu.memory_space<vmem>>, %arg14: memref<6x8xf32, #tpu.memory_space<vmem>>) attributes {dimension_semantics = [], scalar_prefetch = 0 : i64, scratch_operands = 0 : i64, tpu.core_type = #tpu.core_type<tc>} {
    %c0 = arith.constant 0 : index
    %c0_0 = arith.constant 0 : index
    %0 = vector.load %arg0[%c0, %c0_0] : memref<6x64xf32, #tpu.memory_space<vmem>>, vector<6x64xf32>
    %1 = vector.extract_strided_slice %0 {offsets = [0, 0], sizes = [6, 32], strides = [1, 1]} : vector<6x64xf32> to vector<6x32xf32>
    %2 = vector.extract_strided_slice %0 {offsets = [0, 32], sizes = [6, 32], strides = [1, 1]} : vector<6x64xf32> to vector<6x32xf32>
    %c0_1 = arith.constant 0 : index
    %c0_2 = arith.constant 0 : index
    %3 = vector.load %arg1[%c0_1, %c0_2] : memref<6x4xf32, #tpu.memory_space<vmem>>, vector<6x4xf32>
    %4 = vector.extract_strided_slice %3 {offsets = [0, 0], sizes = [6, 2], strides = [1, 1]} : vector<6x4xf32> to vector<6x2xf32>
    %c0_3 = arith.constant 0 : index
    %c0_4 = arith.constant 0 : index
    %5 = vector.load %arg3[%c0_3, %c0_4] : memref<6x32xf32, #tpu.memory_space<vmem>>, vector<6x32xf32>
    %6 = vector.extract_strided_slice %5 {offsets = [0, 0], sizes = [4, 32], strides = [1, 1]} : vector<6x32xf32> to vector<4x32xf32>
    %7 = vector.extract_strided_slice %5 {offsets = [4, 0], sizes = [1, 32], strides = [1, 1]} : vector<6x32xf32> to vector<1x32xf32>
    %8 = vector.extract_strided_slice %5 {offsets = [5, 0], sizes = [1, 32], strides = [1, 1]} : vector<6x32xf32> to vector<1x32xf32>
    %c0_5 = arith.constant 0 : index
    %c0_6 = arith.constant 0 : index
    %9 = vector.load %arg2[%c0_5, %c0_6] : memref<130x128xf32, #tpu.memory_space<vmem>>, vector<130x128xf32>
    %10 = vector.extract_strided_slice %9 {offsets = [0, 0], sizes = [64, 128], strides = [1, 1]} : vector<130x128xf32> to vector<64x128xf32>
    %11 = vector.extract_strided_slice %9 {offsets = [64, 0], sizes = [64, 128], strides = [1, 1]} : vector<130x128xf32> to vector<64x128xf32>
    %12 = vector.extract_strided_slice %9 {offsets = [128, 0], sizes = [1, 128], strides = [1, 1]} : vector<130x128xf32> to vector<1x128xf32>
    %13 = vector.extract_strided_slice %9 {offsets = [129, 0], sizes = [1, 128], strides = [1, 1]} : vector<130x128xf32> to vector<1x128xf32>
    %c0_7 = arith.constant 0 : index
    %c0_8 = arith.constant 0 : index
    %14 = vector.load %arg4[%c0_7, %c0_8] : memref<33x2xf32, #tpu.memory_space<vmem>>, vector<33x2xf32>
    %15 = vector.extract_strided_slice %14 {offsets = [0, 0], sizes = [32, 2], strides = [1, 1]} : vector<33x2xf32> to vector<32x2xf32>
    %16 = vector.extract_strided_slice %14 {offsets = [32, 0], sizes = [1, 2], strides = [1, 1]} : vector<33x2xf32> to vector<1x2xf32>
    %c0_9 = arith.constant 0 : index
    %c0_10 = arith.constant 0 : index
    %17 = vector.load %arg5[%c0_9, %c0_10] : memref<33x2xf32, #tpu.memory_space<vmem>>, vector<33x2xf32>
    %18 = vector.extract_strided_slice %17 {offsets = [0, 0], sizes = [32, 2], strides = [1, 1]} : vector<33x2xf32> to vector<32x2xf32>
    %19 = vector.extract_strided_slice %17 {offsets = [32, 0], sizes = [1, 2], strides = [1, 1]} : vector<33x2xf32> to vector<1x2xf32>
    %c0_11 = arith.constant 0 : index
    %c0_12 = arith.constant 0 : index
    %20 = vector.load %arg6[%c0_11, %c0_12] : memref<136x256xf32, #tpu.memory_space<vmem>>, vector<136x256xf32>
    %21 = vector.extract_strided_slice %20 {offsets = [0, 0], sizes = [32, 256], strides = [1, 1]} : vector<136x256xf32> to vector<32x256xf32>
    %22 = vector.extract_strided_slice %20 {offsets = [32, 0], sizes = [32, 256], strides = [1, 1]} : vector<136x256xf32> to vector<32x256xf32>
    %23 = vector.extract_strided_slice %20 {offsets = [64, 0], sizes = [1, 256], strides = [1, 1]} : vector<136x256xf32> to vector<1x256xf32>
    %24 = vector.extract_strided_slice %20 {offsets = [72, 0], sizes = [64, 256], strides = [1, 1]} : vector<136x256xf32> to vector<64x256xf32>
    %c0_13 = arith.constant 0 : index
    %c0_14 = arith.constant 0 : index
    %25 = vector.load %arg7[%c0_13, %c0_14] : memref<256x4xf32, #tpu.memory_space<vmem>>, vector<256x4xf32>
    %c0_15 = arith.constant 0 : index
    %c0_16 = arith.constant 0 : index
    %26 = vector.load %arg8[%c0_15, %c0_16] : memref<9x16xf32, #tpu.memory_space<vmem>>, vector<9x16xf32>
    %27 = vector.extract_strided_slice %26 {offsets = [0, 0], sizes = [4, 16], strides = [1, 1]} : vector<9x16xf32> to vector<4x16xf32>
    %28 = vector.extract_strided_slice %26 {offsets = [4, 0], sizes = [4, 16], strides = [1, 1]} : vector<9x16xf32> to vector<4x16xf32>
    %29 = vector.extract_strided_slice %26 {offsets = [8, 0], sizes = [1, 16], strides = [1, 1]} : vector<9x16xf32> to vector<1x16xf32>
    %c0_17 = arith.constant 0 : index
    %c0_18 = arith.constant 0 : index
    %30 = vector.load %arg9[%c0_17, %c0_18] : memref<17x64xf32, #tpu.memory_space<vmem>>, vector<17x64xf32>
    %31 = vector.extract_strided_slice %30 {offsets = [0, 0], sizes = [16, 64], strides = [1, 1]} : vector<17x64xf32> to vector<16x64xf32>
    %32 = vector.extract_strided_slice %30 {offsets = [16, 0], sizes = [1, 64], strides = [1, 1]} : vector<17x64xf32> to vector<1x64xf32>
    %c0_19 = arith.constant 0 : index
    %c0_20 = arith.constant 0 : index
    %33 = vector.load %arg10[%c0_19, %c0_20] : memref<18x6xf32, #tpu.memory_space<vmem>>, vector<18x6xf32>
    %c0_21 = arith.constant 0 : index
    %c0_22 = arith.constant 0 : index
    %34 = vector.load %arg11[%c0_21, %c0_22] : memref<18x6xf32, #tpu.memory_space<vmem>>, vector<18x6xf32>
    %c0_23 = arith.constant 0 : index
    %c0_24 = arith.constant 0 : index
    %35 = vector.load %arg12[%c0_23, %c0_24] : memref<18x6xf32, #tpu.memory_space<vmem>>, vector<18x6xf32>
    %c0_25 = arith.constant 0 : index
    %c0_26 = arith.constant 0 : index
    %36 = vector.load %arg13[%c0_25, %c0_26] : memref<6x18xf32, #tpu.memory_space<vmem>>, vector<6x18xf32>
    %cst = arith.constant 0.000000e+00 : f32
    %37 = vector.broadcast %cst : f32 to vector<6x32xf32>
    %cst_27 = arith.constant 0.000000e+00 : f32
    %38 = vector.broadcast %cst_27 : f32 to vector<6x32xf32>
    %cst_28 = arith.constant dense<0.000000e+00> : vector<6x32xf32>
    %39 = tpu.matmul %3, %6, %cst_28 {dimension_numbers = #tpu.dot_dimension_numbers<[1], [0], [0], [1], [0, 0, 1, 1], [], []>} : vector<6x4xf32>, vector<4x32xf32>, vector<6x32xf32> -> vector<6x32xf32>
    %40 = vector.broadcast %7 : vector<1x32xf32> to vector<6x32xf32>
    %41 = arith.addf %39, %40 : vector<6x32xf32>
    %cst_29 = arith.constant 0.000000e+00 : f32
    %42 = vector.broadcast %cst_29 : f32 to vector<6x32xf32>
    %43 = arith.maximumf %41, %42 : vector<6x32xf32>
    %44 = tpu.concatenate %43, %1 in 1 : vector<6x32xf32>, vector<6x32xf32> -> vector<6x64xf32>
    %cst_30 = arith.constant dense<0.000000e+00> : vector<6x128xf32>
    %45 = tpu.matmul %44, %10, %cst_30 {dimension_numbers = #tpu.dot_dimension_numbers<[1], [0], [0], [1], [0, 0, 1, 1], [], []>} : vector<6x64xf32>, vector<64x128xf32>, vector<6x128xf32> -> vector<6x128xf32>
    %46 = vector.broadcast %12 : vector<1x128xf32> to vector<6x128xf32>
    %47 = arith.addf %45, %46 : vector<6x128xf32>
    %48 = vector.extract_strided_slice %47 {offsets = [0, 0], sizes = [6, 32], strides = [1, 1]} : vector<6x128xf32> to vector<6x32xf32>
    %49 = arith.negf %48 : vector<6x32xf32>
    %50 = math.exp %49 : vector<6x32xf32>
    %cst_31 = arith.constant 1.000000e+00 : f32
    %51 = vector.broadcast %cst_31 : f32 to vector<6x32xf32>
    %52 = arith.addf %51, %50 : vector<6x32xf32>
    %53 = arith.divf %51, %52 : vector<6x32xf32>
    %54 = vector.extract_strided_slice %47 {offsets = [0, 32], sizes = [6, 32], strides = [1, 1]} : vector<6x128xf32> to vector<6x32xf32>
    %55 = arith.negf %54 : vector<6x32xf32>
    %56 = math.exp %55 : vector<6x32xf32>
    %cst_32 = arith.constant 1.000000e+00 : f32
    %57 = vector.broadcast %cst_32 : f32 to vector<6x32xf32>
    %58 = arith.addf %57, %56 : vector<6x32xf32>
    %59 = arith.divf %57, %58 : vector<6x32xf32>
    %60 = vector.extract_strided_slice %47 {offsets = [0, 64], sizes = [6, 32], strides = [1, 1]} : vector<6x128xf32> to vector<6x32xf32>
    %61 = math.tanh %60 : vector<6x32xf32>
    %62 = vector.extract_strided_slice %47 {offsets = [0, 96], sizes = [6, 32], strides = [1, 1]} : vector<6x128xf32> to vector<6x32xf32>
    %63 = arith.negf %62 : vector<6x32xf32>
    %64 = math.exp %63 : vector<6x32xf32>
    %cst_33 = arith.constant 1.000000e+00 : f32
    %65 = vector.broadcast %cst_33 : f32 to vector<6x32xf32>
    %66 = arith.addf %65, %64 : vector<6x32xf32>
    %67 = arith.divf %65, %66 : vector<6x32xf32>
    %68 = arith.mulf %59, %37 : vector<6x32xf32>
    %69 = arith.mulf %53, %61 : vector<6x32xf32>
    %70 = arith.addf %68, %69 : vector<6x32xf32>
    %71 = math.tanh %70 : vector<6x32xf32>
    %72 = arith.mulf %67, %71 : vector<6x32xf32>
    %cst_34 = arith.constant dense<0.000000e+00> : vector<6x2xf32>
    %73 = tpu.matmul %72, %15, %cst_34 {dimension_numbers = #tpu.dot_dimension_numbers<[1], [0], [0], [1], [0, 0, 1, 1], [], []>} : vector<6x32xf32>, vector<32x2xf32>, vector<6x2xf32> -> vector<6x2xf32>
    %74 = vector.broadcast %16 : vector<1x2xf32> to vector<6x2xf32>
    %75 = arith.addf %73, %74 : vector<6x2xf32>
    %76 = tpu.concatenate %4, %75 in 1 : vector<6x2xf32>, vector<6x2xf32> -> vector<6x4xf32>
    %cst_35 = arith.constant dense<0.000000e+00> : vector<6x16xf32>
    %77 = tpu.matmul %76, %27, %cst_35 {dimension_numbers = #tpu.dot_dimension_numbers<[1], [0], [0], [1], [0, 0, 1, 1], [], []>} : vector<6x4xf32>, vector<4x16xf32>, vector<6x16xf32> -> vector<6x16xf32>
    %78 = vector.broadcast %29 : vector<1x16xf32> to vector<6x16xf32>
    %79 = arith.addf %77, %78 : vector<6x16xf32>
    %cst_36 = arith.constant dense<0.000000e+00> : vector<6x16xf32>
    %80 = tpu.matmul %76, %28, %cst_36 {dimension_numbers = #tpu.dot_dimension_numbers<[1], [0], [0], [1], [0, 0, 1, 1], [], []>} : vector<6x4xf32>, vector<4x16xf32>, vector<6x16xf32> -> vector<6x16xf32>
    %cst_37 = arith.constant dense<0.000000e+00> : vector<18x16xf32>
    %81 = tpu.matmul %33, %79, %cst_37 {dimension_numbers = #tpu.dot_dimension_numbers<[1], [0], [0], [1], [0, 0, 1, 1], [], []>} : vector<18x6xf32>, vector<6x16xf32>, vector<18x16xf32> -> vector<18x16xf32>
    %cst_38 = arith.constant dense<0.000000e+00> : vector<18x16xf32>
    %82 = tpu.matmul %34, %80, %cst_38 {dimension_numbers = #tpu.dot_dimension_numbers<[1], [0], [0], [1], [0, 0, 1, 1], [], []>} : vector<18x6xf32>, vector<6x16xf32>, vector<18x16xf32> -> vector<18x16xf32>
    %83 = arith.addf %81, %82 : vector<18x16xf32>
    %cst_39 = arith.constant 0.000000e+00 : f32
    %84 = vector.broadcast %cst_39 : f32 to vector<18x16xf32>
    %85 = arith.cmpf ogt, %83, %84 : vector<18x16xf32>
    %cst_40 = arith.constant 0.000000e+00 : f32
    %86 = vector.broadcast %cst_40 : f32 to vector<18x16xf32>
    %87 = arith.minimumf %83, %86 : vector<18x16xf32>
    %88 = math.exp %87 : vector<18x16xf32>
    %cst_41 = arith.constant 1.000000e+00 : f32
    %89 = vector.broadcast %cst_41 : f32 to vector<18x16xf32>
    %90 = arith.subf %88, %89 : vector<18x16xf32>
    %91 = arith.select %85, %83, %90 : vector<18x16xi1>, vector<18x16xf32>
    %cst_42 = arith.constant dense<0.000000e+00> : vector<18x64xf32>
    %92 = tpu.matmul %91, %31, %cst_42 {dimension_numbers = #tpu.dot_dimension_numbers<[1], [0], [0], [1], [0, 0, 1, 1], [], []>} : vector<18x16xf32>, vector<16x64xf32>, vector<18x64xf32> -> vector<18x64xf32>
    %93 = vector.broadcast %32 : vector<1x64xf32> to vector<18x64xf32>
    %94 = arith.addf %92, %93 : vector<18x64xf32>
    %95 = arith.negf %94 : vector<18x64xf32>
    %96 = math.exp %95 : vector<18x64xf32>
    %cst_43 = arith.constant 1.000000e+00 : f32
    %97 = vector.broadcast %cst_43 : f32 to vector<18x64xf32>
    %98 = arith.addf %97, %96 : vector<18x64xf32>
    %99 = arith.divf %97, %98 : vector<18x64xf32>
    %cst_44 = arith.constant dense<0.000000e+00> : vector<18x256xf32>
    %100 = tpu.matmul %99, %24, %cst_44 {dimension_numbers = #tpu.dot_dimension_numbers<[1], [0], [0], [1], [0, 0, 1, 1], [], []>} : vector<18x64xf32>, vector<64x256xf32>, vector<18x256xf32> -> vector<18x256xf32>
    %cst_45 = arith.constant dense<0.000000e+00> : vector<6x256xf32>
    %101 = tpu.matmul %2, %21, %cst_45 {dimension_numbers = #tpu.dot_dimension_numbers<[1], [0], [0], [1], [0, 0, 1, 1], [], []>} : vector<6x32xf32>, vector<32x256xf32>, vector<6x256xf32> -> vector<6x256xf32>
    %cst_46 = arith.constant dense<0.000000e+00> : vector<6x256xf32>
    %102 = tpu.matmul %2, %22, %cst_46 {dimension_numbers = #tpu.dot_dimension_numbers<[1], [0], [0], [1], [0, 0, 1, 1], [], []>} : vector<6x32xf32>, vector<32x256xf32>, vector<6x256xf32> -> vector<6x256xf32>
    %cst_47 = arith.constant dense<0.000000e+00> : vector<6x256xf32>
    %103 = tpu.matmul %72, %22, %cst_47 {dimension_numbers = #tpu.dot_dimension_numbers<[1], [0], [0], [1], [0, 0, 1, 1], [], []>} : vector<6x32xf32>, vector<32x256xf32>, vector<6x256xf32> -> vector<6x256xf32>
    %104 = arith.addf %101, %102 : vector<6x256xf32>
    %105 = vector.broadcast %23 : vector<1x256xf32> to vector<6x256xf32>
    %106 = arith.addf %104, %105 : vector<6x256xf32>
    %107 = math.tanh %106 : vector<6x256xf32>
    %cst_48 = arith.constant dense<0.000000e+00> : vector<6x4xf32>
    %108 = tpu.matmul %107, %25, %cst_48 {dimension_numbers = #tpu.dot_dimension_numbers<[1], [0], [0], [1], [0, 0, 1, 1], [], []>} : vector<6x256xf32>, vector<256x4xf32>, vector<6x4xf32> -> vector<6x4xf32>
    %cst_49 = arith.constant dense<0.000000e+00> : vector<18x256xf32>
    %109 = tpu.matmul %33, %101, %cst_49 {dimension_numbers = #tpu.dot_dimension_numbers<[1], [0], [0], [1], [0, 0, 1, 1], [], []>} : vector<18x6xf32>, vector<6x256xf32>, vector<18x256xf32> -> vector<18x256xf32>
    %cst_50 = arith.constant dense<0.000000e+00> : vector<18x256xf32>
    %110 = tpu.matmul %34, %102, %cst_50 {dimension_numbers = #tpu.dot_dimension_numbers<[1], [0], [0], [1], [0, 0, 1, 1], [], []>} : vector<18x6xf32>, vector<6x256xf32>, vector<18x256xf32> -> vector<18x256xf32>
    %111 = arith.addf %109, %110 : vector<18x256xf32>
    %112 = arith.subf %103, %102 : vector<6x256xf32>
    %cst_51 = arith.constant dense<0.000000e+00> : vector<18x256xf32>
    %113 = tpu.matmul %35, %112, %cst_51 {dimension_numbers = #tpu.dot_dimension_numbers<[1], [0], [0], [1], [0, 0, 1, 1], [], []>} : vector<18x6xf32>, vector<6x256xf32>, vector<18x256xf32> -> vector<18x256xf32>
    %114 = arith.addf %111, %113 : vector<18x256xf32>
    %115 = vector.broadcast %23 : vector<1x256xf32> to vector<18x256xf32>
    %116 = arith.addf %114, %115 : vector<18x256xf32>
    %117 = math.tanh %116 : vector<18x256xf32>
    %118 = arith.mulf %100, %117 : vector<18x256xf32>
    %cst_52 = arith.constant dense<0.000000e+00> : vector<18x4xf32>
    %119 = tpu.matmul %118, %25, %cst_52 {dimension_numbers = #tpu.dot_dimension_numbers<[1], [0], [0], [1], [0, 0, 1, 1], [], []>} : vector<18x256xf32>, vector<256x4xf32>, vector<18x4xf32> -> vector<18x4xf32>
    %cst_53 = arith.constant 0.000000e+00 : f32
    %120 = vector.broadcast %cst_53 : f32 to vector<6x4xf32>
    %121 = arith.cmpf ogt, %108, %120 : vector<6x4xf32>
    %cst_54 = arith.constant 2.000000e-01 : f32
    %122 = vector.broadcast %cst_54 : f32 to vector<6x4xf32>
    %123 = arith.mulf %122, %108 : vector<6x4xf32>
    %124 = arith.select %121, %108, %123 : vector<6x4xi1>, vector<6x4xf32>
    %cst_55 = arith.constant 0.000000e+00 : f32
    %125 = vector.broadcast %cst_55 : f32 to vector<18x4xf32>
    %126 = arith.cmpf ogt, %119, %125 : vector<18x4xf32>
    %cst_56 = arith.constant 2.000000e-01 : f32
    %127 = vector.broadcast %cst_56 : f32 to vector<18x4xf32>
    %128 = arith.mulf %127, %119 : vector<18x4xf32>
    %129 = arith.select %126, %119, %128 : vector<18x4xi1>, vector<18x4xf32>
    %cst_57 = arith.constant dense<0xFF800000> : vector<4xf32>
    %130 = vector.multi_reduction <maximumf>, %124, %cst_57 [0] : vector<6x4xf32> to vector<4xf32>
    %131 = vector.shape_cast %130 : vector<4xf32> to vector<1x4xf32>
    %cst_58 = arith.constant dense<0xFF800000> : vector<4xf32>
    %132 = vector.multi_reduction <maximumf>, %129, %cst_58 [0] : vector<18x4xf32> to vector<4xf32>
    %133 = vector.shape_cast %132 : vector<4xf32> to vector<1x4xf32>
    %134 = arith.maximumf %131, %133 : vector<1x4xf32>
    %cst_59 = arith.constant dense<0xFF800000> : vector<1xf32>
    %135 = vector.multi_reduction <maximumf>, %134, %cst_59 [1] : vector<1x4xf32> to vector<1xf32>
    %136 = vector.shape_cast %135 : vector<1xf32> to vector<1x1xf32>
    %137 = vector.broadcast %136 : vector<1x1xf32> to vector<6x4xf32>
    %138 = arith.subf %124, %137 : vector<6x4xf32>
    %139 = math.exp %138 : vector<6x4xf32>
    %140 = vector.broadcast %136 : vector<1x1xf32> to vector<18x4xf32>
    %141 = arith.subf %129, %140 : vector<18x4xf32>
    %142 = math.exp %141 : vector<18x4xf32>
    %cst_60 = arith.constant dense<0.000000e+00> : vector<6x4xf32>
    %143 = tpu.matmul %36, %142, %cst_60 {dimension_numbers = #tpu.dot_dimension_numbers<[1], [0], [0], [1], [0, 0, 1, 1], [], []>} : vector<6x18xf32>, vector<18x4xf32>, vector<6x4xf32> -> vector<6x4xf32>
    %144 = arith.addf %139, %143 : vector<6x4xf32>
    %cst_61 = arith.constant 1.000000e+00 : f32
    %145 = vector.broadcast %cst_61 : f32 to vector<6x4xf32>
    %146 = arith.divf %145, %144 : vector<6x4xf32>
    %147 = arith.mulf %139, %146 : vector<6x4xf32>
    %cst_62 = arith.constant dense<0.000000e+00> : vector<6xf32>
    %148 = vector.multi_reduction <add>, %147, %cst_62 [1] : vector<6x4xf32> to vector<6xf32>
    %149 = vector.shape_cast %148 : vector<6xf32> to vector<6x1xf32>
    %cst_63 = arith.constant dense<0.000000e+00> : vector<18x4xf32>
    %150 = tpu.matmul %33, %146, %cst_63 {dimension_numbers = #tpu.dot_dimension_numbers<[1], [0], [0], [1], [0, 0, 1, 1], [], []>} : vector<18x6xf32>, vector<6x4xf32>, vector<18x4xf32> -> vector<18x4xf32>
    %151 = arith.mulf %142, %150 : vector<18x4xf32>
    %cst_64 = arith.constant dense<0.000000e+00> : vector<18xf32>
    %152 = vector.multi_reduction <add>, %151, %cst_64 [1] : vector<18x4xf32> to vector<18xf32>
    %153 = vector.shape_cast %152 : vector<18xf32> to vector<18x1xf32>
    %cst_65 = arith.constant dense<0.000000e+00> : vector<18x32xf32>
    %154 = tpu.matmul %34, %2, %cst_65 {dimension_numbers = #tpu.dot_dimension_numbers<[1], [0], [0], [1], [0, 0, 1, 1], [], []>} : vector<18x6xf32>, vector<6x32xf32>, vector<18x32xf32> -> vector<18x32xf32>
    %155 = arith.subf %72, %2 : vector<6x32xf32>
    %cst_66 = arith.constant dense<0.000000e+00> : vector<18x32xf32>
    %156 = tpu.matmul %35, %155, %cst_66 {dimension_numbers = #tpu.dot_dimension_numbers<[1], [0], [0], [1], [0, 0, 1, 1], [], []>} : vector<18x6xf32>, vector<6x32xf32>, vector<18x32xf32> -> vector<18x32xf32>
    %157 = arith.addf %154, %156 : vector<18x32xf32>
    %158 = vector.broadcast %149 : vector<6x1xf32> to vector<6x32xf32>
    %159 = arith.mulf %158, %2 : vector<6x32xf32>
    %160 = vector.broadcast %153 : vector<18x1xf32> to vector<18x32xf32>
    %161 = arith.mulf %160, %157 : vector<18x32xf32>
    %cst_67 = arith.constant dense<0.000000e+00> : vector<6x32xf32>
    %162 = tpu.matmul %36, %161, %cst_67 {dimension_numbers = #tpu.dot_dimension_numbers<[1], [0], [0], [1], [0, 0, 1, 1], [], []>} : vector<6x18xf32>, vector<18x32xf32>, vector<6x32xf32> -> vector<6x32xf32>
    %163 = arith.addf %159, %162 : vector<6x32xf32>
    %cst_68 = arith.constant 2.500000e-01 : f32
    %164 = vector.broadcast %cst_68 : f32 to vector<6x32xf32>
    %165 = arith.mulf %163, %164 : vector<6x32xf32>
    %cst_69 = arith.constant 0.000000e+00 : f32
    %166 = vector.broadcast %cst_69 : f32 to vector<6x32xf32>
    %167 = arith.maximumf %165, %166 : vector<6x32xf32>
    %168 = vector.broadcast %8 : vector<1x32xf32> to vector<6x32xf32>
    %169 = arith.addf %167, %168 : vector<6x32xf32>
    %170 = tpu.concatenate %43, %169 in 1 : vector<6x32xf32>, vector<6x32xf32> -> vector<6x64xf32>
    %cst_70 = arith.constant dense<0.000000e+00> : vector<6x128xf32>
    %171 = tpu.matmul %170, %11, %cst_70 {dimension_numbers = #tpu.dot_dimension_numbers<[1], [0], [0], [1], [0, 0, 1, 1], [], []>} : vector<6x64xf32>, vector<64x128xf32>, vector<6x128xf32> -> vector<6x128xf32>
    %172 = vector.broadcast %13 : vector<1x128xf32> to vector<6x128xf32>
    %173 = arith.addf %171, %172 : vector<6x128xf32>
    %174 = vector.extract_strided_slice %173 {offsets = [0, 0], sizes = [6, 32], strides = [1, 1]} : vector<6x128xf32> to vector<6x32xf32>
    %175 = arith.negf %174 : vector<6x32xf32>
    %176 = math.exp %175 : vector<6x32xf32>
    %cst_71 = arith.constant 1.000000e+00 : f32
    %177 = vector.broadcast %cst_71 : f32 to vector<6x32xf32>
    %178 = arith.addf %177, %176 : vector<6x32xf32>
    %179 = arith.divf %177, %178 : vector<6x32xf32>
    %180 = vector.extract_strided_slice %173 {offsets = [0, 32], sizes = [6, 32], strides = [1, 1]} : vector<6x128xf32> to vector<6x32xf32>
    %181 = arith.negf %180 : vector<6x32xf32>
    %182 = math.exp %181 : vector<6x32xf32>
    %cst_72 = arith.constant 1.000000e+00 : f32
    %183 = vector.broadcast %cst_72 : f32 to vector<6x32xf32>
    %184 = arith.addf %183, %182 : vector<6x32xf32>
    %185 = arith.divf %183, %184 : vector<6x32xf32>
    %186 = vector.extract_strided_slice %173 {offsets = [0, 64], sizes = [6, 32], strides = [1, 1]} : vector<6x128xf32> to vector<6x32xf32>
    %187 = math.tanh %186 : vector<6x32xf32>
    %188 = vector.extract_strided_slice %173 {offsets = [0, 96], sizes = [6, 32], strides = [1, 1]} : vector<6x128xf32> to vector<6x32xf32>
    %189 = arith.negf %188 : vector<6x32xf32>
    %190 = math.exp %189 : vector<6x32xf32>
    %cst_73 = arith.constant 1.000000e+00 : f32
    %191 = vector.broadcast %cst_73 : f32 to vector<6x32xf32>
    %192 = arith.addf %191, %190 : vector<6x32xf32>
    %193 = arith.divf %191, %192 : vector<6x32xf32>
    %194 = arith.mulf %185, %38 : vector<6x32xf32>
    %195 = arith.mulf %179, %187 : vector<6x32xf32>
    %196 = arith.addf %194, %195 : vector<6x32xf32>
    %197 = math.tanh %196 : vector<6x32xf32>
    %198 = arith.mulf %193, %197 : vector<6x32xf32>
    %cst_74 = arith.constant dense<0.000000e+00> : vector<6x2xf32>
    %199 = tpu.matmul %198, %18, %cst_74 {dimension_numbers = #tpu.dot_dimension_numbers<[1], [0], [0], [1], [0, 0, 1, 1], [], []>} : vector<6x32xf32>, vector<32x2xf32>, vector<6x2xf32> -> vector<6x2xf32>
    %200 = vector.broadcast %19 : vector<1x2xf32> to vector<6x2xf32>
    %201 = arith.addf %199, %200 : vector<6x2xf32>
    %202 = arith.addf %4, %201 : vector<6x2xf32>
    %203 = tpu.concatenate %202, %201 in 1 : vector<6x2xf32>, vector<6x2xf32> -> vector<6x4xf32>
    %cst_75 = arith.constant dense<0.000000e+00> : vector<6x32xf32>
    %204 = tpu.matmul %203, %6, %cst_75 {dimension_numbers = #tpu.dot_dimension_numbers<[1], [0], [0], [1], [0, 0, 1, 1], [], []>} : vector<6x4xf32>, vector<4x32xf32>, vector<6x32xf32> -> vector<6x32xf32>
    %205 = vector.broadcast %7 : vector<1x32xf32> to vector<6x32xf32>
    %206 = arith.addf %204, %205 : vector<6x32xf32>
    %cst_76 = arith.constant 0.000000e+00 : f32
    %207 = vector.broadcast %cst_76 : f32 to vector<6x32xf32>
    %208 = arith.maximumf %206, %207 : vector<6x32xf32>
    %209 = tpu.concatenate %208, %72 in 1 : vector<6x32xf32>, vector<6x32xf32> -> vector<6x64xf32>
    %cst_77 = arith.constant dense<0.000000e+00> : vector<6x128xf32>
    %210 = tpu.matmul %209, %10, %cst_77 {dimension_numbers = #tpu.dot_dimension_numbers<[1], [0], [0], [1], [0, 0, 1, 1], [], []>} : vector<6x64xf32>, vector<64x128xf32>, vector<6x128xf32> -> vector<6x128xf32>
    %211 = vector.broadcast %12 : vector<1x128xf32> to vector<6x128xf32>
    %212 = arith.addf %210, %211 : vector<6x128xf32>
    %213 = vector.extract_strided_slice %212 {offsets = [0, 0], sizes = [6, 32], strides = [1, 1]} : vector<6x128xf32> to vector<6x32xf32>
    %214 = arith.negf %213 : vector<6x32xf32>
    %215 = math.exp %214 : vector<6x32xf32>
    %cst_78 = arith.constant 1.000000e+00 : f32
    %216 = vector.broadcast %cst_78 : f32 to vector<6x32xf32>
    %217 = arith.addf %216, %215 : vector<6x32xf32>
    %218 = arith.divf %216, %217 : vector<6x32xf32>
    %219 = vector.extract_strided_slice %212 {offsets = [0, 32], sizes = [6, 32], strides = [1, 1]} : vector<6x128xf32> to vector<6x32xf32>
    %220 = arith.negf %219 : vector<6x32xf32>
    %221 = math.exp %220 : vector<6x32xf32>
    %cst_79 = arith.constant 1.000000e+00 : f32
    %222 = vector.broadcast %cst_79 : f32 to vector<6x32xf32>
    %223 = arith.addf %222, %221 : vector<6x32xf32>
    %224 = arith.divf %222, %223 : vector<6x32xf32>
    %225 = vector.extract_strided_slice %212 {offsets = [0, 64], sizes = [6, 32], strides = [1, 1]} : vector<6x128xf32> to vector<6x32xf32>
    %226 = math.tanh %225 : vector<6x32xf32>
    %227 = vector.extract_strided_slice %212 {offsets = [0, 96], sizes = [6, 32], strides = [1, 1]} : vector<6x128xf32> to vector<6x32xf32>
    %228 = arith.negf %227 : vector<6x32xf32>
    %229 = math.exp %228 : vector<6x32xf32>
    %cst_80 = arith.constant 1.000000e+00 : f32
    %230 = vector.broadcast %cst_80 : f32 to vector<6x32xf32>
    %231 = arith.addf %230, %229 : vector<6x32xf32>
    %232 = arith.divf %230, %231 : vector<6x32xf32>
    %233 = arith.mulf %224, %70 : vector<6x32xf32>
    %234 = arith.mulf %218, %226 : vector<6x32xf32>
    %235 = arith.addf %233, %234 : vector<6x32xf32>
    %236 = math.tanh %235 : vector<6x32xf32>
    %237 = arith.mulf %232, %236 : vector<6x32xf32>
    %cst_81 = arith.constant dense<0.000000e+00> : vector<6x2xf32>
    %238 = tpu.matmul %237, %15, %cst_81 {dimension_numbers = #tpu.dot_dimension_numbers<[1], [0], [0], [1], [0, 0, 1, 1], [], []>} : vector<6x32xf32>, vector<32x2xf32>, vector<6x2xf32> -> vector<6x2xf32>
    %239 = vector.broadcast %16 : vector<1x2xf32> to vector<6x2xf32>
    %240 = arith.addf %238, %239 : vector<6x2xf32>
    %241 = tpu.concatenate %202, %240 in 1 : vector<6x2xf32>, vector<6x2xf32> -> vector<6x4xf32>
    %cst_82 = arith.constant dense<0.000000e+00> : vector<6x16xf32>
    %242 = tpu.matmul %241, %27, %cst_82 {dimension_numbers = #tpu.dot_dimension_numbers<[1], [0], [0], [1], [0, 0, 1, 1], [], []>} : vector<6x4xf32>, vector<4x16xf32>, vector<6x16xf32> -> vector<6x16xf32>
    %243 = vector.broadcast %29 : vector<1x16xf32> to vector<6x16xf32>
    %244 = arith.addf %242, %243 : vector<6x16xf32>
    %cst_83 = arith.constant dense<0.000000e+00> : vector<6x16xf32>
    %245 = tpu.matmul %241, %28, %cst_83 {dimension_numbers = #tpu.dot_dimension_numbers<[1], [0], [0], [1], [0, 0, 1, 1], [], []>} : vector<6x4xf32>, vector<4x16xf32>, vector<6x16xf32> -> vector<6x16xf32>
    %cst_84 = arith.constant dense<0.000000e+00> : vector<18x16xf32>
    %246 = tpu.matmul %33, %244, %cst_84 {dimension_numbers = #tpu.dot_dimension_numbers<[1], [0], [0], [1], [0, 0, 1, 1], [], []>} : vector<18x6xf32>, vector<6x16xf32>, vector<18x16xf32> -> vector<18x16xf32>
    %cst_85 = arith.constant dense<0.000000e+00> : vector<18x16xf32>
    %247 = tpu.matmul %34, %245, %cst_85 {dimension_numbers = #tpu.dot_dimension_numbers<[1], [0], [0], [1], [0, 0, 1, 1], [], []>} : vector<18x6xf32>, vector<6x16xf32>, vector<18x16xf32> -> vector<18x16xf32>
    %248 = arith.addf %246, %247 : vector<18x16xf32>
    %cst_86 = arith.constant 0.000000e+00 : f32
    %249 = vector.broadcast %cst_86 : f32 to vector<18x16xf32>
    %250 = arith.cmpf ogt, %248, %249 : vector<18x16xf32>
    %cst_87 = arith.constant 0.000000e+00 : f32
    %251 = vector.broadcast %cst_87 : f32 to vector<18x16xf32>
    %252 = arith.minimumf %248, %251 : vector<18x16xf32>
    %253 = math.exp %252 : vector<18x16xf32>
    %cst_88 = arith.constant 1.000000e+00 : f32
    %254 = vector.broadcast %cst_88 : f32 to vector<18x16xf32>
    %255 = arith.subf %253, %254 : vector<18x16xf32>
    %256 = arith.select %250, %248, %255 : vector<18x16xi1>, vector<18x16xf32>
    %cst_89 = arith.constant dense<0.000000e+00> : vector<18x64xf32>
    %257 = tpu.matmul %256, %31, %cst_89 {dimension_numbers = #tpu.dot_dimension_numbers<[1], [0], [0], [1], [0, 0, 1, 1], [], []>} : vector<18x16xf32>, vector<16x64xf32>, vector<18x64xf32> -> vector<18x64xf32>
    %258 = vector.broadcast %32 : vector<1x64xf32> to vector<18x64xf32>
    %259 = arith.addf %257, %258 : vector<18x64xf32>
    %260 = arith.negf %259 : vector<18x64xf32>
    %261 = math.exp %260 : vector<18x64xf32>
    %cst_90 = arith.constant 1.000000e+00 : f32
    %262 = vector.broadcast %cst_90 : f32 to vector<18x64xf32>
    %263 = arith.addf %262, %261 : vector<18x64xf32>
    %264 = arith.divf %262, %263 : vector<18x64xf32>
    %cst_91 = arith.constant dense<0.000000e+00> : vector<18x256xf32>
    %265 = tpu.matmul %264, %24, %cst_91 {dimension_numbers = #tpu.dot_dimension_numbers<[1], [0], [0], [1], [0, 0, 1, 1], [], []>} : vector<18x64xf32>, vector<64x256xf32>, vector<18x256xf32> -> vector<18x256xf32>
    %cst_92 = arith.constant dense<0.000000e+00> : vector<6x256xf32>
    %266 = tpu.matmul %198, %21, %cst_92 {dimension_numbers = #tpu.dot_dimension_numbers<[1], [0], [0], [1], [0, 0, 1, 1], [], []>} : vector<6x32xf32>, vector<32x256xf32>, vector<6x256xf32> -> vector<6x256xf32>
    %cst_93 = arith.constant dense<0.000000e+00> : vector<6x256xf32>
    %267 = tpu.matmul %198, %22, %cst_93 {dimension_numbers = #tpu.dot_dimension_numbers<[1], [0], [0], [1], [0, 0, 1, 1], [], []>} : vector<6x32xf32>, vector<32x256xf32>, vector<6x256xf32> -> vector<6x256xf32>
    %cst_94 = arith.constant dense<0.000000e+00> : vector<6x256xf32>
    %268 = tpu.matmul %237, %22, %cst_94 {dimension_numbers = #tpu.dot_dimension_numbers<[1], [0], [0], [1], [0, 0, 1, 1], [], []>} : vector<6x32xf32>, vector<32x256xf32>, vector<6x256xf32> -> vector<6x256xf32>
    %269 = arith.addf %266, %267 : vector<6x256xf32>
    %270 = vector.broadcast %23 : vector<1x256xf32> to vector<6x256xf32>
    %271 = arith.addf %269, %270 : vector<6x256xf32>
    %272 = math.tanh %271 : vector<6x256xf32>
    %cst_95 = arith.constant dense<0.000000e+00> : vector<6x4xf32>
    %273 = tpu.matmul %272, %25, %cst_95 {dimension_numbers = #tpu.dot_dimension_numbers<[1], [0], [0], [1], [0, 0, 1, 1], [], []>} : vector<6x256xf32>, vector<256x4xf32>, vector<6x4xf32> -> vector<6x4xf32>
    %cst_96 = arith.constant dense<0.000000e+00> : vector<18x256xf32>
    %274 = tpu.matmul %33, %266, %cst_96 {dimension_numbers = #tpu.dot_dimension_numbers<[1], [0], [0], [1], [0, 0, 1, 1], [], []>} : vector<18x6xf32>, vector<6x256xf32>, vector<18x256xf32> -> vector<18x256xf32>
    %cst_97 = arith.constant dense<0.000000e+00> : vector<18x256xf32>
    %275 = tpu.matmul %34, %267, %cst_97 {dimension_numbers = #tpu.dot_dimension_numbers<[1], [0], [0], [1], [0, 0, 1, 1], [], []>} : vector<18x6xf32>, vector<6x256xf32>, vector<18x256xf32> -> vector<18x256xf32>
    %276 = arith.addf %274, %275 : vector<18x256xf32>
    %277 = arith.subf %268, %267 : vector<6x256xf32>
    %cst_98 = arith.constant dense<0.000000e+00> : vector<18x256xf32>
    %278 = tpu.matmul %35, %277, %cst_98 {dimension_numbers = #tpu.dot_dimension_numbers<[1], [0], [0], [1], [0, 0, 1, 1], [], []>} : vector<18x6xf32>, vector<6x256xf32>, vector<18x256xf32> -> vector<18x256xf32>
    %279 = arith.addf %276, %278 : vector<18x256xf32>
    %280 = vector.broadcast %23 : vector<1x256xf32> to vector<18x256xf32>
    %281 = arith.addf %279, %280 : vector<18x256xf32>
    %282 = math.tanh %281 : vector<18x256xf32>
    %283 = arith.mulf %265, %282 : vector<18x256xf32>
    %cst_99 = arith.constant dense<0.000000e+00> : vector<18x4xf32>
    %284 = tpu.matmul %283, %25, %cst_99 {dimension_numbers = #tpu.dot_dimension_numbers<[1], [0], [0], [1], [0, 0, 1, 1], [], []>} : vector<18x256xf32>, vector<256x4xf32>, vector<18x4xf32> -> vector<18x4xf32>
    %cst_100 = arith.constant 0.000000e+00 : f32
    %285 = vector.broadcast %cst_100 : f32 to vector<6x4xf32>
    %286 = arith.cmpf ogt, %273, %285 : vector<6x4xf32>
    %cst_101 = arith.constant 2.000000e-01 : f32
    %287 = vector.broadcast %cst_101 : f32 to vector<6x4xf32>
    %288 = arith.mulf %287, %273 : vector<6x4xf32>
    %289 = arith.select %286, %273, %288 : vector<6x4xi1>, vector<6x4xf32>
    %cst_102 = arith.constant 0.000000e+00 : f32
    %290 = vector.broadcast %cst_102 : f32 to vector<18x4xf32>
    %291 = arith.cmpf ogt, %284, %290 : vector<18x4xf32>
    %cst_103 = arith.constant 2.000000e-01 : f32
    %292 = vector.broadcast %cst_103 : f32 to vector<18x4xf32>
    %293 = arith.mulf %292, %284 : vector<18x4xf32>
    %294 = arith.select %291, %284, %293 : vector<18x4xi1>, vector<18x4xf32>
    %cst_104 = arith.constant dense<0xFF800000> : vector<4xf32>
    %295 = vector.multi_reduction <maximumf>, %289, %cst_104 [0] : vector<6x4xf32> to vector<4xf32>
    %296 = vector.shape_cast %295 : vector<4xf32> to vector<1x4xf32>
    %cst_105 = arith.constant dense<0xFF800000> : vector<4xf32>
    %297 = vector.multi_reduction <maximumf>, %294, %cst_105 [0] : vector<18x4xf32> to vector<4xf32>
    %298 = vector.shape_cast %297 : vector<4xf32> to vector<1x4xf32>
    %299 = arith.maximumf %296, %298 : vector<1x4xf32>
    %cst_106 = arith.constant dense<0xFF800000> : vector<1xf32>
    %300 = vector.multi_reduction <maximumf>, %299, %cst_106 [1] : vector<1x4xf32> to vector<1xf32>
    %301 = vector.shape_cast %300 : vector<1xf32> to vector<1x1xf32>
    %302 = vector.broadcast %301 : vector<1x1xf32> to vector<6x4xf32>
    %303 = arith.subf %289, %302 : vector<6x4xf32>
    %304 = math.exp %303 : vector<6x4xf32>
    %305 = vector.broadcast %301 : vector<1x1xf32> to vector<18x4xf32>
    %306 = arith.subf %294, %305 : vector<18x4xf32>
    %307 = math.exp %306 : vector<18x4xf32>
    %cst_107 = arith.constant dense<0.000000e+00> : vector<6x4xf32>
    %308 = tpu.matmul %36, %307, %cst_107 {dimension_numbers = #tpu.dot_dimension_numbers<[1], [0], [0], [1], [0, 0, 1, 1], [], []>} : vector<6x18xf32>, vector<18x4xf32>, vector<6x4xf32> -> vector<6x4xf32>
    %309 = arith.addf %304, %308 : vector<6x4xf32>
    %cst_108 = arith.constant 1.000000e+00 : f32
    %310 = vector.broadcast %cst_108 : f32 to vector<6x4xf32>
    %311 = arith.divf %310, %309 : vector<6x4xf32>
    %312 = arith.mulf %304, %311 : vector<6x4xf32>
    %cst_109 = arith.constant dense<0.000000e+00> : vector<6xf32>
    %313 = vector.multi_reduction <add>, %312, %cst_109 [1] : vector<6x4xf32> to vector<6xf32>
    %314 = vector.shape_cast %313 : vector<6xf32> to vector<6x1xf32>
    %cst_110 = arith.constant dense<0.000000e+00> : vector<18x4xf32>
    %315 = tpu.matmul %33, %311, %cst_110 {dimension_numbers = #tpu.dot_dimension_numbers<[1], [0], [0], [1], [0, 0, 1, 1], [], []>} : vector<18x6xf32>, vector<6x4xf32>, vector<18x4xf32> -> vector<18x4xf32>
    %316 = arith.mulf %307, %315 : vector<18x4xf32>
    %cst_111 = arith.constant dense<0.000000e+00> : vector<18xf32>
    %317 = vector.multi_reduction <add>, %316, %cst_111 [1] : vector<18x4xf32> to vector<18xf32>
    %318 = vector.shape_cast %317 : vector<18xf32> to vector<18x1xf32>
    %cst_112 = arith.constant dense<0.000000e+00> : vector<18x32xf32>
    %319 = tpu.matmul %34, %198, %cst_112 {dimension_numbers = #tpu.dot_dimension_numbers<[1], [0], [0], [1], [0, 0, 1, 1], [], []>} : vector<18x6xf32>, vector<6x32xf32>, vector<18x32xf32> -> vector<18x32xf32>
    %320 = arith.subf %237, %198 : vector<6x32xf32>
    %cst_113 = arith.constant dense<0.000000e+00> : vector<18x32xf32>
    %321 = tpu.matmul %35, %320, %cst_113 {dimension_numbers = #tpu.dot_dimension_numbers<[1], [0], [0], [1], [0, 0, 1, 1], [], []>} : vector<18x6xf32>, vector<6x32xf32>, vector<18x32xf32> -> vector<18x32xf32>
    %322 = arith.addf %319, %321 : vector<18x32xf32>
    %323 = vector.broadcast %314 : vector<6x1xf32> to vector<6x32xf32>
    %324 = arith.mulf %323, %198 : vector<6x32xf32>
    %325 = vector.broadcast %318 : vector<18x1xf32> to vector<18x32xf32>
    %326 = arith.mulf %325, %322 : vector<18x32xf32>
    %cst_114 = arith.constant dense<0.000000e+00> : vector<6x32xf32>
    %327 = tpu.matmul %36, %326, %cst_114 {dimension_numbers = #tpu.dot_dimension_numbers<[1], [0], [0], [1], [0, 0, 1, 1], [], []>} : vector<6x18xf32>, vector<18x32xf32>, vector<6x32xf32> -> vector<6x32xf32>
    %328 = arith.addf %324, %327 : vector<6x32xf32>
    %cst_115 = arith.constant 2.500000e-01 : f32
    %329 = vector.broadcast %cst_115 : f32 to vector<6x32xf32>
    %330 = arith.mulf %328, %329 : vector<6x32xf32>
    %cst_116 = arith.constant 0.000000e+00 : f32
    %331 = vector.broadcast %cst_116 : f32 to vector<6x32xf32>
    %332 = arith.maximumf %330, %331 : vector<6x32xf32>
    %333 = vector.broadcast %8 : vector<1x32xf32> to vector<6x32xf32>
    %334 = arith.addf %332, %333 : vector<6x32xf32>
    %335 = tpu.concatenate %208, %334 in 1 : vector<6x32xf32>, vector<6x32xf32> -> vector<6x64xf32>
    %cst_117 = arith.constant dense<0.000000e+00> : vector<6x128xf32>
    %336 = tpu.matmul %335, %11, %cst_117 {dimension_numbers = #tpu.dot_dimension_numbers<[1], [0], [0], [1], [0, 0, 1, 1], [], []>} : vector<6x64xf32>, vector<64x128xf32>, vector<6x128xf32> -> vector<6x128xf32>
    %337 = vector.broadcast %13 : vector<1x128xf32> to vector<6x128xf32>
    %338 = arith.addf %336, %337 : vector<6x128xf32>
    %339 = vector.extract_strided_slice %338 {offsets = [0, 0], sizes = [6, 32], strides = [1, 1]} : vector<6x128xf32> to vector<6x32xf32>
    %340 = arith.negf %339 : vector<6x32xf32>
    %341 = math.exp %340 : vector<6x32xf32>
    %cst_118 = arith.constant 1.000000e+00 : f32
    %342 = vector.broadcast %cst_118 : f32 to vector<6x32xf32>
    %343 = arith.addf %342, %341 : vector<6x32xf32>
    %344 = arith.divf %342, %343 : vector<6x32xf32>
    %345 = vector.extract_strided_slice %338 {offsets = [0, 32], sizes = [6, 32], strides = [1, 1]} : vector<6x128xf32> to vector<6x32xf32>
    %346 = arith.negf %345 : vector<6x32xf32>
    %347 = math.exp %346 : vector<6x32xf32>
    %cst_119 = arith.constant 1.000000e+00 : f32
    %348 = vector.broadcast %cst_119 : f32 to vector<6x32xf32>
    %349 = arith.addf %348, %347 : vector<6x32xf32>
    %350 = arith.divf %348, %349 : vector<6x32xf32>
    %351 = vector.extract_strided_slice %338 {offsets = [0, 64], sizes = [6, 32], strides = [1, 1]} : vector<6x128xf32> to vector<6x32xf32>
    %352 = math.tanh %351 : vector<6x32xf32>
    %353 = vector.extract_strided_slice %338 {offsets = [0, 96], sizes = [6, 32], strides = [1, 1]} : vector<6x128xf32> to vector<6x32xf32>
    %354 = arith.negf %353 : vector<6x32xf32>
    %355 = math.exp %354 : vector<6x32xf32>
    %cst_120 = arith.constant 1.000000e+00 : f32
    %356 = vector.broadcast %cst_120 : f32 to vector<6x32xf32>
    %357 = arith.addf %356, %355 : vector<6x32xf32>
    %358 = arith.divf %356, %357 : vector<6x32xf32>
    %359 = arith.mulf %350, %196 : vector<6x32xf32>
    %360 = arith.mulf %344, %352 : vector<6x32xf32>
    %361 = arith.addf %359, %360 : vector<6x32xf32>
    %362 = math.tanh %361 : vector<6x32xf32>
    %363 = arith.mulf %358, %362 : vector<6x32xf32>
    %cst_121 = arith.constant dense<0.000000e+00> : vector<6x2xf32>
    %364 = tpu.matmul %363, %18, %cst_121 {dimension_numbers = #tpu.dot_dimension_numbers<[1], [0], [0], [1], [0, 0, 1, 1], [], []>} : vector<6x32xf32>, vector<32x2xf32>, vector<6x2xf32> -> vector<6x2xf32>
    %365 = vector.broadcast %19 : vector<1x2xf32> to vector<6x2xf32>
    %366 = arith.addf %364, %365 : vector<6x2xf32>
    %367 = arith.addf %202, %366 : vector<6x2xf32>
    %368 = tpu.concatenate %367, %366 in 1 : vector<6x2xf32>, vector<6x2xf32> -> vector<6x4xf32>
    %cst_122 = arith.constant dense<0.000000e+00> : vector<6x32xf32>
    %369 = tpu.matmul %368, %6, %cst_122 {dimension_numbers = #tpu.dot_dimension_numbers<[1], [0], [0], [1], [0, 0, 1, 1], [], []>} : vector<6x4xf32>, vector<4x32xf32>, vector<6x32xf32> -> vector<6x32xf32>
    %370 = vector.broadcast %7 : vector<1x32xf32> to vector<6x32xf32>
    %371 = arith.addf %369, %370 : vector<6x32xf32>
    %cst_123 = arith.constant 0.000000e+00 : f32
    %372 = vector.broadcast %cst_123 : f32 to vector<6x32xf32>
    %373 = arith.maximumf %371, %372 : vector<6x32xf32>
    %374 = tpu.concatenate %373, %237 in 1 : vector<6x32xf32>, vector<6x32xf32> -> vector<6x64xf32>
    %cst_124 = arith.constant dense<0.000000e+00> : vector<6x128xf32>
    %375 = tpu.matmul %374, %10, %cst_124 {dimension_numbers = #tpu.dot_dimension_numbers<[1], [0], [0], [1], [0, 0, 1, 1], [], []>} : vector<6x64xf32>, vector<64x128xf32>, vector<6x128xf32> -> vector<6x128xf32>
    %376 = vector.broadcast %12 : vector<1x128xf32> to vector<6x128xf32>
    %377 = arith.addf %375, %376 : vector<6x128xf32>
    %378 = vector.extract_strided_slice %377 {offsets = [0, 0], sizes = [6, 32], strides = [1, 1]} : vector<6x128xf32> to vector<6x32xf32>
    %379 = arith.negf %378 : vector<6x32xf32>
    %380 = math.exp %379 : vector<6x32xf32>
    %cst_125 = arith.constant 1.000000e+00 : f32
    %381 = vector.broadcast %cst_125 : f32 to vector<6x32xf32>
    %382 = arith.addf %381, %380 : vector<6x32xf32>
    %383 = arith.divf %381, %382 : vector<6x32xf32>
    %384 = vector.extract_strided_slice %377 {offsets = [0, 32], sizes = [6, 32], strides = [1, 1]} : vector<6x128xf32> to vector<6x32xf32>
    %385 = arith.negf %384 : vector<6x32xf32>
    %386 = math.exp %385 : vector<6x32xf32>
    %cst_126 = arith.constant 1.000000e+00 : f32
    %387 = vector.broadcast %cst_126 : f32 to vector<6x32xf32>
    %388 = arith.addf %387, %386 : vector<6x32xf32>
    %389 = arith.divf %387, %388 : vector<6x32xf32>
    %390 = vector.extract_strided_slice %377 {offsets = [0, 64], sizes = [6, 32], strides = [1, 1]} : vector<6x128xf32> to vector<6x32xf32>
    %391 = math.tanh %390 : vector<6x32xf32>
    %392 = vector.extract_strided_slice %377 {offsets = [0, 96], sizes = [6, 32], strides = [1, 1]} : vector<6x128xf32> to vector<6x32xf32>
    %393 = arith.negf %392 : vector<6x32xf32>
    %394 = math.exp %393 : vector<6x32xf32>
    %cst_127 = arith.constant 1.000000e+00 : f32
    %395 = vector.broadcast %cst_127 : f32 to vector<6x32xf32>
    %396 = arith.addf %395, %394 : vector<6x32xf32>
    %397 = arith.divf %395, %396 : vector<6x32xf32>
    %398 = arith.mulf %389, %235 : vector<6x32xf32>
    %399 = arith.mulf %383, %391 : vector<6x32xf32>
    %400 = arith.addf %398, %399 : vector<6x32xf32>
    %401 = math.tanh %400 : vector<6x32xf32>
    %402 = arith.mulf %397, %401 : vector<6x32xf32>
    %cst_128 = arith.constant dense<0.000000e+00> : vector<6x2xf32>
    %403 = tpu.matmul %402, %15, %cst_128 {dimension_numbers = #tpu.dot_dimension_numbers<[1], [0], [0], [1], [0, 0, 1, 1], [], []>} : vector<6x32xf32>, vector<32x2xf32>, vector<6x2xf32> -> vector<6x2xf32>
    %404 = vector.broadcast %16 : vector<1x2xf32> to vector<6x2xf32>
    %405 = arith.addf %403, %404 : vector<6x2xf32>
    %406 = tpu.concatenate %367, %405 in 1 : vector<6x2xf32>, vector<6x2xf32> -> vector<6x4xf32>
    %cst_129 = arith.constant dense<0.000000e+00> : vector<6x16xf32>
    %407 = tpu.matmul %406, %27, %cst_129 {dimension_numbers = #tpu.dot_dimension_numbers<[1], [0], [0], [1], [0, 0, 1, 1], [], []>} : vector<6x4xf32>, vector<4x16xf32>, vector<6x16xf32> -> vector<6x16xf32>
    %408 = vector.broadcast %29 : vector<1x16xf32> to vector<6x16xf32>
    %409 = arith.addf %407, %408 : vector<6x16xf32>
    %cst_130 = arith.constant dense<0.000000e+00> : vector<6x16xf32>
    %410 = tpu.matmul %406, %28, %cst_130 {dimension_numbers = #tpu.dot_dimension_numbers<[1], [0], [0], [1], [0, 0, 1, 1], [], []>} : vector<6x4xf32>, vector<4x16xf32>, vector<6x16xf32> -> vector<6x16xf32>
    %cst_131 = arith.constant dense<0.000000e+00> : vector<18x16xf32>
    %411 = tpu.matmul %33, %409, %cst_131 {dimension_numbers = #tpu.dot_dimension_numbers<[1], [0], [0], [1], [0, 0, 1, 1], [], []>} : vector<18x6xf32>, vector<6x16xf32>, vector<18x16xf32> -> vector<18x16xf32>
    %cst_132 = arith.constant dense<0.000000e+00> : vector<18x16xf32>
    %412 = tpu.matmul %34, %410, %cst_132 {dimension_numbers = #tpu.dot_dimension_numbers<[1], [0], [0], [1], [0, 0, 1, 1], [], []>} : vector<18x6xf32>, vector<6x16xf32>, vector<18x16xf32> -> vector<18x16xf32>
    %413 = arith.addf %411, %412 : vector<18x16xf32>
    %cst_133 = arith.constant 0.000000e+00 : f32
    %414 = vector.broadcast %cst_133 : f32 to vector<18x16xf32>
    %415 = arith.cmpf ogt, %413, %414 : vector<18x16xf32>
    %cst_134 = arith.constant 0.000000e+00 : f32
    %416 = vector.broadcast %cst_134 : f32 to vector<18x16xf32>
    %417 = arith.minimumf %413, %416 : vector<18x16xf32>
    %418 = math.exp %417 : vector<18x16xf32>
    %cst_135 = arith.constant 1.000000e+00 : f32
    %419 = vector.broadcast %cst_135 : f32 to vector<18x16xf32>
    %420 = arith.subf %418, %419 : vector<18x16xf32>
    %421 = arith.select %415, %413, %420 : vector<18x16xi1>, vector<18x16xf32>
    %cst_136 = arith.constant dense<0.000000e+00> : vector<18x64xf32>
    %422 = tpu.matmul %421, %31, %cst_136 {dimension_numbers = #tpu.dot_dimension_numbers<[1], [0], [0], [1], [0, 0, 1, 1], [], []>} : vector<18x16xf32>, vector<16x64xf32>, vector<18x64xf32> -> vector<18x64xf32>
    %423 = vector.broadcast %32 : vector<1x64xf32> to vector<18x64xf32>
    %424 = arith.addf %422, %423 : vector<18x64xf32>
    %425 = arith.negf %424 : vector<18x64xf32>
    %426 = math.exp %425 : vector<18x64xf32>
    %cst_137 = arith.constant 1.000000e+00 : f32
    %427 = vector.broadcast %cst_137 : f32 to vector<18x64xf32>
    %428 = arith.addf %427, %426 : vector<18x64xf32>
    %429 = arith.divf %427, %428 : vector<18x64xf32>
    %cst_138 = arith.constant dense<0.000000e+00> : vector<18x256xf32>
    %430 = tpu.matmul %429, %24, %cst_138 {dimension_numbers = #tpu.dot_dimension_numbers<[1], [0], [0], [1], [0, 0, 1, 1], [], []>} : vector<18x64xf32>, vector<64x256xf32>, vector<18x256xf32> -> vector<18x256xf32>
    %cst_139 = arith.constant dense<0.000000e+00> : vector<6x256xf32>
    %431 = tpu.matmul %363, %21, %cst_139 {dimension_numbers = #tpu.dot_dimension_numbers<[1], [0], [0], [1], [0, 0, 1, 1], [], []>} : vector<6x32xf32>, vector<32x256xf32>, vector<6x256xf32> -> vector<6x256xf32>
    %cst_140 = arith.constant dense<0.000000e+00> : vector<6x256xf32>
    %432 = tpu.matmul %363, %22, %cst_140 {dimension_numbers = #tpu.dot_dimension_numbers<[1], [0], [0], [1], [0, 0, 1, 1], [], []>} : vector<6x32xf32>, vector<32x256xf32>, vector<6x256xf32> -> vector<6x256xf32>
    %cst_141 = arith.constant dense<0.000000e+00> : vector<6x256xf32>
    %433 = tpu.matmul %402, %22, %cst_141 {dimension_numbers = #tpu.dot_dimension_numbers<[1], [0], [0], [1], [0, 0, 1, 1], [], []>} : vector<6x32xf32>, vector<32x256xf32>, vector<6x256xf32> -> vector<6x256xf32>
    %434 = arith.addf %431, %432 : vector<6x256xf32>
    %435 = vector.broadcast %23 : vector<1x256xf32> to vector<6x256xf32>
    %436 = arith.addf %434, %435 : vector<6x256xf32>
    %437 = math.tanh %436 : vector<6x256xf32>
    %cst_142 = arith.constant dense<0.000000e+00> : vector<6x4xf32>
    %438 = tpu.matmul %437, %25, %cst_142 {dimension_numbers = #tpu.dot_dimension_numbers<[1], [0], [0], [1], [0, 0, 1, 1], [], []>} : vector<6x256xf32>, vector<256x4xf32>, vector<6x4xf32> -> vector<6x4xf32>
    %cst_143 = arith.constant dense<0.000000e+00> : vector<18x256xf32>
    %439 = tpu.matmul %33, %431, %cst_143 {dimension_numbers = #tpu.dot_dimension_numbers<[1], [0], [0], [1], [0, 0, 1, 1], [], []>} : vector<18x6xf32>, vector<6x256xf32>, vector<18x256xf32> -> vector<18x256xf32>
    %cst_144 = arith.constant dense<0.000000e+00> : vector<18x256xf32>
    %440 = tpu.matmul %34, %432, %cst_144 {dimension_numbers = #tpu.dot_dimension_numbers<[1], [0], [0], [1], [0, 0, 1, 1], [], []>} : vector<18x6xf32>, vector<6x256xf32>, vector<18x256xf32> -> vector<18x256xf32>
    %441 = arith.addf %439, %440 : vector<18x256xf32>
    %442 = arith.subf %433, %432 : vector<6x256xf32>
    %cst_145 = arith.constant dense<0.000000e+00> : vector<18x256xf32>
    %443 = tpu.matmul %35, %442, %cst_145 {dimension_numbers = #tpu.dot_dimension_numbers<[1], [0], [0], [1], [0, 0, 1, 1], [], []>} : vector<18x6xf32>, vector<6x256xf32>, vector<18x256xf32> -> vector<18x256xf32>
    %444 = arith.addf %441, %443 : vector<18x256xf32>
    %445 = vector.broadcast %23 : vector<1x256xf32> to vector<18x256xf32>
    %446 = arith.addf %444, %445 : vector<18x256xf32>
    %447 = math.tanh %446 : vector<18x256xf32>
    %448 = arith.mulf %430, %447 : vector<18x256xf32>
    %cst_146 = arith.constant dense<0.000000e+00> : vector<18x4xf32>
    %449 = tpu.matmul %448, %25, %cst_146 {dimension_numbers = #tpu.dot_dimension_numbers<[1], [0], [0], [1], [0, 0, 1, 1], [], []>} : vector<18x256xf32>, vector<256x4xf32>, vector<18x4xf32> -> vector<18x4xf32>
    %cst_147 = arith.constant 0.000000e+00 : f32
    %450 = vector.broadcast %cst_147 : f32 to vector<6x4xf32>
    %451 = arith.cmpf ogt, %438, %450 : vector<6x4xf32>
    %cst_148 = arith.constant 2.000000e-01 : f32
    %452 = vector.broadcast %cst_148 : f32 to vector<6x4xf32>
    %453 = arith.mulf %452, %438 : vector<6x4xf32>
    %454 = arith.select %451, %438, %453 : vector<6x4xi1>, vector<6x4xf32>
    %cst_149 = arith.constant 0.000000e+00 : f32
    %455 = vector.broadcast %cst_149 : f32 to vector<18x4xf32>
    %456 = arith.cmpf ogt, %449, %455 : vector<18x4xf32>
    %cst_150 = arith.constant 2.000000e-01 : f32
    %457 = vector.broadcast %cst_150 : f32 to vector<18x4xf32>
    %458 = arith.mulf %457, %449 : vector<18x4xf32>
    %459 = arith.select %456, %449, %458 : vector<18x4xi1>, vector<18x4xf32>
    %cst_151 = arith.constant dense<0xFF800000> : vector<4xf32>
    %460 = vector.multi_reduction <maximumf>, %454, %cst_151 [0] : vector<6x4xf32> to vector<4xf32>
    %461 = vector.shape_cast %460 : vector<4xf32> to vector<1x4xf32>
    %cst_152 = arith.constant dense<0xFF800000> : vector<4xf32>
    %462 = vector.multi_reduction <maximumf>, %459, %cst_152 [0] : vector<18x4xf32> to vector<4xf32>
    %463 = vector.shape_cast %462 : vector<4xf32> to vector<1x4xf32>
    %464 = arith.maximumf %461, %463 : vector<1x4xf32>
    %cst_153 = arith.constant dense<0xFF800000> : vector<1xf32>
    %465 = vector.multi_reduction <maximumf>, %464, %cst_153 [1] : vector<1x4xf32> to vector<1xf32>
    %466 = vector.shape_cast %465 : vector<1xf32> to vector<1x1xf32>
    %467 = vector.broadcast %466 : vector<1x1xf32> to vector<6x4xf32>
    %468 = arith.subf %454, %467 : vector<6x4xf32>
    %469 = math.exp %468 : vector<6x4xf32>
    %470 = vector.broadcast %466 : vector<1x1xf32> to vector<18x4xf32>
    %471 = arith.subf %459, %470 : vector<18x4xf32>
    %472 = math.exp %471 : vector<18x4xf32>
    %cst_154 = arith.constant dense<0.000000e+00> : vector<6x4xf32>
    %473 = tpu.matmul %36, %472, %cst_154 {dimension_numbers = #tpu.dot_dimension_numbers<[1], [0], [0], [1], [0, 0, 1, 1], [], []>} : vector<6x18xf32>, vector<18x4xf32>, vector<6x4xf32> -> vector<6x4xf32>
    %474 = arith.addf %469, %473 : vector<6x4xf32>
    %cst_155 = arith.constant 1.000000e+00 : f32
    %475 = vector.broadcast %cst_155 : f32 to vector<6x4xf32>
    %476 = arith.divf %475, %474 : vector<6x4xf32>
    %477 = arith.mulf %469, %476 : vector<6x4xf32>
    %cst_156 = arith.constant dense<0.000000e+00> : vector<6xf32>
    %478 = vector.multi_reduction <add>, %477, %cst_156 [1] : vector<6x4xf32> to vector<6xf32>
    %479 = vector.shape_cast %478 : vector<6xf32> to vector<6x1xf32>
    %cst_157 = arith.constant dense<0.000000e+00> : vector<18x4xf32>
    %480 = tpu.matmul %33, %476, %cst_157 {dimension_numbers = #tpu.dot_dimension_numbers<[1], [0], [0], [1], [0, 0, 1, 1], [], []>} : vector<18x6xf32>, vector<6x4xf32>, vector<18x4xf32> -> vector<18x4xf32>
    %481 = arith.mulf %472, %480 : vector<18x4xf32>
    %cst_158 = arith.constant dense<0.000000e+00> : vector<18xf32>
    %482 = vector.multi_reduction <add>, %481, %cst_158 [1] : vector<18x4xf32> to vector<18xf32>
    %483 = vector.shape_cast %482 : vector<18xf32> to vector<18x1xf32>
    %cst_159 = arith.constant dense<0.000000e+00> : vector<18x32xf32>
    %484 = tpu.matmul %34, %363, %cst_159 {dimension_numbers = #tpu.dot_dimension_numbers<[1], [0], [0], [1], [0, 0, 1, 1], [], []>} : vector<18x6xf32>, vector<6x32xf32>, vector<18x32xf32> -> vector<18x32xf32>
    %485 = arith.subf %402, %363 : vector<6x32xf32>
    %cst_160 = arith.constant dense<0.000000e+00> : vector<18x32xf32>
    %486 = tpu.matmul %35, %485, %cst_160 {dimension_numbers = #tpu.dot_dimension_numbers<[1], [0], [0], [1], [0, 0, 1, 1], [], []>} : vector<18x6xf32>, vector<6x32xf32>, vector<18x32xf32> -> vector<18x32xf32>
    %487 = arith.addf %484, %486 : vector<18x32xf32>
    %488 = vector.broadcast %479 : vector<6x1xf32> to vector<6x32xf32>
    %489 = arith.mulf %488, %363 : vector<6x32xf32>
    %490 = vector.broadcast %483 : vector<18x1xf32> to vector<18x32xf32>
    %491 = arith.mulf %490, %487 : vector<18x32xf32>
    %cst_161 = arith.constant dense<0.000000e+00> : vector<6x32xf32>
    %492 = tpu.matmul %36, %491, %cst_161 {dimension_numbers = #tpu.dot_dimension_numbers<[1], [0], [0], [1], [0, 0, 1, 1], [], []>} : vector<6x18xf32>, vector<18x32xf32>, vector<6x32xf32> -> vector<6x32xf32>
    %493 = arith.addf %489, %492 : vector<6x32xf32>
    %cst_162 = arith.constant 2.500000e-01 : f32
    %494 = vector.broadcast %cst_162 : f32 to vector<6x32xf32>
    %495 = arith.mulf %493, %494 : vector<6x32xf32>
    %cst_163 = arith.constant 0.000000e+00 : f32
    %496 = vector.broadcast %cst_163 : f32 to vector<6x32xf32>
    %497 = arith.maximumf %495, %496 : vector<6x32xf32>
    %498 = vector.broadcast %8 : vector<1x32xf32> to vector<6x32xf32>
    %499 = arith.addf %497, %498 : vector<6x32xf32>
    %500 = tpu.concatenate %373, %499 in 1 : vector<6x32xf32>, vector<6x32xf32> -> vector<6x64xf32>
    %cst_164 = arith.constant dense<0.000000e+00> : vector<6x128xf32>
    %501 = tpu.matmul %500, %11, %cst_164 {dimension_numbers = #tpu.dot_dimension_numbers<[1], [0], [0], [1], [0, 0, 1, 1], [], []>} : vector<6x64xf32>, vector<64x128xf32>, vector<6x128xf32> -> vector<6x128xf32>
    %502 = vector.broadcast %13 : vector<1x128xf32> to vector<6x128xf32>
    %503 = arith.addf %501, %502 : vector<6x128xf32>
    %504 = vector.extract_strided_slice %503 {offsets = [0, 0], sizes = [6, 32], strides = [1, 1]} : vector<6x128xf32> to vector<6x32xf32>
    %505 = arith.negf %504 : vector<6x32xf32>
    %506 = math.exp %505 : vector<6x32xf32>
    %cst_165 = arith.constant 1.000000e+00 : f32
    %507 = vector.broadcast %cst_165 : f32 to vector<6x32xf32>
    %508 = arith.addf %507, %506 : vector<6x32xf32>
    %509 = arith.divf %507, %508 : vector<6x32xf32>
    %510 = vector.extract_strided_slice %503 {offsets = [0, 32], sizes = [6, 32], strides = [1, 1]} : vector<6x128xf32> to vector<6x32xf32>
    %511 = arith.negf %510 : vector<6x32xf32>
    %512 = math.exp %511 : vector<6x32xf32>
    %cst_166 = arith.constant 1.000000e+00 : f32
    %513 = vector.broadcast %cst_166 : f32 to vector<6x32xf32>
    %514 = arith.addf %513, %512 : vector<6x32xf32>
    %515 = arith.divf %513, %514 : vector<6x32xf32>
    %516 = vector.extract_strided_slice %503 {offsets = [0, 64], sizes = [6, 32], strides = [1, 1]} : vector<6x128xf32> to vector<6x32xf32>
    %517 = math.tanh %516 : vector<6x32xf32>
    %518 = vector.extract_strided_slice %503 {offsets = [0, 96], sizes = [6, 32], strides = [1, 1]} : vector<6x128xf32> to vector<6x32xf32>
    %519 = arith.negf %518 : vector<6x32xf32>
    %520 = math.exp %519 : vector<6x32xf32>
    %cst_167 = arith.constant 1.000000e+00 : f32
    %521 = vector.broadcast %cst_167 : f32 to vector<6x32xf32>
    %522 = arith.addf %521, %520 : vector<6x32xf32>
    %523 = arith.divf %521, %522 : vector<6x32xf32>
    %524 = arith.mulf %515, %361 : vector<6x32xf32>
    %525 = arith.mulf %509, %517 : vector<6x32xf32>
    %526 = arith.addf %524, %525 : vector<6x32xf32>
    %527 = math.tanh %526 : vector<6x32xf32>
    %528 = arith.mulf %523, %527 : vector<6x32xf32>
    %cst_168 = arith.constant dense<0.000000e+00> : vector<6x2xf32>
    %529 = tpu.matmul %528, %18, %cst_168 {dimension_numbers = #tpu.dot_dimension_numbers<[1], [0], [0], [1], [0, 0, 1, 1], [], []>} : vector<6x32xf32>, vector<32x2xf32>, vector<6x2xf32> -> vector<6x2xf32>
    %530 = vector.broadcast %19 : vector<1x2xf32> to vector<6x2xf32>
    %531 = arith.addf %529, %530 : vector<6x2xf32>
    %532 = arith.addf %367, %531 : vector<6x2xf32>
    %533 = tpu.concatenate %532, %531 in 1 : vector<6x2xf32>, vector<6x2xf32> -> vector<6x4xf32>
    %cst_169 = arith.constant dense<0.000000e+00> : vector<6x32xf32>
    %534 = tpu.matmul %533, %6, %cst_169 {dimension_numbers = #tpu.dot_dimension_numbers<[1], [0], [0], [1], [0, 0, 1, 1], [], []>} : vector<6x4xf32>, vector<4x32xf32>, vector<6x32xf32> -> vector<6x32xf32>
    %535 = vector.broadcast %7 : vector<1x32xf32> to vector<6x32xf32>
    %536 = arith.addf %534, %535 : vector<6x32xf32>
    %cst_170 = arith.constant 0.000000e+00 : f32
    %537 = vector.broadcast %cst_170 : f32 to vector<6x32xf32>
    %538 = arith.maximumf %536, %537 : vector<6x32xf32>
    %539 = tpu.concatenate %538, %402 in 1 : vector<6x32xf32>, vector<6x32xf32> -> vector<6x64xf32>
    %cst_171 = arith.constant dense<0.000000e+00> : vector<6x128xf32>
    %540 = tpu.matmul %539, %10, %cst_171 {dimension_numbers = #tpu.dot_dimension_numbers<[1], [0], [0], [1], [0, 0, 1, 1], [], []>} : vector<6x64xf32>, vector<64x128xf32>, vector<6x128xf32> -> vector<6x128xf32>
    %541 = vector.broadcast %12 : vector<1x128xf32> to vector<6x128xf32>
    %542 = arith.addf %540, %541 : vector<6x128xf32>
    %543 = vector.extract_strided_slice %542 {offsets = [0, 0], sizes = [6, 32], strides = [1, 1]} : vector<6x128xf32> to vector<6x32xf32>
    %544 = arith.negf %543 : vector<6x32xf32>
    %545 = math.exp %544 : vector<6x32xf32>
    %cst_172 = arith.constant 1.000000e+00 : f32
    %546 = vector.broadcast %cst_172 : f32 to vector<6x32xf32>
    %547 = arith.addf %546, %545 : vector<6x32xf32>
    %548 = arith.divf %546, %547 : vector<6x32xf32>
    %549 = vector.extract_strided_slice %542 {offsets = [0, 32], sizes = [6, 32], strides = [1, 1]} : vector<6x128xf32> to vector<6x32xf32>
    %550 = arith.negf %549 : vector<6x32xf32>
    %551 = math.exp %550 : vector<6x32xf32>
    %cst_173 = arith.constant 1.000000e+00 : f32
    %552 = vector.broadcast %cst_173 : f32 to vector<6x32xf32>
    %553 = arith.addf %552, %551 : vector<6x32xf32>
    %554 = arith.divf %552, %553 : vector<6x32xf32>
    %555 = vector.extract_strided_slice %542 {offsets = [0, 64], sizes = [6, 32], strides = [1, 1]} : vector<6x128xf32> to vector<6x32xf32>
    %556 = math.tanh %555 : vector<6x32xf32>
    %557 = vector.extract_strided_slice %542 {offsets = [0, 96], sizes = [6, 32], strides = [1, 1]} : vector<6x128xf32> to vector<6x32xf32>
    %558 = arith.negf %557 : vector<6x32xf32>
    %559 = math.exp %558 : vector<6x32xf32>
    %cst_174 = arith.constant 1.000000e+00 : f32
    %560 = vector.broadcast %cst_174 : f32 to vector<6x32xf32>
    %561 = arith.addf %560, %559 : vector<6x32xf32>
    %562 = arith.divf %560, %561 : vector<6x32xf32>
    %563 = arith.mulf %554, %400 : vector<6x32xf32>
    %564 = arith.mulf %548, %556 : vector<6x32xf32>
    %565 = arith.addf %563, %564 : vector<6x32xf32>
    %566 = math.tanh %565 : vector<6x32xf32>
    %567 = arith.mulf %562, %566 : vector<6x32xf32>
    %cst_175 = arith.constant dense<0.000000e+00> : vector<6x2xf32>
    %568 = tpu.matmul %567, %15, %cst_175 {dimension_numbers = #tpu.dot_dimension_numbers<[1], [0], [0], [1], [0, 0, 1, 1], [], []>} : vector<6x32xf32>, vector<32x2xf32>, vector<6x2xf32> -> vector<6x2xf32>
    %569 = vector.broadcast %16 : vector<1x2xf32> to vector<6x2xf32>
    %570 = arith.addf %568, %569 : vector<6x2xf32>
    %571 = tpu.concatenate %532, %570 in 1 : vector<6x2xf32>, vector<6x2xf32> -> vector<6x4xf32>
    %cst_176 = arith.constant dense<0.000000e+00> : vector<6x16xf32>
    %572 = tpu.matmul %571, %27, %cst_176 {dimension_numbers = #tpu.dot_dimension_numbers<[1], [0], [0], [1], [0, 0, 1, 1], [], []>} : vector<6x4xf32>, vector<4x16xf32>, vector<6x16xf32> -> vector<6x16xf32>
    %573 = vector.broadcast %29 : vector<1x16xf32> to vector<6x16xf32>
    %574 = arith.addf %572, %573 : vector<6x16xf32>
    %cst_177 = arith.constant dense<0.000000e+00> : vector<6x16xf32>
    %575 = tpu.matmul %571, %28, %cst_177 {dimension_numbers = #tpu.dot_dimension_numbers<[1], [0], [0], [1], [0, 0, 1, 1], [], []>} : vector<6x4xf32>, vector<4x16xf32>, vector<6x16xf32> -> vector<6x16xf32>
    %cst_178 = arith.constant dense<0.000000e+00> : vector<18x16xf32>
    %576 = tpu.matmul %33, %574, %cst_178 {dimension_numbers = #tpu.dot_dimension_numbers<[1], [0], [0], [1], [0, 0, 1, 1], [], []>} : vector<18x6xf32>, vector<6x16xf32>, vector<18x16xf32> -> vector<18x16xf32>
    %cst_179 = arith.constant dense<0.000000e+00> : vector<18x16xf32>
    %577 = tpu.matmul %34, %575, %cst_179 {dimension_numbers = #tpu.dot_dimension_numbers<[1], [0], [0], [1], [0, 0, 1, 1], [], []>} : vector<18x6xf32>, vector<6x16xf32>, vector<18x16xf32> -> vector<18x16xf32>
    %578 = arith.addf %576, %577 : vector<18x16xf32>
    %cst_180 = arith.constant 0.000000e+00 : f32
    %579 = vector.broadcast %cst_180 : f32 to vector<18x16xf32>
    %580 = arith.cmpf ogt, %578, %579 : vector<18x16xf32>
    %cst_181 = arith.constant 0.000000e+00 : f32
    %581 = vector.broadcast %cst_181 : f32 to vector<18x16xf32>
    %582 = arith.minimumf %578, %581 : vector<18x16xf32>
    %583 = math.exp %582 : vector<18x16xf32>
    %cst_182 = arith.constant 1.000000e+00 : f32
    %584 = vector.broadcast %cst_182 : f32 to vector<18x16xf32>
    %585 = arith.subf %583, %584 : vector<18x16xf32>
    %586 = arith.select %580, %578, %585 : vector<18x16xi1>, vector<18x16xf32>
    %cst_183 = arith.constant dense<0.000000e+00> : vector<18x64xf32>
    %587 = tpu.matmul %586, %31, %cst_183 {dimension_numbers = #tpu.dot_dimension_numbers<[1], [0], [0], [1], [0, 0, 1, 1], [], []>} : vector<18x16xf32>, vector<16x64xf32>, vector<18x64xf32> -> vector<18x64xf32>
    %588 = vector.broadcast %32 : vector<1x64xf32> to vector<18x64xf32>
    %589 = arith.addf %587, %588 : vector<18x64xf32>
    %590 = arith.negf %589 : vector<18x64xf32>
    %591 = math.exp %590 : vector<18x64xf32>
    %cst_184 = arith.constant 1.000000e+00 : f32
    %592 = vector.broadcast %cst_184 : f32 to vector<18x64xf32>
    %593 = arith.addf %592, %591 : vector<18x64xf32>
    %594 = arith.divf %592, %593 : vector<18x64xf32>
    %cst_185 = arith.constant dense<0.000000e+00> : vector<18x256xf32>
    %595 = tpu.matmul %594, %24, %cst_185 {dimension_numbers = #tpu.dot_dimension_numbers<[1], [0], [0], [1], [0, 0, 1, 1], [], []>} : vector<18x64xf32>, vector<64x256xf32>, vector<18x256xf32> -> vector<18x256xf32>
    %cst_186 = arith.constant dense<0.000000e+00> : vector<6x256xf32>
    %596 = tpu.matmul %528, %21, %cst_186 {dimension_numbers = #tpu.dot_dimension_numbers<[1], [0], [0], [1], [0, 0, 1, 1], [], []>} : vector<6x32xf32>, vector<32x256xf32>, vector<6x256xf32> -> vector<6x256xf32>
    %cst_187 = arith.constant dense<0.000000e+00> : vector<6x256xf32>
    %597 = tpu.matmul %528, %22, %cst_187 {dimension_numbers = #tpu.dot_dimension_numbers<[1], [0], [0], [1], [0, 0, 1, 1], [], []>} : vector<6x32xf32>, vector<32x256xf32>, vector<6x256xf32> -> vector<6x256xf32>
    %cst_188 = arith.constant dense<0.000000e+00> : vector<6x256xf32>
    %598 = tpu.matmul %567, %22, %cst_188 {dimension_numbers = #tpu.dot_dimension_numbers<[1], [0], [0], [1], [0, 0, 1, 1], [], []>} : vector<6x32xf32>, vector<32x256xf32>, vector<6x256xf32> -> vector<6x256xf32>
    %599 = arith.addf %596, %597 : vector<6x256xf32>
    %600 = vector.broadcast %23 : vector<1x256xf32> to vector<6x256xf32>
    %601 = arith.addf %599, %600 : vector<6x256xf32>
    %602 = math.tanh %601 : vector<6x256xf32>
    %cst_189 = arith.constant dense<0.000000e+00> : vector<6x4xf32>
    %603 = tpu.matmul %602, %25, %cst_189 {dimension_numbers = #tpu.dot_dimension_numbers<[1], [0], [0], [1], [0, 0, 1, 1], [], []>} : vector<6x256xf32>, vector<256x4xf32>, vector<6x4xf32> -> vector<6x4xf32>
    %cst_190 = arith.constant dense<0.000000e+00> : vector<18x256xf32>
    %604 = tpu.matmul %33, %596, %cst_190 {dimension_numbers = #tpu.dot_dimension_numbers<[1], [0], [0], [1], [0, 0, 1, 1], [], []>} : vector<18x6xf32>, vector<6x256xf32>, vector<18x256xf32> -> vector<18x256xf32>
    %cst_191 = arith.constant dense<0.000000e+00> : vector<18x256xf32>
    %605 = tpu.matmul %34, %597, %cst_191 {dimension_numbers = #tpu.dot_dimension_numbers<[1], [0], [0], [1], [0, 0, 1, 1], [], []>} : vector<18x6xf32>, vector<6x256xf32>, vector<18x256xf32> -> vector<18x256xf32>
    %606 = arith.addf %604, %605 : vector<18x256xf32>
    %607 = arith.subf %598, %597 : vector<6x256xf32>
    %cst_192 = arith.constant dense<0.000000e+00> : vector<18x256xf32>
    %608 = tpu.matmul %35, %607, %cst_192 {dimension_numbers = #tpu.dot_dimension_numbers<[1], [0], [0], [1], [0, 0, 1, 1], [], []>} : vector<18x6xf32>, vector<6x256xf32>, vector<18x256xf32> -> vector<18x256xf32>
    %609 = arith.addf %606, %608 : vector<18x256xf32>
    %610 = vector.broadcast %23 : vector<1x256xf32> to vector<18x256xf32>
    %611 = arith.addf %609, %610 : vector<18x256xf32>
    %612 = math.tanh %611 : vector<18x256xf32>
    %613 = arith.mulf %595, %612 : vector<18x256xf32>
    %cst_193 = arith.constant dense<0.000000e+00> : vector<18x4xf32>
    %614 = tpu.matmul %613, %25, %cst_193 {dimension_numbers = #tpu.dot_dimension_numbers<[1], [0], [0], [1], [0, 0, 1, 1], [], []>} : vector<18x256xf32>, vector<256x4xf32>, vector<18x4xf32> -> vector<18x4xf32>
    %cst_194 = arith.constant 0.000000e+00 : f32
    %615 = vector.broadcast %cst_194 : f32 to vector<6x4xf32>
    %616 = arith.cmpf ogt, %603, %615 : vector<6x4xf32>
    %cst_195 = arith.constant 2.000000e-01 : f32
    %617 = vector.broadcast %cst_195 : f32 to vector<6x4xf32>
    %618 = arith.mulf %617, %603 : vector<6x4xf32>
    %619 = arith.select %616, %603, %618 : vector<6x4xi1>, vector<6x4xf32>
    %cst_196 = arith.constant 0.000000e+00 : f32
    %620 = vector.broadcast %cst_196 : f32 to vector<18x4xf32>
    %621 = arith.cmpf ogt, %614, %620 : vector<18x4xf32>
    %cst_197 = arith.constant 2.000000e-01 : f32
    %622 = vector.broadcast %cst_197 : f32 to vector<18x4xf32>
    %623 = arith.mulf %622, %614 : vector<18x4xf32>
    %624 = arith.select %621, %614, %623 : vector<18x4xi1>, vector<18x4xf32>
    %cst_198 = arith.constant dense<0xFF800000> : vector<4xf32>
    %625 = vector.multi_reduction <maximumf>, %619, %cst_198 [0] : vector<6x4xf32> to vector<4xf32>
    %626 = vector.shape_cast %625 : vector<4xf32> to vector<1x4xf32>
    %cst_199 = arith.constant dense<0xFF800000> : vector<4xf32>
    %627 = vector.multi_reduction <maximumf>, %624, %cst_199 [0] : vector<18x4xf32> to vector<4xf32>
    %628 = vector.shape_cast %627 : vector<4xf32> to vector<1x4xf32>
    %629 = arith.maximumf %626, %628 : vector<1x4xf32>
    %cst_200 = arith.constant dense<0xFF800000> : vector<1xf32>
    %630 = vector.multi_reduction <maximumf>, %629, %cst_200 [1] : vector<1x4xf32> to vector<1xf32>
    %631 = vector.shape_cast %630 : vector<1xf32> to vector<1x1xf32>
    %632 = vector.broadcast %631 : vector<1x1xf32> to vector<6x4xf32>
    %633 = arith.subf %619, %632 : vector<6x4xf32>
    %634 = math.exp %633 : vector<6x4xf32>
    %635 = vector.broadcast %631 : vector<1x1xf32> to vector<18x4xf32>
    %636 = arith.subf %624, %635 : vector<18x4xf32>
    %637 = math.exp %636 : vector<18x4xf32>
    %cst_201 = arith.constant dense<0.000000e+00> : vector<6x4xf32>
    %638 = tpu.matmul %36, %637, %cst_201 {dimension_numbers = #tpu.dot_dimension_numbers<[1], [0], [0], [1], [0, 0, 1, 1], [], []>} : vector<6x18xf32>, vector<18x4xf32>, vector<6x4xf32> -> vector<6x4xf32>
    %639 = arith.addf %634, %638 : vector<6x4xf32>
    %cst_202 = arith.constant 1.000000e+00 : f32
    %640 = vector.broadcast %cst_202 : f32 to vector<6x4xf32>
    %641 = arith.divf %640, %639 : vector<6x4xf32>
    %642 = arith.mulf %634, %641 : vector<6x4xf32>
    %cst_203 = arith.constant dense<0.000000e+00> : vector<6xf32>
    %643 = vector.multi_reduction <add>, %642, %cst_203 [1] : vector<6x4xf32> to vector<6xf32>
    %644 = vector.shape_cast %643 : vector<6xf32> to vector<6x1xf32>
    %cst_204 = arith.constant dense<0.000000e+00> : vector<18x4xf32>
    %645 = tpu.matmul %33, %641, %cst_204 {dimension_numbers = #tpu.dot_dimension_numbers<[1], [0], [0], [1], [0, 0, 1, 1], [], []>} : vector<18x6xf32>, vector<6x4xf32>, vector<18x4xf32> -> vector<18x4xf32>
    %646 = arith.mulf %637, %645 : vector<18x4xf32>
    %cst_205 = arith.constant dense<0.000000e+00> : vector<18xf32>
    %647 = vector.multi_reduction <add>, %646, %cst_205 [1] : vector<18x4xf32> to vector<18xf32>
    %648 = vector.shape_cast %647 : vector<18xf32> to vector<18x1xf32>
    %cst_206 = arith.constant dense<0.000000e+00> : vector<18x32xf32>
    %649 = tpu.matmul %34, %528, %cst_206 {dimension_numbers = #tpu.dot_dimension_numbers<[1], [0], [0], [1], [0, 0, 1, 1], [], []>} : vector<18x6xf32>, vector<6x32xf32>, vector<18x32xf32> -> vector<18x32xf32>
    %650 = arith.subf %567, %528 : vector<6x32xf32>
    %cst_207 = arith.constant dense<0.000000e+00> : vector<18x32xf32>
    %651 = tpu.matmul %35, %650, %cst_207 {dimension_numbers = #tpu.dot_dimension_numbers<[1], [0], [0], [1], [0, 0, 1, 1], [], []>} : vector<18x6xf32>, vector<6x32xf32>, vector<18x32xf32> -> vector<18x32xf32>
    %652 = arith.addf %649, %651 : vector<18x32xf32>
    %653 = vector.broadcast %644 : vector<6x1xf32> to vector<6x32xf32>
    %654 = arith.mulf %653, %528 : vector<6x32xf32>
    %655 = vector.broadcast %648 : vector<18x1xf32> to vector<18x32xf32>
    %656 = arith.mulf %655, %652 : vector<18x32xf32>
    %cst_208 = arith.constant dense<0.000000e+00> : vector<6x32xf32>
    %657 = tpu.matmul %36, %656, %cst_208 {dimension_numbers = #tpu.dot_dimension_numbers<[1], [0], [0], [1], [0, 0, 1, 1], [], []>} : vector<6x18xf32>, vector<18x32xf32>, vector<6x32xf32> -> vector<6x32xf32>
    %658 = arith.addf %654, %657 : vector<6x32xf32>
    %cst_209 = arith.constant 2.500000e-01 : f32
    %659 = vector.broadcast %cst_209 : f32 to vector<6x32xf32>
    %660 = arith.mulf %658, %659 : vector<6x32xf32>
    %cst_210 = arith.constant 0.000000e+00 : f32
    %661 = vector.broadcast %cst_210 : f32 to vector<6x32xf32>
    %662 = arith.maximumf %660, %661 : vector<6x32xf32>
    %663 = vector.broadcast %8 : vector<1x32xf32> to vector<6x32xf32>
    %664 = arith.addf %662, %663 : vector<6x32xf32>
    %665 = tpu.concatenate %538, %664 in 1 : vector<6x32xf32>, vector<6x32xf32> -> vector<6x64xf32>
    %cst_211 = arith.constant dense<0.000000e+00> : vector<6x128xf32>
    %666 = tpu.matmul %665, %11, %cst_211 {dimension_numbers = #tpu.dot_dimension_numbers<[1], [0], [0], [1], [0, 0, 1, 1], [], []>} : vector<6x64xf32>, vector<64x128xf32>, vector<6x128xf32> -> vector<6x128xf32>
    %667 = vector.broadcast %13 : vector<1x128xf32> to vector<6x128xf32>
    %668 = arith.addf %666, %667 : vector<6x128xf32>
    %669 = vector.extract_strided_slice %668 {offsets = [0, 0], sizes = [6, 32], strides = [1, 1]} : vector<6x128xf32> to vector<6x32xf32>
    %670 = arith.negf %669 : vector<6x32xf32>
    %671 = math.exp %670 : vector<6x32xf32>
    %cst_212 = arith.constant 1.000000e+00 : f32
    %672 = vector.broadcast %cst_212 : f32 to vector<6x32xf32>
    %673 = arith.addf %672, %671 : vector<6x32xf32>
    %674 = arith.divf %672, %673 : vector<6x32xf32>
    %675 = vector.extract_strided_slice %668 {offsets = [0, 32], sizes = [6, 32], strides = [1, 1]} : vector<6x128xf32> to vector<6x32xf32>
    %676 = arith.negf %675 : vector<6x32xf32>
    %677 = math.exp %676 : vector<6x32xf32>
    %cst_213 = arith.constant 1.000000e+00 : f32
    %678 = vector.broadcast %cst_213 : f32 to vector<6x32xf32>
    %679 = arith.addf %678, %677 : vector<6x32xf32>
    %680 = arith.divf %678, %679 : vector<6x32xf32>
    %681 = vector.extract_strided_slice %668 {offsets = [0, 64], sizes = [6, 32], strides = [1, 1]} : vector<6x128xf32> to vector<6x32xf32>
    %682 = math.tanh %681 : vector<6x32xf32>
    %683 = vector.extract_strided_slice %668 {offsets = [0, 96], sizes = [6, 32], strides = [1, 1]} : vector<6x128xf32> to vector<6x32xf32>
    %684 = arith.negf %683 : vector<6x32xf32>
    %685 = math.exp %684 : vector<6x32xf32>
    %cst_214 = arith.constant 1.000000e+00 : f32
    %686 = vector.broadcast %cst_214 : f32 to vector<6x32xf32>
    %687 = arith.addf %686, %685 : vector<6x32xf32>
    %688 = arith.divf %686, %687 : vector<6x32xf32>
    %689 = arith.mulf %680, %526 : vector<6x32xf32>
    %690 = arith.mulf %674, %682 : vector<6x32xf32>
    %691 = arith.addf %689, %690 : vector<6x32xf32>
    %692 = math.tanh %691 : vector<6x32xf32>
    %693 = arith.mulf %688, %692 : vector<6x32xf32>
    %cst_215 = arith.constant dense<0.000000e+00> : vector<6x2xf32>
    %694 = tpu.matmul %693, %18, %cst_215 {dimension_numbers = #tpu.dot_dimension_numbers<[1], [0], [0], [1], [0, 0, 1, 1], [], []>} : vector<6x32xf32>, vector<32x2xf32>, vector<6x2xf32> -> vector<6x2xf32>
    %695 = vector.broadcast %19 : vector<1x2xf32> to vector<6x2xf32>
    %696 = arith.addf %694, %695 : vector<6x2xf32>
    %697 = tpu.concatenate %201, %366, %531, %696 in 1 : vector<6x2xf32>, vector<6x2xf32>, vector<6x2xf32>, vector<6x2xf32> -> vector<6x8xf32>
    %c0_216 = arith.constant 0 : index
    %c0_217 = arith.constant 0 : index
    %698 = vector.load %arg14[%c0_216, %c0_217] : memref<6x8xf32, #tpu.memory_space<vmem>>, vector<6x8xf32>
    tpu.vector_store %arg14[%c0_216, %c0_217], %697 {strides = array<i32>} : memref<6x8xf32, #tpu.memory_space<vmem>>, vector<6x8xf32>,
    return
  }
}

</mosaic_0001>

<bundles_post_ra>
// kernel: tpu_custom_call.1
= control target key start
LH: loop header
LB: loop body
LE: loop exit
PB: predicated region body
PF: predicated region fallthrough
CT: control target
= control target key end

     0   :  { %vm167_vm0 = vcmask 1043456   ;;  %vm163_vm1 = vcmask 31744   ;;  %v13359_v1 = vmov 0.0   ;;  %vm11172_vm2 = vmmov 0   ;;  %s11173_s19 = smov 32   ;;  %s13343_s0 = inlined_call_operand.vmem [shape: f32[6,64], index: 0, kind: input, shape index: {}]   ;;  %s13344_s1 = inlined_call_operand.vmem [shape: f32[6,4], index: 1, kind: input, shape index: {}]   ;;  %s13345_s2 = inlined_call_operand.vmem [shape: f32[130,128], index: 2, kind: input, shape index: {}]   ;;  %s13346_s3 = inlined_call_operand.vmem [shape: f32[6,32], index: 3, kind: input, shape index: {}]   ;;  %s13347_s4 = inlined_call_operand.vmem [shape: f32[33,2], index: 4, kind: input, shape index: {}]   ;;  %s13348_s5 = inlined_call_operand.vmem [shape: f32[33,2], index: 5, kind: input, shape index: {}]   ;;  %s13349_s6 = inlined_call_operand.vmem [shape: f32[136,256], index: 6, kind: input, shape index: {}]   ;;  %s13350_s7 = inlined_call_operand.vmem [shape: f32[256,4], index: 7, kind: input, shape index: {}]   ;;  %s13351_s8 = inlined_call_operand.vmem [shape: f32[9,16], index: 8, kind: input, shape index: {}]   ;;  %s13352_s9 = inlined_call_operand.vmem [shape: f32[17,64], index: 9, kind: input, shape index: {}]   ;;  %s13353_s10 = inlined_call_operand.vmem [shape: f32[18,6], index: 10, kind: input, shape index: {}]   ;;  %s13354_s11 = inlined_call_operand.vmem [shape: f32[18,6], index: 11, kind: input, shape index: {}]   ;;  %s13355_s12 = inlined_call_operand.vmem [shape: f32[18,6], index: 12, kind: input, shape index: {}]   ;;  %s13356_s13 = inlined_call_operand.vmem [shape: f32[6,18], index: 13, kind: input, shape index: {}]   ;;  %s13357_s14 = inlined_call_operand.hbm [shape: f32[6,8], index: 14, kind: output, shape index: {}]  }
   0x1   :  { %v50_v0 = vld [vmem:[%s13346_s3] sm:$0x3f]  ;;  %9521 = vmatprep.subr.mxu0 %v13359_v1  ;;  %9523 = vmatprep.mubr.msk.f32.mxu0 %vm11172_vm2, %v13359_v1  ;;  %v52_v5 = vld [vmem:[%s13345_s2 + $0x8] sm:$0xff]  ;;  %v53_v6 = vld [vmem:[%s13345_s2 + $0x10] sm:$0xff]  ;;  %v13367_v7 = vmov 0.0|0.0  }
   0x2   :  { %v11265_v2 = vld [vmem:[%s13344_s1] sm:$0x3f]  ;;  %9522 = vmatpush3.msk.msra.mxu0 %vm167_vm0, %v50_v0  ;;  %10165 = vmatprep.subr.bf16.mxu1 %v13367_v7  ;;  %v54_v9 = vld [vmem:[%s13345_s2 + $0x18] sm:$0xff] }
   0x3   :  { %v11270_v3 = vld [vmem:[%s13343_s0] sm:$0x3f]  ;;  %9524 = vmatmul.mubr.msk.f32.vlgmr.msra.gmra.mrb[0].mxu0 %vm163_vm1, %v11265_v2  ;;  %9542 = vmatprep.mubr.msk.f32.mxu1 %vm11172_vm2, %v13359_v1 }
   0x4   :  { %243 = vrot.lane.b32.xlu0 %v11270_v3, %s11173_s19  ;;  %v51_v4 = vld [vmem:[%s13345_s2] sm:$0xff]  ;;  %10177 = vmatprep.subr.bf16.mxu0 %v13367_v7 }
   0x5   :  { %v11287_v8 = vpack.c.bf16 %v52_v5, %v51_v4 }
   0x6   :  { %19 = vsyncpa [#allocation3], 0  ;;  %v11296_v10 = vpack.c.bf16 %v54_v9, %v53_v6  ;;  %9553 = vmatprep.mubr.msk.f32.mxu0 %vm11172_vm2, %v13359_v1  ;;  %v55_v11 = vld [vmem:[%s13345_s2 + $0x20] sm:$0xff]  ;;  %v56_v12 = vld [vmem:[%s13345_s2 + $0x28] sm:$0xff]  ;;  %v159_v17 = vlaneseq  ;;  %vm246_vm3 = vcmask 261120   ;;  %vm252_vm4 = vcmask 523264  }
   0x7   :  { %10167 = vmatpush3.bf16.msra.mxu1 %v11287_v8  ;;  %v11308_v13 = vpack.c.bf16 %v56_v12, %v55_v11  ;;  %v57_v14 = vld [vmem:[%s13345_s2 + $0x30] sm:$0xff]  ;;  %v58_v15 = vld [vmem:[%s13345_s2 + $0x38] sm:$0xff]  ;;  %v67_v28 = vld [vmem:[%s13345_s2 + $0x80] sm:$0x3]  ;;  %s11175_s23 = smov 64   ;;  %s11176_s16 = smov 96  }
   0x8   :  { %10168 = vmatprep.subr.bf16.mxu1 %v13367_v7  ;;  %v11319_v16 = vpack.c.bf16 %v58_v15, %v57_v14  ;;  %v11323_v18 = vshrl.u32 %v159_v17, 7  ;;  %v68_v43 = vld [vmem:[%s13347_s4] sm:$0xff]  ;;  %v69_v44 = vld [vmem:[%s13347_s4 + $0x8] sm:$0xff]  ;;  %v70_v45 = vld [vmem:[%s13347_s4 + $0x10] sm:$0xff]  ;;  %s11177_s22 = smov 2   ;;  %vm433_vm5 = vcmask 15360  }
   0x9   :  { %v11362_v46 = vpack.c.bf16 %v69_v44, %v68_v43  ;;  %v71_v47 = vld [vmem:[%s13347_s4 + $0x18] sm:$0xff]  ;;  %v144_v56 = vld [vmem:[%s13351_s8] sm:$0xff]  ;;  %v8687_v5 = vld [vmem:[%s13351_s8 + $0x8] ss:$0 sm:$0xff]  ;;  %vm598_vm6 = vcmask 1045504   ;;  %vm588_vm7 = vcmask 48128  }
   0xa   :  { %v161_v19 = vsub.s32 4, %v11323_v18  ;;  %v11339_v27 = vsub.s32 0, %v11323_v18  ;;  %v11369_v49 = vpack.c.bf16 %v71_v47, %v70_v45  ;;  %v8685_v57 = vld [vmem:[%s13347_s4 + $0x20] ss:$0 sm:$0xff]  ;;  %v11401_v61 = vrot.slane %v144_v56, 4  ;;  %v81_v4 = vld [vmem:[%s13349_s6 + $0x18] sm:$0xff] }
   0xb   :  { %10170 = vmatpush3.bf16.msra.mxu1 %v11296_v10  ;;  %10179 = vmatpush3.bf16.msra.mxu0 %v11362_v46  ;;  %v11426_v6 = vld [vmem:[%s13354_s11] sm:$0xff]  ;;  %v11440_v15 = vld [vmem:[%s13354_s11 + $0x8] sm:$0xff]  ;;  %v11450_v17 = vld [vmem:[%s13354_s11 + $0x10] sm:$0x3]  ;;  %vm796_vm8 = vcmask 130048   ;;  %vm1691_vm13 = vcmask 29696  }
   0xc   :  { %10171 = vmatprep.subr.bf16.mxu1 %v13367_v7  ;;  %v11326_v20 = vrot.slane %v50_v0, %v161_v19  ;;  %v11345_v29 = vrot.slane %v67_v28, %v11339_v27  ;;  %13465 = vst [vmem:[#allocation7_spill] sm:$0xff] %v11369_v49  ;;  %10180 = vmatprep.subr.bf16.mxu0 %v13367_v7  ;;  %13466 = vst [vmem:[#allocation8_spill] sm:$0xff] %v11401_v61  ;;  %v78_v19 = vld [vmem:[%s13349_s6] sm:$0xff]  ;;  %v93_v43 = vld [vmem:[%s13349_s6 + $0x78] sm:$0xff]  ;;  %s11180_s24 = smov [#allocation2]  }
   0xd   :  { %v90_v47 = vld [vmem:[%s13349_s6 + $0x60] sm:$0xff]  ;;  %s8673_s25 = sshll.u32 %s11180_s24, 4  ;;  %s8674_s25 = int_to_ptr.vmem [resolvable:$true] %s8673_s25 }
   0xe   :  { %13463 = vst [vmem:[#allocation5_spill] sm:$0xff] %v11326_v20  ;;  %13464 = vst [vmem:[#allocation6_spill] sm:$0xff] %v11345_v29  ;;  %p11152_p1 = scmp.lt.s32.totalorder %s8674_s25, %s8674_s25 }
   0xf   :  { %10173 = vmatpush3.bf16.msra.mxu1 %v11308_v13  ;;  %10182 = vmatpush3.bf16.msra.mxu0 %v11369_v49 }
  0x10   :  { %10174 = vmatprep.subr.bf16.mxu1 %v13367_v7  ;;  %9556 = vmatprep.subr.mxu0 %v13359_v1 }
  0x13   :  { %10176 = vmatpush3.bf16.msra.mxu1 %v11319_v16 }
  0x14   :  { %9566 = vmatprep.subr.mxu1 %v13359_v1 }
  0x76   :  { %v244_v24 = vpop.permute.xlu0 %243 }
  0xd6   :  { %v237_v21 = vpop.f32.mrb[0].mxu0 }
  0xd7   :  { %v11329_v22 = vadd.f32 %v237_v21, %v11326_v20  ;;  %v9525_v23 = vpop.f32.mrb[1].mxu0  ;;  %v80_v21 = vld [vmem:[%s13349_s6 + $0x10] sm:$0xff] }
  0xd8   :  { %v83_v23 = vld [vmem:[%s13349_s6 + $0x28] sm:$0xff]  ;;  %v11473_v28 = vpack.c.bf16 %v80_v21, %v78_v19 }
  0xd9   :  { %v13358_v25 = vmax.f32 %v11329_v22, 0.0 }
  0xda   :  { %13468 = vst [vmem:[#allocation10_spill] sm:$0xff] %v11473_v28 }
  0xdb   :  { %v247_v26 = vsel %vm246_vm3, %v13358_v25, %v244_v24  ;;  %v85_v24 = vld [vmem:[%s13349_s6 + $0x38] sm:$0xff] }
  0xdc   :  { %9543 = vmatmul.mubr.msk.f32.vlgmr.msra.gmra.mrb[0].mxu1 %vm252_vm4, %v247_v26  ;;  %v11471_v26 = vld [vmem:[%s13353_s10] sm:$0xff]  ;;  %v143_v25 = vld [vmem:[%s13350_s7 + $0xf8] sm:$0xff] }
  0xdd   :  { %9568 = vmatprep.mubr.msk.f32.mxu1 %vm11172_vm2, %v13359_v1 }
 0x1af   :  { %v322_v30 = vpop.f32.mrb[0].mxu1 }
 0x1b0   :  { %v323_v31 = vadd.f32 %v322_v30, %v11345_v29  ;;  %v9544_v32 = vpop.f32.mrb[1].mxu1  ;;  %v11475_v30 = vpack.c.bf16 %v85_v24, %v83_v23 }
 0x1b1   :  { %v84_v32 = vld [vmem:[%s13349_s6 + $0x30] sm:$0xff] }
 0x1b2   :  { %10867 = vtanh.f32 %v323_v31  ;;  %v8684_v34 = vmul.f32 -1.442695, %v323_v31  ;;  %13469 = vst [vmem:[#allocation11_spill] sm:$0xff] %v11475_v30  ;;  %v82_v31 = vld [vmem:[%s13349_s6 + $0x20] sm:$0xff] }
 0x1b4   :  { %10869 = vpow2.f32 %v8684_v34  ;;  %v89_v34 = vld [vmem:[%s13349_s6 + $0x58] sm:$0xff] }
 0x1bc   :  { %v10868_v33 = vpop.eup %10867 }
 0x1bd   :  { %335 = vrot.lane.b32.xlu0 %v10868_v33, %s11175_s23  ;;  %v87_v33 = vld [vmem:[%s13349_s6 + $0x48] sm:$0xff] }
 0x1be   :  { %v10870_v35 = vpop.eup %10869 }
 0x1bf   :  { %v329_v36 = vadd.f32 1.0, %v10870_v35  ;;  %v11496_v35 = vld [vmem:[%s13353_s10 + $0x8] sm:$0xff] }
 0x1c1   :  { %10871 = vrcp.f32 %v329_v36  ;;  %v11499_v36 = vpack.c.bf16 %v84_v32, %v82_v31 }
 0x1c3   :  { %13470 = vst [vmem:[#allocation12_spill] sm:$0xff] %v11499_v36 }
 0x1cb   :  { %v10872_v37 = vpop.eup %10871 }
 0x1cc   :  { %v333_v40 = vmul.f32 0.0, %v10872_v37 }
 0x22f   :  { %v336_v38 = vpop.permute.xlu0 %335 }
 0x230   :  { %v338_v39 = vmul.f32 %v10872_v37, %v336_v38  ;;  %v11511_v38 = vld [vmem:[%s13353_s10 + $0x10] sm:$0x3] }
 0x232   :  { %340 = vrot.lane.b32.xlu1 %v338_v39, %s11173_s19  ;;  %v86_v39 = vld [vmem:[%s13349_s6 + $0x40] sm:$0xff] }
 0x2a4   :  { %v341_v41 = vpop.permute.xlu1 %340 }
 0x2a5   :  { %v11350_v42 = vadd.f32 %v341_v41, %v333_v40  ;;  %v88_v40 = vld [vmem:[%s13349_s6 + $0x50] sm:$0xff]  ;;  %v91_v41 = vld [vmem:[%s13349_s6 + $0x68] sm:$0xff] }
 0x2a6   :  { %v11530_v44 = vpack.c.bf16 %v88_v40, %v86_v39  ;;  %v11532_v45 = vpack.c.bf16 %v93_v43, %v91_v41  ;;  %v97_v41 = vld [vmem:[%s13349_s6 + $0x98] sm:$0xff]  ;;  %v99_v43 = vld [vmem:[%s13349_s6 + $0xa8] sm:$0xff] }
 0x2a7   :  { %10873 = vtanh.f32 %v11350_v42 }
 0x2a8   :  { %13472 = vst [vmem:[#allocation14_spill] sm:$0xff] %v11530_v44  ;;  %13473 = vst [vmem:[#allocation15_spill] sm:$0xff] %v11532_v45 }
 0x2b1   :  { %v10874_v48 = vpop.eup %10873 }
 0x2b2   :  { %346 = vrot.lane.b32.xlu1 %v10874_v48, %s11175_s23  ;;  %v92_v48 = vld [vmem:[%s13349_s6 + $0x70] sm:$0xff] }
 0x324   :  { %v347_v50 = vpop.permute.xlu1 %346 }
 0x325   :  { %v11374_v51 = vmul.f32 %v10872_v37, %v347_v50  ;;  %v11502_v37 = vpack.c.bf16 %v89_v34, %v87_v33  ;;  %v11543_v50 = vpack.c.bf16 %v92_v48, %v90_v47  ;;  %v11582_v47 = vpack.c.bf16 %v99_v43, %v97_v41  ;;  %v96_v48 = vld [vmem:[%s13349_s6 + $0x90] sm:$0xff] }
 0x327   :  { %355 = vrot.lane.b32.xlu0 %v11374_v51, %s11173_s19  ;;  %13471 = vst [vmem:[#allocation13_spill] sm:$0xff] %v11502_v37  ;;  %13474 = vst [vmem:[#allocation16_spill] sm:$0xff] %v11543_v50 }
 0x328   :  { %13476 = vst [vmem:[#allocation18_spill] sm:$0xff] %v11582_v47 }
 0x32b   :  { %996 = vrot.lane.b32.xlu0 %v11270_v3, %s11176_s16 }
 0x32f   :  { %1907 = vrot.lane.b32.xlu0 %v11270_v3, %s11175_s23 }
 0x399   :  { %v11382_v52 = vpop.permute.xlu0 %355 }
 0x39a   :  { %9554 = vmatmul.mubr.msk.f32.vlgmr.msra.gmra.mrb[2].mxu0 %vm246_vm3, %v11382_v52 }
 0x39b   :  { %9558 = vmatprep.mubr.msk.f32.mxu0 %vm11172_vm2, %v13359_v1  ;;  %9557 = vmatpush3.msk.msra.mxu0 %vm167_vm0, %v144_v56 }
 0x39c   :  { %9561 = vmatprep.subr.mxu0 %v13359_v1 }
 0x39d   :  { %v11388_v53 = vpop.permute.xlu0 %996 }
 0x3a1   :  { %v1908_v54 = vpop.permute.xlu0 %1907 }
 0x3a2   :  { %v1910_v55 = vsub.f32 %v11374_v51, %v1908_v54  ;;  %v146_v54 = vld [vmem:[%s13352_s9] sm:$0xff] }
 0x3a4   :  { %1912 = vrot.lane.b32.xlu0 %v1910_v55, %s11173_s19  ;;  %v147_v55 = vld [vmem:[%s13352_s9 + $0x8] sm:$0xff] }
 0x3a5   :  { %v11557_v56 = vpack.c.bf16 %v147_v55, %v146_v54  ;;  %v98_v54 = vld [vmem:[%s13349_s6 + $0xa0] sm:$0xff] }
 0x3a6   :  { %v11590_v55 = vpack.c.bf16 %v98_v54, %v96_v48 }
 0x3a7   :  { %13475 = vst [vmem:[#allocation17_spill] sm:$0xff] %v11557_v56 }
 0x3a8   :  { %13477 = vst [vmem:[#allocation19_spill] sm:$0xff] %v11590_v55 }
 0x46d   :  { %v425_v58 = vpop.f32.mrb[2].mxu0 }
 0x46e   :  { %v426_v59 = vadd.f32 %v8685_v57, %v425_v58  ;;  %v9555_v60 = vpop.f32.mrb[3].mxu0 }
 0x470   :  { %430 = vrot.lane.b32.xlu1 %v426_v59, %s11177_s22 }
 0x4e2   :  { %v431_v62 = vpop.permute.xlu1 %430 }
 0x4e3   :  { %v434_v63 = vsel %vm433_vm5, %v11265_v2, %v431_v62  ;;  %v79_v2 = vld [vmem:[%s13349_s6 + $0x8] sm:$0xff] }
 0x4e4   :  { %9559 = vmatmul.mubr.msk.f32.vlgmr.msra.gmra.mrb[4].mxu0 %vm163_vm1, %v434_v63  ;;  %v11428_v11 = vpack.c.bf16 %v81_v4, %v79_v2 }
 0x4e5   :  { %9562 = vmatpush3.msk.msra.mxu0 %vm167_vm0, %v11401_v61  ;;  %9563 = vmatprep.mubr.msk.f32.mxu0 %vm11172_vm2, %v13359_v1 }
 0x4e6   :  { %10183 = vmatprep.subr.bf16.mxu0 %v13367_v7  ;;  %13467 = vst [vmem:[#allocation9_spill] sm:$0xff] %v11428_v11 }
 0x4e8   :  { %9564 = vmatmul.mubr.msk.f32.vlgmr.msra.gmra.mrb[6].mxu0 %vm163_vm1, %v434_v63 }
 0x4e9   :  { %9592 = vmatprep.mubr.msk.f32.mxu0 %vm11172_vm2, %v13359_v1  ;;  %10185 = vmatpush3.bf16.msra.mxu0 %v11557_v56 }
 0x4ea   :  { %10187 = vmatprep.subr.bf16.mxu0 %v11582_v47 }
 0x5b7   :  { %v511_v0 = vpop.f32.mrb[4].mxu0 }
 0x5b8   :  { %v9560_v3 = vpop.f32.mrb[5].mxu0  ;;  %v512_v12 = vadd.f32 %v8687_v5, %v511_v0 }
 0x5bb   :  { %v584_v9 = vpop.f32.mrb[6].mxu0 }
 0x5bc   :  { %v9565_v14 = vpop.f32.mrb[7].mxu0  ;;  %9567 = vmatpush3.msk.msra.mxu1 %vm598_vm6, %v584_v9 }
 0x5bd   :  { %9569 = vmatmul.mubr.msk.f32.vlgmr.msra.gmra.mrb[2].mxu1 %vm588_vm7, %v11426_v6  ;;  %9577 = vmatprep.subr.mxu1 %v13359_v1 }
 0x5be   :  { %9578 = vmatpush3.msk.msra.mxu1 %vm598_vm6, %v512_v12  ;;  %9571 = vmatprep.mubr.msk.f32.mxu1 %vm11172_vm2, %v13359_v1 }
 0x5bf   :  { %10203 = vmatprep.subr.bf16.mxu1 %v11428_v11 }
 0x5c1   :  { %9572 = vmatmul.mubr.msk.f32.gmra.mrb[4].mxu1 %vm588_vm7, %v11440_v15 }
 0x5c2   :  { %9574 = vmatprep.mubr.msk.f32.mxu1 %vm11172_vm2, %v13359_v1 }
 0x5c5   :  { %9575 = vmatmul.mubr.msk.f32.gmra.mrb[6].mxu1 %vm588_vm7, %v11450_v17 }
 0x5c6   :  { %9579 = vmatprep.mubr.msk.f32.mxu1 %vm11172_vm2, %v13359_v1 }
 0x5c9   :  { %9580 = vmatmul.mubr.msk.f32.vlgmr.msra.gmra.mrb[2].mxu1 %vm588_vm7, %v11471_v26 }
 0x5ca   :  { %9582 = vmatprep.mubr.msk.f32.mxu1 %vm11172_vm2, %v13359_v1  ;;  %10205 = vmatpush1.bf16.msra.mxu1 %v11473_v28 }
 0x5cb   :  { %10207 = vmatprep.subr.bf16.mxu1 %v11475_v30 }
 0x5cd   :  { %9583 = vmatmul.mubr.msk.f32.gmra.mrb[4].mxu1 %vm588_vm7, %v11496_v35 }
 0x5ce   :  { %9585 = vmatprep.mubr.msk.f32.mxu1 %vm11172_vm2, %v13359_v1  ;;  %10209 = vmatpush1.bf16.msra.mxu1 %v11499_v36 }
 0x5cf   :  { %10219 = vmatprep.subr.bf16.mxu1 %v11502_v37 }
 0x5d1   :  { %9586 = vmatmul.mubr.msk.f32.gmra.mrb[6].mxu1 %vm588_vm7, %v11511_v38 }
 0x5d2   :  { %1064 = vmatprep.mubr.f32.mxu1 %v13359_v1 }
 0x5d5   :  { %8713 = vmatmul.mubr.msk.f32.vlgmr.msra.gmra.mrb[8].mxu1 %vm246_vm3, %v11388_v53 }
 0x5d6   :  { %10221 = vmatpush1.bf16.msra.mxu1 %v11530_v44  ;;  %1206 = vmatprep.mubr.f32.mxu1 %v13359_v1 }
 0x5d7   :  { %10223 = vmatprep.subr.bf16.mxu1 %v11532_v45 }
 0x5da   :  { %10225 = vmatpush1.bf16.msra.mxu1 %v11543_v50 }
 0x5dd   :  { %8715 = vmatmul.mubr.msk.f32.vlgmr.msra.gmra.mrb[10].mxu1 %vm246_vm3, %v11382_v52 }
 0x5de   :  { %1367 = vmatprep.mubr.f32.mxu1 %v13359_v1 }
 0x69c   :  { %v760_v57 = vpop.f32.mrb[2].mxu1 }
 0x69d   :  { %v777_v58 = vmin.f32 %v760_v57, 0.0  ;;  %v9581_v59 = vpop.f32.mrb[3].mxu1  ;;  %vm774_vm9 = vcmp.gt.f32.partialorder %v760_v57, 0.0 }
 0x69f   :  { %v780_v60 = vmul.f32 1.442695, %v777_v58  ;;  %v103_v58 = vld [vmem:[%s13349_s6 + $0xc8] sm:$0xff] }
 0x6a0   :  { %v765_v62 = vpop.f32.mrb[4].mxu1 }
 0x6a1   :  { %10875 = vpow2.f32 %v780_v60  ;;  %v778_v52 = vmin.f32 %v765_v62, 0.0  ;;  %v9584_v63 = vpop.f32.mrb[5].mxu1  ;;  %vm775_vm10 = vcmp.gt.f32.partialorder %v765_v62, 0.0  ;;  %v100_v60 = vld [vmem:[%s13349_s6 + $0xb0] sm:$0xff] }
 0x6a2   :  { %v105_v63 = vld [vmem:[%s13349_s6 + $0xd8] sm:$0xff] }
 0x6a3   :  { %v782_v0 = vmul.f32 1.442695, %v778_v52 }
 0x6a4   :  { %v770_v3 = vpop.f32.mrb[6].mxu1 }
 0x6a5   :  { %10877 = vpow2.f32 %v782_v0  ;;  %v779_v2 = vmin.f32 %v770_v3, 0.0  ;;  %v9587_v4 = vpop.f32.mrb[7].mxu1  ;;  %vm776_vm11 = vcmp.gt.f32.partialorder %v770_v3, 0.0  ;;  %v107_v0 = vld [vmem:[%s13349_s6 + $0xe8] sm:$0xff] }
 0x6a6   :  { %v106_v4 = vld [vmem:[%s13349_s6 + $0xe0] sm:$0xff] }
 0x6a7   :  { %v784_v5 = vmul.f32 1.442695, %v779_v2  ;;  %v104_v2 = vld [vmem:[%s13349_s6 + $0xd0] sm:$0xff] }
 0x6a8   :  { %v11560_v9 = vpop.f32.mrb[8].mxu1 }
 0x6a9   :  { %10879 = vpow2.f32 %v784_v5  ;;  %v11562_v12 = vpop.f32.mrb[9].mxu1  ;;  %v11626_v5 = vpack.c.bf16 %v106_v4, %v104_v2 }
 0x6ab   :  { %v10876_v14 = vpop.eup %10875  ;;  %13481 = vst [vmem:[#allocation23_spill] sm:$0xff] %v11626_v5 }
 0x6ac   :  { %v8700_v19 = vadd.f32 -1.0, %v10876_v14  ;;  %v109_v14 = vld [vmem:[%s13349_s6 + $0xf8] sm:$0xff] }
 0x6ae   :  { %v789_v21 = vsel %vm774_vm9, %v760_v57, %v8700_v19  ;;  %v101_v57 = vld [vmem:[%s13349_s6 + $0xb8] sm:$0xff]  ;;  %v111_v19 = vld [vmem:[%s13349_s6 + $0x108] sm:$0xff] }
 0x6af   :  { %v10878_v23 = vpop.eup %10877  ;;  %9593 = vmatmul.mubr.msk.f32.vlgmr.msra.gmra.mrb[8].mxu0 %vm796_vm8, %v789_v21  ;;  %v11600_v59 = vpack.c.bf16 %v103_v58, %v101_v57  ;;  %v11636_v21 = vpack.c.bf16 %v111_v19, %v109_v14 }
 0x6b0   :  { %v8701_v24 = vadd.f32 -1.0, %v10878_v23  ;;  %v11565_v31 = vpop.f32.mrb[10].mxu1  ;;  %9595 = vmatprep.mubr.msk.f32.mxu0 %vm11172_vm2, %v13359_v1  ;;  %10189 = vmatpush1.bf16.msra.mxu0 %v11590_v55  ;;  %v108_v23 = vld [vmem:[%s13349_s6 + $0xf0] sm:$0xff] }
 0x6b1   :  { %v11569_v32 = vpop.f32.mrb[11].mxu1  ;;  %13478 = vst [vmem:[#allocation20_spill] sm:$0xff] %v11600_v59  ;;  %10191 = vmatprep.subr.bf16.mxu0 %v11600_v59  ;;  %13482 = vst [vmem:[#allocation24_spill] sm:$0xff] %v11636_v21 }
 0x6b2   :  { %v790_v33 = vsel %vm775_vm10, %v765_v62, %v8701_v24  ;;  %v102_v62 = vld [vmem:[%s13349_s6 + $0xc0] sm:$0xff]  ;;  %vm1701_vm10 = vcmask 25600  }
 0x6b3   :  { %v10880_v34 = vpop.eup %10879  ;;  %9596 = vmatmul.mubr.msk.f32.gmra.mrb[10].mxu0 %vm796_vm8, %v790_v33  ;;  %v11608_v52 = vpack.c.bf16 %v102_v62, %v100_v60  ;;  %v110_v24 = vld [vmem:[%s13349_s6 + $0x100] sm:$0xff] }
 0x6b4   :  { %v8702_v39 = vadd.f32 -1.0, %v10880_v34  ;;  %9598 = vmatprep.mubr.msk.f32.mxu0 %vm11172_vm2, %v13359_v1  ;;  %v11644_v33 = vpack.c.bf16 %v110_v24, %v108_v23  ;;  %v8703_v34 = vld [vmem:[%s13352_s9 + $0x10] ss:$0 sm:$0xff] }
 0x6b5   :  { %13479 = vst [vmem:[#allocation21_spill] sm:$0xff] %v11608_v52  ;;  %10193 = vmatpush1.bf16.msra.mxu0 %v11608_v52 }
 0x6b6   :  { %v791_v40 = vsel %vm776_vm11, %v770_v3, %v8702_v39  ;;  %v11618_v3 = vpack.c.bf16 %v107_v0, %v105_v63  ;;  %13483 = vst [vmem:[#allocation25_spill] sm:$0xff] %v11644_v33  ;;  %vm1731_vm11 = vcmask 1041408  }
 0x6b7   :  { %9599 = vmatmul.mubr.msk.f32.gmra.mrb[12].mxu0 %vm796_vm8, %v791_v40 }
 0x6b8   :  { %977 = vmatprep.mubr.f32.mxu0 %v13359_v1  ;;  %13480 = vst [vmem:[#allocation22_spill] sm:$0xff] %v11618_v3  ;;  %10195 = vmatprep.subr.bf16.mxu0 %v11618_v3 }
 0x6b9   :  { %10197 = vmatpush1.bf16.msra.mxu0 %v11626_v5 }
 0x6ba   :  { %10199 = vmatprep.subr.bf16.mxu0 %v11636_v21 }
 0x6bd   :  { %10201 = vmatpush1.bf16.msra.mxu0 %v11644_v33 }
 0x6be   :  { %10211 = vmatprep.subr.bf16.mxu0 %v11502_v37 }
 0x782   :  { %v872_v39 = vpop.f32.mrb[8].mxu0 }
 0x783   :  { %v873_v40 = vadd.f32 %v8703_v34, %v872_v39  ;;  %v9594_v41 = vpop.f32.mrb[9].mxu0 }
 0x785   :  { %v8707_v43 = vmul.f32 -1.442695, %v873_v40  ;;  %v128_v40 = vld [vmem:[%s13350_s7 + $0x80] sm:$0xff] }
 0x786   :  { %v877_v48 = vpop.f32.mrb[10].mxu0 }
 0x787   :  { %10881 = vpow2.f32 %v8707_v43  ;;  %v878_v54 = vadd.f32 %v8703_v34, %v877_v48  ;;  %v9597_v57 = vpop.f32.mrb[11].mxu0  ;;  %v112_v48 = vld [vmem:[%s13350_s7] sm:$0xff] }
 0x789   :  { %v8708_v58 = vmul.f32 -1.442695, %v878_v54  ;;  %v113_v54 = vld [vmem:[%s13350_s7 + $0x8] sm:$0xff] }
 0x78a   :  { %v882_v60 = vpop.f32.mrb[12].mxu0 }
 0x78b   :  { %10883 = vpow2.f32 %v8708_v58  ;;  %v883_v62 = vadd.f32 %v8703_v34, %v882_v60  ;;  %v9600_v63 = vpop.f32.mrb[13].mxu0  ;;  %v129_v34 = vld [vmem:[%s13350_s7 + $0x88] sm:$0xff]  ;;  %v11676_v58 = vpack.c.bf16 %v113_v54, %v112_v48  ;;  %v130_v60 = vld [vmem:[%s13350_s7 + $0x90] sm:$0xff] }
 0x78c   :  { %v11662_v41 = vpack.c.bf16 %v129_v34, %v128_v40  ;;  %v134_v34 = vld [vmem:[%s13350_s7 + $0xb0] sm:$0xff] }
 0x78d   :  { %v8709_v0 = vmul.f32 -1.442695, %v883_v62  ;;  %v131_v62 = vld [vmem:[%s13350_s7 + $0x98] sm:$0xff]  ;;  %v118_v54 = vld [vmem:[%s13350_s7 + $0x30] sm:$0xff] }
 0x78e   :  { %v11687_v63 = vpack.c.bf16 %v131_v62, %v130_v60  ;;  %v136_v62 = vld [vmem:[%s13350_s7 + $0xc0] sm:$0xff] }
 0x78f   :  { %10885 = vpow2.f32 %v8709_v0  ;;  %v114_v0 = vld [vmem:[%s13350_s7 + $0x10] sm:$0xff] }
 0x791   :  { %v10882_v2 = vpop.eup %10881 }
 0x792   :  { %v895_v4 = vadd.f32 1.0, %v10882_v2  ;;  %v115_v2 = vld [vmem:[%s13350_s7 + $0x18] sm:$0xff] }
 0x794   :  { %10887 = vrcp.f32 %v895_v4  ;;  %v11695_v4 = vpack.c.bf16 %v115_v2, %v114_v0  ;;  %v137_v0 = vld [vmem:[%s13350_s7 + $0xc8] sm:$0xff] }
 0x795   :  { %v10884_v14 = vpop.eup %10883  ;;  %v11741_v2 = vpack.c.bf16 %v137_v0, %v136_v62  ;;  %v140_v0 = vld [vmem:[%s13350_s7 + $0xe0] sm:$0xff] }
 0x796   :  { %v896_v19 = vadd.f32 1.0, %v10884_v14  ;;  %v132_v14 = vld [vmem:[%s13350_s7 + $0xa0] sm:$0xff] }
 0x797   :  { %13484 = vst [vmem:[#allocation26_spill] sm:$0xff] %v11741_v2 }
 0x798   :  { %10889 = vrcp.f32 %v896_v19  ;;  %v133_v19 = vld [vmem:[%s13350_s7 + $0xa8] sm:$0xff] }
 0x799   :  { %v10886_v23 = vpop.eup %10885 }
 0x79a   :  { %v897_v24 = vadd.f32 1.0, %v10886_v23  ;;  %v11705_v23 = vpack.c.bf16 %v133_v19, %v132_v14  ;;  %v120_v14 = vld [vmem:[%s13350_s7 + $0x40] sm:$0xff]  ;;  %v121_v19 = vld [vmem:[%s13350_s7 + $0x48] sm:$0xff] }
 0x79c   :  { %10891 = vrcp.f32 %v897_v24  ;;  %v116_v24 = vld [vmem:[%s13350_s7 + $0x20] sm:$0xff] }
 0x79e   :  { %v10888_v39 = vpop.eup %10887 }
 0x79f   :  { %8710 = vmatmul.mubr.msk.f32.vlgmr.msra.gmra.mrb[14].mxu0 %vm252_vm4, %v10888_v39  ;;  %v117_v39 = vld [vmem:[%s13350_s7 + $0x28] sm:$0xff] }
 0x7a0   :  { %983 = vmatprep.mubr.f32.mxu0 %v13359_v1  ;;  %10213 = vmatpush1.bf16.msra.mxu0 %v11530_v44  ;;  %v11713_v40 = vpack.c.bf16 %v117_v39, %v116_v24  ;;  %v11749_v24 = vpack.c.bf16 %v121_v19, %v120_v14  ;;  %v138_v39 = vld [vmem:[%s13350_s7 + $0xd0] sm:$0xff]  ;;  %v141_v14 = vld [vmem:[%s13350_s7 + $0xe8] sm:$0xff]  ;;  %v124_v19 = vld [vmem:[%s13350_s7 + $0x60] sm:$0xff] }
 0x7a1   :  { %10215 = vmatprep.subr.bf16.mxu0 %v11532_v45 }
 0x7a2   :  { %v10890_v43 = vpop.eup %10889  ;;  %13485 = vst [vmem:[#allocation27_spill] sm:$0xff] %v11749_v24 }
 0x7a3   :  { %8711 = vmatmul.mubr.msk.f32.gmra.mrb[16].mxu0 %vm252_vm4, %v10890_v43  ;;  %v135_v43 = vld [vmem:[%s13350_s7 + $0xb8] sm:$0xff] }
 0x7a4   :  { %989 = vmatprep.mubr.f32.mxu0 %v13359_v1  ;;  %10217 = vmatpush1.bf16.msra.mxu0 %v11543_v50  ;;  %v11723_v48 = vpack.c.bf16 %v135_v43, %v134_v34  ;;  %v139_v34 = vld [vmem:[%s13350_s7 + $0xd8] sm:$0xff] }
 0x7a5   :  { %10227 = vmatprep.subr.bf16.mxu0 %v11662_v41  ;;  %v11759_v43 = vpack.c.bf16 %v139_v34, %v138_v39  ;;  %v11780_v39 = vpack.c.bf16 %v141_v14, %v140_v0  ;;  %v125_v34 = vld [vmem:[%s13350_s7 + $0x68] sm:$0xff]  ;;  %v126_v0 = vld [vmem:[%s13350_s7 + $0x70] sm:$0xff] }
 0x7a6   :  { %v10892_v57 = vpop.eup %10891 }
 0x7a7   :  { %8712 = vmatmul.mubr.msk.f32.gmra.mrb[18].mxu0 %vm252_vm4, %v10892_v57  ;;  %v119_v57 = vld [vmem:[%s13350_s7 + $0x38] sm:$0xff]  ;;  %13486 = vst [vmem:[#allocation28_spill] sm:$0xff] %v11759_v43  ;;  %13488 = vst [vmem:[#allocation30_spill] sm:$0xff] %v11780_v39 }
 0x7a8   :  { %1135 = vmatprep.mubr.f32.mxu0 %v13359_v1  ;;  %v11731_v60 = vpack.c.bf16 %v119_v57, %v118_v54  ;;  %v122_v54 = vld [vmem:[%s13350_s7 + $0x50] sm:$0xff]  ;;  %v123_v57 = vld [vmem:[%s13350_s7 + $0x58] sm:$0xff] }
 0x7a9   :  { %v11767_v62 = vpack.c.bf16 %v123_v57, %v122_v54  ;;  %v11785_v54 = vpack.c.bf16 %v125_v34, %v124_v19  ;;  %v142_v57 = vld [vmem:[%s13350_s7 + $0xf0] sm:$0xff]  ;;  %v127_v19 = vld [vmem:[%s13350_s7 + $0x78] sm:$0xff] }
 0x7aa   :  { %v11798_v14 = vpack.c.bf16 %v143_v25, %v142_v57  ;;  %v11803_v34 = vpack.c.bf16 %v127_v19, %v126_v0  ;;  %v94_v57 = vld [vmem:[%s13349_s6 + $0x80] sm:$0xff]  ;;  %v95_v19 = vld [vmem:[%s13349_s6 + $0x88] sm:$0xff] }
 0x7ab   :  { %8714 = vmatmul.mubr.msk.f32.vlgmr.msra.gmra.mrb[20].mxu0 %vm246_vm3, %v11388_v53  ;;  %13487 = vst [vmem:[#allocation29_spill] sm:$0xff] %v11767_v62  ;;  %13489 = vst [vmem:[#allocation31_spill] sm:$0xff] %v11785_v54  ;;  %v11830_v3 = vrot.slane %v95_v19, %v11339_v27 }
 0x7ac   :  { %10229 = vmatpush3.bf16.msra.mxu0 %v11676_v58  ;;  %13490 = vst [vmem:[#allocation32_spill] sm:$0xff] %v11798_v14  ;;  %13491 = vst [vmem:[#allocation33_spill] sm:$0xff] %v11803_v34 }
 0x7ad   :  { %10231 = vmatprep.subr.bf16.mxu0 %v11687_v63  ;;  %13493 = vst [vmem:[#allocation35_spill] sm:$0xff] %v11830_v3 }
 0x7b0   :  { %10233 = vmatpush3.bf16.msra.mxu0 %v11695_v4 }
 0x7b1   :  { %10235 = vmatprep.subr.bf16.mxu0 %v11705_v23 }
 0x7b4   :  { %10237 = vmatpush3.bf16.msra.mxu0 %v11713_v40 }
 0x7b5   :  { %10239 = vmatprep.subr.bf16.mxu0 %v11723_v48 }
 0x7b8   :  { %10241 = vmatpush3.bf16.msra.mxu0 %v11731_v60 }
 0x7b9   :  { %10243 = vmatprep.subr.bf16.mxu0 %v11741_v2 }
 0x7bc   :  { %10245 = vmatpush3.bf16.msra.mxu0 %v11749_v24 }
 0x7bd   :  { %10247 = vmatprep.subr.bf16.mxu0 %v11759_v43 }
 0x7c0   :  { %10249 = vmatpush3.bf16.msra.mxu0 %v11767_v62 }
 0x7c1   :  { %10251 = vmatprep.subr.bf16.mxu0 %v11780_v39 }
 0x7c4   :  { %10253 = vmatpush3.bf16.msra.mxu0 %v11785_v54 }
 0x7c5   :  { %10255 = vmatprep.subr.bf16.mxu0 %v11798_v14 }
 0x7c8   :  { %10257 = vmatpush3.bf16.msra.mxu0 %v11803_v34 }
 0x7c9   :  { %10290 = vmatprep.subr.bf16.mxu0 %v13367_v7  ;;  %v11827_v7 = vrot.slane %v94_v57, %v11339_v27  ;;  %v13494_v27 = vmov 0.0  }
 0x7cb   :  { %13492 = vst [vmem:[#allocation34_spill] sm:$0xff] %v11827_v7 }
 0x872   :  { %v11808_v1 = vpop.f32.mrb[14].mxu0 }
 0x873   :  { %v11810_v33 = vpop.f32.mrb[15].mxu0 }
 0x876   :  { %v11812_v21 = vpop.f32.mrb[16].mxu0 }
 0x877   :  { %v11814_v25 = vpop.f32.mrb[17].mxu0 }
 0x87a   :  { %v11819_v0 = vpop.f32.mrb[18].mxu0 }
 0x87b   :  { %v11824_v5 = vpop.f32.mrb[19].mxu0 }
 0x87e   :  { %v1137_v52 = vpop.f32.mrb[20].mxu0 }
 0x87f   :  { %v1213_v59 = vadd.f32 %v1137_v52, %v11560_v9  ;;  %v1475_v55 = vsub.f32 %v11565_v31, %v1137_v52  ;;  %v1139_v50 = vpop.f32.mrb[21].mxu0 }
 0x880   :  { %v1214_v45 = vadd.f32 %v1139_v50, %v11562_v12  ;;  %v1476_v44 = vsub.f32 %v11569_v32, %v1139_v50  ;;  %8716 = vmatprep.subr.msk.mxu1 %vm598_vm6, %v1139_v50 }
 0x881   :  { %v1223_v37 = vadd.f32 %v11827_v7, %v1213_v59  ;;  %8717 = vmatpush1.msk.msra.mxu1 %vm598_vm6, %v1137_v52 }
 0x882   :  { %v1224_v57 = vadd.f32 %v11830_v3, %v1214_v45  ;;  %8718 = vmatmul.mubr.msk.f32.vlgmr.msra.gmra.mrb[12].mxu1 %vm588_vm7, %v11426_v6  ;;  %8721 = vmatprep.subr.msk.mxu1 %vm598_vm6, %v11562_v12  ;;  %v13495_v12 = vmov 0.0|0.0  }
 0x883   :  { %8722 = vmatpush1.msk.msra.mxu1 %vm598_vm6, %v11560_v9  ;;  %1373 = vmatprep.mubr.f32.mxu1 %v13494_v27  ;;  %v11888_v9 = vld [vmem:[%s13355_s12 + $0x10] sm:$0x3] }
 0x884   :  { %10893 = vtanh.f32 %v1224_v57  ;;  %8726 = vmatprep.subr.msk.mxu1 %vm598_vm6, %v1476_v44  ;;  %v11878_v44 = vld [vmem:[%s13355_s12 + $0x8] sm:$0xff] }
 0x885   :  { %10895 = vtanh.f32 %v1223_v37  ;;  %v11870_v37 = vld [vmem:[%s13355_s12] sm:$0xff] }
 0x886   :  { %8719 = vmatmul.mubr.msk.f32.gmra.mrb[14].mxu1 %vm588_vm7, %v11440_v15 }
 0x887   :  { %1379 = vmatprep.mubr.f32.mxu1 %v13494_v27 }
 0x88a   :  { %8720 = vmatmul.mubr.msk.f32.gmra.mrb[16].mxu1 %vm588_vm7, %v11450_v17 }
 0x88b   :  { %1456 = vmatprep.mubr.f32.mxu1 %v13494_v27 }
 0x88e   :  { %v10894_v45 = vpop.eup %10893  ;;  %8723 = vmatmul.mubr.msk.f32.vlgmr.msra.gmra.mrb[12].mxu1 %vm588_vm7, %v11471_v26 }
 0x88f   :  { %v10896_v50 = vpop.eup %10895  ;;  %8727 = vmatpush1.msk.msra.mxu1 %vm598_vm6, %v1475_v55  ;;  %1291 = vmatprep.mubr.f32.mxu0 %v10894_v45 }
 0x890   :  { %1292 = vmatmul.mubr.f32.vlgmr.msra.gmra.mrb[22].mxu0 %v10896_v50  ;;  %1462 = vmatprep.mubr.f32.mxu1 %v13494_v27 }
 0x891   :  { %10259 = vmatprep.subr.bf16.mxu1 %v11662_v41  ;;  %9607 = vmatprep.mubr.msk.f32.mxu0 %vm11172_vm2, %v13494_v27 }
 0x892   :  { %8724 = vmatmul.mubr.msk.f32.gmra.mrb[14].mxu1 %vm588_vm7, %v11496_v35 }
 0x893   :  { %1468 = vmatprep.mubr.f32.mxu1 %v13494_v27 }
 0x896   :  { %8725 = vmatmul.mubr.msk.f32.gmra.mrb[16].mxu1 %vm588_vm7, %v11511_v38 }
 0x897   :  { %1556 = vmatprep.mubr.f32.mxu1 %v13494_v27 }
 0x89a   :  { %8728 = vmatmul.mubr.msk.f32.vlgmr.msra.gmra.mrb[12].mxu1 %vm588_vm7, %v11870_v37 }
 0x89b   :  { %1562 = vmatprep.mubr.f32.mxu1 %v13494_v27  ;;  %10261 = vmatpush3.bf16.msra.mxu1 %v11676_v58 }
 0x89c   :  { %10263 = vmatprep.subr.bf16.mxu1 %v11687_v63 }
 0x89e   :  { %8729 = vmatmul.mubr.msk.f32.gmra.mrb[14].mxu1 %vm588_vm7, %v11878_v44 }
 0x89f   :  { %1568 = vmatprep.mubr.f32.mxu1 %v13494_v27  ;;  %10265 = vmatpush3.bf16.msra.mxu1 %v11695_v4 }
 0x8a0   :  { %10267 = vmatprep.subr.bf16.mxu1 %v11705_v23 }
 0x8a2   :  { %8730 = vmatmul.mubr.msk.f32.gmra.mrb[16].mxu1 %vm588_vm7, %v11888_v9 }
 0x8a3   :  { %10269 = vmatpush3.bf16.msra.mxu1 %v11713_v40 }
 0x8a4   :  { %10271 = vmatprep.subr.bf16.mxu1 %v11723_v48 }
 0x8a7   :  { %10273 = vmatpush3.bf16.msra.mxu1 %v11731_v60 }
 0x8a8   :  { %10275 = vmatprep.subr.bf16.mxu1 %v11741_v2 }
 0x8ab   :  { %10277 = vmatpush3.bf16.msra.mxu1 %v11749_v24 }
 0x8ac   :  { %10279 = vmatprep.subr.bf16.mxu1 %v11759_v43 }
 0x8af   :  { %10281 = vmatpush3.bf16.msra.mxu1 %v11767_v62 }
 0x8b0   :  { %10283 = vmatprep.subr.bf16.mxu1 %v11780_v39 }
 0x8b3   :  { %10285 = vmatpush3.bf16.msra.mxu1 %v11785_v54 }
 0x8b4   :  { %10287 = vmatprep.subr.bf16.mxu1 %v11798_v14 }
 0x8b7   :  { %10289 = vmatpush3.bf16.msra.mxu1 %v11803_v34 }
 0x8b8   :  { %10293 = vmatprep.subr.bf16.mxu1 %v13495_v12 }
 0x963   :  { %v9014_v31 = vpop.f32.mrb[22].mxu0 }
 0x964   :  { %v9015_v32 = vpop.f32.mrb[23].mxu0 }
 0x965   :  { %v9016_v55 = vadd.f32 %v9015_v32, %v9014_v31 }
 0x967   :  { %vm1679_vm12 = vcmp.gt.f32.partialorder %v9016_v55, 0.0 }
 0x96d   :  { %v1558_v59 = vpop.f32.mrb[12].mxu1 }
 0x96e   :  { %v1581_v52 = vadd.f32 %v1558_v59, %v11827_v7  ;;  %v1560_v19 = vpop.f32.mrb[13].mxu1 }
 0x96f   :  { %v1582_v57 = vadd.f32 %v1560_v19, %v11830_v3 }
 0x970   :  { %10897 = vtanh.f32 %v1581_v52 }
 0x971   :  { %10899 = vtanh.f32 %v1582_v57  ;;  %v1564_v45 = vpop.f32.mrb[14].mxu1 }
 0x972   :  { %v1583_v50 = vadd.f32 %v1564_v45, %v11827_v7  ;;  %v1566_v54 = vpop.f32.mrb[15].mxu1 }
 0x973   :  { %v1584_v14 = vadd.f32 %v1566_v54, %v11830_v3 }
 0x974   :  { %10901 = vtanh.f32 %v1583_v50 }
 0x975   :  { %10903 = vtanh.f32 %v1584_v14  ;;  %v1570_v34 = vpop.f32.mrb[16].mxu1 }
 0x976   :  { %v1585_v39 = vadd.f32 %v1570_v34, %v11827_v7  ;;  %v1572_v31 = vpop.f32.mrb[17].mxu1 }
 0x977   :  { %v1586_v32 = vadd.f32 %v1572_v31, %v11830_v3 }
 0x978   :  { %10905 = vtanh.f32 %v1585_v39 }
 0x979   :  { %10907 = vtanh.f32 %v1586_v32 }
 0x97a   :  { %v10898_v59 = vpop.eup %10897 }
 0x97b   :  { %v10900_v19 = vpop.eup %10899  ;;  %v1593_v52 = vmul.f32 %v10898_v59, %v11808_v1  ;;  %v1680_v1 = vmul.f32 0.2, %v9016_v55 }
 0x97c   :  { %v1594_v57 = vmul.f32 %v10900_v19, %v11810_v33 }
 0x97e   :  { %v10902_v45 = vpop.eup %10901  ;;  %1663 = vmatprep.mubr.f32.mxu1 %v1594_v57 }
 0x97f   :  { %v10904_v62 = vpop.eup %10903  ;;  %1664 = vmatmul.mubr.f32.vlgmr.msra.gmra.mrb[18].mxu1 %v1593_v52  ;;  %v1595_v54 = vmul.f32 %v10902_v45, %v11812_v21  ;;  %v11920_v21 = vsel %vm1679_vm12, %v9016_v55, %v1680_v1  ;;  %vm1727_vm12 = vcmask 146432  }
 0x980   :  { %v1596_v14 = vmul.f32 %v10904_v62, %v11814_v25  ;;  %v1692_v59 = vsel %vm1691_vm13, %v11920_v21, -inf }
 0x981   :  { %v1693_v52 = vrot.slane %v1692_v59, 4 }
 0x982   :  { %v10906_v34 = vpop.eup %10905  ;;  %1668 = vmatprep.mubr.f32.mxu1 %v1596_v14 }
 0x983   :  { %v10908_v50 = vpop.eup %10907  ;;  %1669 = vmatmul.mubr.f32.gmra.mrb[20].mxu1 %v1595_v54  ;;  %v1597_v39 = vmul.f32 %v10906_v34, %v11819_v0 }
 0x984   :  { %v1598_v31 = vmul.f32 %v10908_v50, %v11824_v5 }
 0x986   :  { %1673 = vmatprep.mubr.f32.mxu1 %v1598_v31 }
 0x987   :  { %1674 = vmatmul.mubr.f32.gmra.mrb[22].mxu1 %v1597_v39  ;;  %v1694_v39 = vmax.f32 %v1692_v59, %v1693_v52 }
 0x988   :  { %9649 = vmatprep.mubr.msk.f32.mxu1 %vm11172_vm2, %v13494_v27 }
 0x989   :  { %v1695_v3 = vrot.slane %v1694_v39, 2 }
 0x98b   :  { %v1696_v43 = vmax.f32 %v1694_v39, %v1695_v3 }
 0xa52   :  { %v9049_v33 = vpop.f32.mrb[18].mxu1 }
 0xa53   :  { %v9050_v32 = vpop.f32.mrb[19].mxu1 }
 0xa54   :  { %v9051_v62 = vadd.f32 %v9050_v32, %v9049_v33 }
 0xa56   :  { %v9052_v25 = vpop.f32.mrb[20].mxu1  ;;  %v1685_v19 = vmul.f32 0.2, %v9051_v62  ;;  %vm1682_vm14 = vcmp.gt.f32.partialorder %v9051_v62, 0.0 }
 0xa57   :  { %v9053_v0 = vpop.f32.mrb[21].mxu1 }
 0xa58   :  { %v9054_v5 = vadd.f32 %v9053_v0, %v9052_v25  ;;  %v1688_v14 = vsel %vm1682_vm14, %v9051_v62, %v1685_v19  ;;  %v1697_v19 = vrot.slane %v1696_v43, 1 }
 0xa59   :  { %v1699_v1 = vsel %vm163_vm1, %v1688_v14, -inf }
 0xa5a   :  { %vm1683_vm15 = vcmp.gt.f32.partialorder %v9054_v5, 0.0  ;;  %v1686_v57 = vmul.f32 0.2, %v9054_v5  ;;  %v9055_v45 = vpop.f32.mrb[22].mxu1 }
 0xa5b   :  { %v9056_v54 = vpop.f32.mrb[23].mxu1 }
 0xa5c   :  { %v1689_v34 = vsel %vm1683_vm15, %v9054_v5, %v1686_v57  ;;  %v9057_v50 = vadd.f32 %v9056_v54, %v9055_v45  ;;  %v1698_v45 = vmax.f32 %v1696_v43, %v1697_v19  ;;  %v11932_v43 = vld [vmem:[%s13356_s13] sm:$0x3f] }
 0xa5d   :  { %v1700_v55 = vsel %vm163_vm1, %v1689_v34, -inf }
 0xa5e   :  { %vm1684_vm9 = vcmp.gt.f32.partialorder %v9057_v50, 0.0  ;;  %v1687_v31 = vmul.f32 0.2, %v9057_v50  ;;  %v1703_v33 = vmax.f32 %v1699_v1, %v1700_v55 }
 0xa60   :  { %v1690_v32 = vsel %vm1684_vm9, %v9057_v50, %v1687_v31 }
 0xa61   :  { %v1702_v25 = vsel %vm1701_vm10, %v1690_v32, -inf }
 0xa62   :  { %v1704_v0 = vmax.f32 %v1703_v33, %v1702_v25 }
 0xa64   :  { %v1705_v7 = vrot.slane %v1704_v0, 4 }
 0xa66   :  { %v1706_v24 = vmax.f32 %v1704_v0, %v1705_v7 }
 0xa68   :  { %v1707_v62 = vrot.slane %v1706_v24, 2 }
 0xa6a   :  { %v1708_v5 = vmax.f32 %v1706_v24, %v1707_v62 }
 0xa6c   :  { %v1709_v57 = vrot.slane %v1708_v5, 1 }
 0xa6e   :  { %v1710_v59 = vmax.f32 %v1708_v5, %v1709_v57 }
 0xa70   :  { %v1711_v52 = vmax.f32 %v1698_v45, %v1710_v59  ;;  %v1913_v45 = vpop.permute.xlu0 %1912 }
 0xa72   :  { %v1712_v54 = vsel %vm163_vm1, %v1711_v52, -inf }
 0xa73   :  { %1713 = vmax.xlane.f32.xlu1 %v1712_v54 }
 0xb00   :  { %v1714_v2 = vpop.xlane.xlu1 %1713 }
 0xb01   :  { %v1718_v55 = vsub.f32 %v1688_v14, %v1714_v2  ;;  %v1719_v50 = vsub.f32 %v1689_v34, %v1714_v2  ;;  %v1720_v33 = vsub.f32 %v1690_v32, %v1714_v2  ;;  %v1715_v34 = vsub.f32 %v11920_v21, %v1714_v2 }
 0xb03   :  { %v1721_v31 = vmul.f32 1.442695, %v1718_v55  ;;  %v1723_v1 = vmul.f32 1.442695, %v1719_v50  ;;  %v1725_v3 = vmul.f32 1.442695, %v1720_v33 }
 0xb04   :  { %v1716_v32 = vmul.f32 1.442695, %v1715_v34 }
 0xb05   :  { %10909 = vpow2.f32 %v1721_v31 }
 0xb06   :  { %10911 = vpow2.f32 %v1723_v1 }
 0xb07   :  { %10913 = vpow2.f32 %v1725_v3 }
 0xb08   :  { %10915 = vpow2.f32 %v1716_v32  ;;  %v2164_v32 = vsub.s32 5, %v11323_v18 }
 0xb0f   :  { %v10910_v7 = vpop.eup %10909 }
 0xb10   :  { %v10912_v39 = vpop.eup %10911 }
 0xb11   :  { %v10291_v24 = vpack.c.bf16 %v10912_v39, %v10910_v7  ;;  %v10914_v14 = vpop.eup %10913 }
 0xb12   :  { %v10916_v25 = vpop.eup %10915 }
 0xb13   :  { %10292 = vmatpush3.bf16.msra.mxu0 %v10291_v24 }
 0xb14   :  { %9605 = vmatprep.subr.mxu0 %v13494_v27 }
 0xb17   :  { %9606 = vmatpush3.msk.msra.mxu0 %vm1731_vm11, %v10914_v14 }
 0xb18   :  { %9608 = vmatmul.mubr.msk.f32.vlgmr.msra.gmra.mrb[24].mxu0 %vm1727_vm12, %v11932_v43  ;;  %9610 = vmatprep.subr.mxu0 %v13494_v27 }
 0xb19   :  { %9612 = vmatprep.mubr.msk.f32.mxu0 %vm11172_vm2, %v13494_v27 }
 0xbeb   :  { %v1801_v0 = vpop.f32.mrb[24].mxu0 }
 0xbec   :  { %v1805_v62 = vadd.f32 %v10916_v25, %v1801_v0  ;;  %v9609_v19 = vpop.f32.mrb[25].mxu0  ;;  %v60_v0 = vld [vmem:[%s13345_s2 + $0x48] sm:$0xff] }
 0xbed   :  { %v62_v19 = vld [vmem:[%s13345_s2 + $0x58] sm:$0xff] }
 0xbee   :  { %10917 = vrcp.f32 %v1805_v62  ;;  %v61_v62 = vld [vmem:[%s13345_s2 + $0x50] sm:$0xff] }
 0xbf8   :  { %v10918_v5 = vpop.eup %10917 }
 0xbf9   :  { %9611 = vmatpush3.msk.msra.mxu0 %vm598_vm6, %v10918_v5  ;;  %v1808_v57 = vmul.f32 %v10918_v5, %v10916_v25  ;;  %v59_v25 = vld [vmem:[%s13345_s2 + $0x40] sm:$0xff] }
 0xbfa   :  { %9613 = vmatmul.mubr.msk.f32.vlgmr.msra.gmra.mrb[26].mxu0 %vm588_vm7, %v11471_v26  ;;  %9621 = vmatprep.subr.mxu0 %v13494_v27  ;;  %v11107_v5 = vld [vmem:[%s13346_s3] sm:$0x3f] }
 0xbfb   :  { %9622 = vmatpush3.msk.msra.mxu0 %vm598_vm6, %v1913_v45  ;;  %9615 = vmatprep.mubr.msk.f32.mxu0 %vm11172_vm2, %v13494_v27  ;;  %v12016_v45 = vpack.c.bf16 %v62_v19, %v61_v62 }
 0xbfc   :  { %9632 = vmatprep.subr.mxu0 %v13494_v27 }
 0xbfe   :  { %9616 = vmatmul.mubr.msk.f32.gmra.mrb[28].mxu0 %vm588_vm7, %v11496_v35 }
 0xbff   :  { %9618 = vmatprep.mubr.msk.f32.mxu0 %vm11172_vm2, %v13494_v27 }
 0xc02   :  { %9619 = vmatmul.mubr.msk.f32.gmra.mrb[30].mxu0 %vm588_vm7, %v11511_v38 }
 0xc03   :  { %9623 = vmatprep.mubr.msk.f32.mxu0 %vm11172_vm2, %v13494_v27 }
 0xc06   :  { %9624 = vmatmul.mubr.msk.f32.vlgmr.msra.gmra.mrb[32].mxu0 %vm588_vm7, %v11870_v37 }
 0xc07   :  { %9633 = vmatpush3.msk.msra.mxu0 %vm598_vm6, %v11388_v53  ;;  %9626 = vmatprep.mubr.msk.f32.mxu0 %vm11172_vm2, %v13494_v27 }
 0xc08   :  { %10296 = vmatprep.subr.bf16.mxu0 %v13495_v12 }
 0xc0a   :  { %9627 = vmatmul.mubr.msk.f32.gmra.mrb[34].mxu0 %vm588_vm7, %v11878_v44  ;;  %v1809_v44 = vsel %vm1691_vm13, %v1808_v57, 0.0  ;;  %v12013_v57 = vrot.slane %v11107_v5, %v2164_v32 }
 0xc0b   :  { %9629 = vmatprep.mubr.msk.f32.mxu0 %vm11172_vm2, %v13494_v27 }
 0xc0e   :  { %9630 = vmatmul.mubr.msk.f32.gmra.mrb[36].mxu0 %vm588_vm7, %v11888_v9 }
 0xc0f   :  { %9634 = vmatprep.mubr.msk.f32.mxu0 %vm11172_vm2, %v13494_v27 }
 0xc12   :  { %9635 = vmatmul.mubr.msk.f32.vlgmr.msra.gmra.mrb[32].mxu0 %vm588_vm7, %v11426_v6 }
 0xc13   :  { %9637 = vmatprep.mubr.msk.f32.mxu0 %vm11172_vm2, %v13494_v27 }
 0xc16   :  { %9638 = vmatmul.mubr.msk.f32.gmra.mrb[34].mxu0 %vm588_vm7, %v11440_v15 }
 0xc17   :  { %9640 = vmatprep.mubr.msk.f32.mxu0 %vm11172_vm2, %v13494_v27 }
 0xc1a   :  { %9641 = vmatmul.mubr.msk.f32.gmra.mrb[36].mxu0 %vm588_vm7, %v11450_v17 }
 0xc1b   :  { %9668 = vmatprep.mubr.msk.f32.mxu0 %vm11172_vm2, %v13494_v27 }
 0xccd   :  { %v1881_v53 = vpop.f32.mrb[26].mxu0 }
 0xcce   :  { %v1895_v26 = vmul.f32 %v10910_v7, %v1881_v53  ;;  %v9614_v35 = vpop.f32.mrb[27].mxu0  ;;  %v63_v53 = vld [vmem:[%s13345_s2 + $0x60] sm:$0xff] }
 0xcd0   :  { %v1898_v6 = vsel %vm163_vm1, %v1895_v26, 0.0  ;;  %v64_v26 = vld [vmem:[%s13345_s2 + $0x68] sm:$0xff] }
 0xcd1   :  { %1899 = vadd.xlane.f32.xlu0 %v1898_v6  ;;  %v1886_v38 = vpop.f32.mrb[28].mxu0  ;;  %v12029_v35 = vpack.c.bf16 %v64_v26, %v63_v53  ;;  %v65_v6 = vld [vmem:[%s13345_s2 + $0x70] sm:$0xff]  ;;  %v73_v26 = vld [vmem:[%s13348_s5] sm:$0xff] }
 0xcd2   :  { %v1896_v2 = vmul.f32 %v10912_v39, %v1886_v38  ;;  %v9617_v37 = vpop.f32.mrb[29].mxu0  ;;  %v66_v38 = vld [vmem:[%s13345_s2 + $0x78] sm:$0xff] }
 0xcd4   :  { %v1901_v15 = vsel %vm163_vm1, %v1896_v2, 0.0  ;;  %v12039_v2 = vpack.c.bf16 %v66_v38, %v65_v6  ;;  %v74_v6 = vld [vmem:[%s13348_s5 + $0x8] sm:$0xff]  ;;  %v75_v38 = vld [vmem:[%s13348_s5 + $0x10] sm:$0xff] }
 0xcd5   :  { %1902 = vadd.xlane.f32.xlu1 %v1901_v15  ;;  %v1891_v9 = vpop.f32.mrb[30].mxu0  ;;  %1810 = vadd.xlane.f32.xlu0 %v1809_v44 }
 0xcd6   :  { %v1897_v17 = vmul.f32 %v10914_v14, %v1891_v9  ;;  %v9620_v21 = vpop.f32.mrb[31].mxu0  ;;  %v11108_v9 = vld [vmem:[%s13343_s0] sm:$0x3f] }
 0xcd8   :  { %v1904_v59 = vsel %vm1701_vm10, %v1897_v17, 0.0 }
 0xcd9   :  { %1905 = vadd.xlane.f32.xlu1 %v1904_v59 }
 0xce5   :  { %v2064_v52 = vpop.f32.mrb[32].mxu0 }
 0xce6   :  { %v9636_v54 = vpop.f32.mrb[33].mxu0 }
 0xce9   :  { %v2069_v55 = vpop.f32.mrb[34].mxu0 }
 0xcea   :  { %v9639_v50 = vpop.f32.mrb[35].mxu0 }
 0xceb   :  { %2167 = vrot.lane.b32.xlu0 %v12013_v57, %s11173_s19 }
 0xced   :  { %v2074_v31 = vpop.f32.mrb[36].mxu0 }
 0xcee   :  { %v9642_v1 = vpop.f32.mrb[37].mxu0 }
 0xd5e   :  { %v1900_v33 = vpop.xlane.xlu0 %1899 }
 0xd5f   :  { %v2079_v7 = vmul.f32 %v2064_v52, %v1900_v33  ;;  %v2174_v33 = vsub.s32 1, %v11323_v18 }
 0xd62   :  { %v1903_v3 = vpop.xlane.xlu1 %1902  ;;  %v1811_v44 = vpop.xlane.xlu0 %1810 }
 0xd63   :  { %v2080_v39 = vmul.f32 %v2069_v55, %v1903_v3  ;;  %v2078_v17 = vmul.f32 %v11108_v9, %v1811_v44  ;;  %v11109_v3 = vld [vmem:[%s13345_s2 + $0x80] sm:$0x3] }
 0xd65   :  { %v10294_v24 = vpack.c.bf16 %v2080_v39, %v2079_v7  ;;  %v12059_v7 = vrot.slane %v11109_v3, %v2174_v33 }
 0xd66   :  { %v1906_v34 = vpop.xlane.xlu1 %1905  ;;  %v2168_v54 = vpop.permute.xlu0 %2167 }
 0xd67   :  { %10295 = vmatpush3.bf16.msra.mxu1 %v10294_v24  ;;  %v2081_v14 = vmul.f32 %v2074_v31, %v1906_v34  ;;  %v13496_v31 = vmax.f32 %v11329_v22, 0.0 }
 0xd68   :  { %9647 = vmatprep.subr.mxu1 %v13494_v27 }
 0xd6b   :  { %9648 = vmatpush3.msk.msra.mxu1 %vm1731_vm11, %v2081_v14 }
 0xd6c   :  { %9650 = vmatmul.mubr.msk.f32.vlgmr.msra.gmra.mrb[24].mxu1 %vm1727_vm12, %v11932_v43  ;;  %10308 = vmatprep.subr.bf16.mxu1 %v13495_v12  ;;  %v12005_v43 = vpack.c.bf16 %v60_v0, %v59_v25 }
 0xd6d   :  { %9679 = vmatprep.mubr.msk.f32.mxu1 %vm11172_vm2, %v13494_v27 }
 0xd6e   :  { %10298 = vmatpush3.bf16.msra.mxu0 %v12005_v43 }
 0xd6f   :  { %10299 = vmatprep.subr.bf16.mxu0 %v13495_v12 }
 0xd72   :  { %10301 = vmatpush3.bf16.msra.mxu0 %v12016_v45 }
 0xd73   :  { %10302 = vmatprep.subr.bf16.mxu0 %v13495_v12 }
 0xd76   :  { %10304 = vmatpush3.bf16.msra.mxu0 %v12029_v35 }
 0xd77   :  { %10305 = vmatprep.subr.bf16.mxu0 %v13495_v12 }
 0xd7a   :  { %10307 = vmatpush3.bf16.msra.mxu0 %v12039_v2 }
 0xd7b   :  { %9682 = vmatprep.subr.mxu0 %v13494_v27 }
 0xe3f   :  { %v2151_v37 = vpop.f32.mrb[24].mxu1 }
 0xe40   :  { %2156 = vrot.lane.b32.xlu1 %v2151_v37, %s11173_s19  ;;  %v9651_v15 = vpop.f32.mrb[25].mxu1  ;;  %v12076_v37 = vpack.c.bf16 %v74_v6, %v73_v26 }
 0xe41   :  { %v76_v15 = vld [vmem:[%s13348_s5 + $0x18] sm:$0xff] }
 0xe42   :  { %10310 = vmatpush3.bf16.msra.mxu1 %v12076_v37  ;;  %v12082_v44 = vpack.c.bf16 %v76_v15, %v75_v38 }
 0xe43   :  { %10311 = vmatprep.subr.bf16.mxu1 %v13495_v12 }
 0xe46   :  { %10313 = vmatpush3.bf16.msra.mxu1 %v12082_v44 }
 0xe47   :  { %10314 = vmatprep.subr.bf16.mxu1 %v13495_v12 }
 0xeb2   :  { %v2157_v21 = vpop.permute.xlu1 %2156 }
 0xeb3   :  { %v2159_v59 = vadd.f32 %v2157_v21, %v2078_v17 }
 0xeb5   :  { %v2160_v52 = vmul.f32 0.25, %v2159_v59 }
 0xeb7   :  { %v2161_v55 = vmax.f32 %v2160_v52, 0.0 }
 0xeb9   :  { %v2170_v50 = vadd.f32 %v2168_v54, %v2161_v55 }
 0xebb   :  { %v2171_v1 = vsel %vm246_vm3, %v13496_v31, %v2170_v50  ;;  %v11110_v50 = vld [vmem:[%s13344_s1] sm:$0x3f] }
 0xebc   :  { %9669 = vmatmul.mubr.msk.f32.vlgmr.msra.gmra.mrb[38].mxu0 %vm252_vm4, %v2171_v1 }
 0xebd   :  { %9683 = vmatpush3.msk.msra.mxu0 %vm167_vm0, %v11107_v5  ;;  %9684 = vmatprep.mubr.msk.f32.mxu0 %vm11172_vm2, %v13494_v27 }
 0xebe   :  { %10326 = vmatprep.subr.bf16.mxu0 %v13495_v12 }
 0xf8f   :  { %v2245_v22 = vpop.f32.mrb[38].mxu0 }
 0xf90   :  { %v2246_v39 = vadd.f32 %v2245_v22, %v12059_v7  ;;  %v9670_v24 = vpop.f32.mrb[39].mxu0 }
 0xf92   :  { %10919 = vtanh.f32 %v2246_v39  ;;  %v8748_v14 = vmul.f32 -1.442695, %v2246_v39 }
 0xf94   :  { %10921 = vpow2.f32 %v8748_v14 }
 0xf9c   :  { %v10920_v34 = vpop.eup %10919 }
 0xf9d   :  { %2258 = vrot.lane.b32.xlu1 %v10920_v34, %s11175_s23 }
 0xf9e   :  { %v10922_v32 = vpop.eup %10921 }
 0xf9f   :  { %v2252_v25 = vadd.f32 1.0, %v10922_v32 }
 0xfa1   :  { %10923 = vrcp.f32 %v2252_v25 }
 0xfab   :  { %v10924_v18 = vpop.eup %10923 }
 0xfac   :  { %v2256_v19 = vmul.f32 0.0, %v10924_v18 }
0x100f   :  { %v2259_v0 = vpop.permute.xlu1 %2258 }
0x1010   :  { %v2261_v62 = vmul.f32 %v10924_v18, %v2259_v0 }
0x1012   :  { %2263 = vrot.lane.b32.xlu1 %v2261_v62, %s11173_s19 }
0x1084   :  { %v2264_v5 = vpop.permute.xlu1 %2263 }
0x1085   :  { %v12064_v53 = vadd.f32 %v2264_v5, %v2256_v19 }
0x1087   :  { %10925 = vtanh.f32 %v12064_v53 }
0x1091   :  { %v10926_v9 = vpop.eup %10925 }
0x1092   :  { %2269 = vrot.lane.b32.xlu0 %v10926_v9, %s11175_s23 }
0x1104   :  { %v2270_v17 = vpop.permute.xlu0 %2269 }
0x1105   :  { %v12088_v21 = vmul.f32 %v10924_v18, %v2270_v17 }
0x1107   :  { %2278 = vrot.lane.b32.xlu1 %v12088_v21, %s11173_s19 }
0x110b   :  { %2432 = vrot.lane.b32.xlu1 %v11374_v51, %s11175_s23  ;;  %v12111_v51 = vld [vmem:[%s13348_s5 + $0x20] ss:$0 sm:$0xff] }
0x1179   :  { %v12094_v59 = vpop.permute.xlu1 %2278 }
0x117a   :  { %9680 = vmatmul.mubr.msk.f32.vlgmr.msra.gmra.mrb[26].mxu1 %vm246_vm3, %v12094_v59 }
0x117b   :  { %10316 = vmatpush3.bf16.msra.mxu1 %v11287_v8  ;;  %9703 = vmatprep.mubr.msk.f32.mxu1 %vm11172_vm2, %v13494_v27 }
0x117c   :  { %10317 = vmatprep.subr.bf16.mxu1 %v13495_v12 }
0x117d   :  { %v2433_v34 = vpop.permute.xlu1 %2432 }
0x117f   :  { %10319 = vmatpush3.bf16.msra.mxu1 %v11296_v10 }
0x1180   :  { %10320 = vmatprep.subr.bf16.mxu1 %v13495_v12 }
0x1183   :  { %10322 = vmatpush3.bf16.msra.mxu1 %v11308_v13 }
0x1184   :  { %10323 = vmatprep.subr.bf16.mxu1 %v13495_v12 }
0x1187   :  { %10325 = vmatpush3.bf16.msra.mxu1 %v11319_v16 }
0x1188   :  { %9727 = vmatprep.subr.mxu1 %v13494_v27 }
0x124d   :  { %v2348_v52 = vpop.f32.mrb[26].mxu1 }
0x124e   :  { %v12114_v54 = vadd.f32 %v12111_v51, %v2348_v52  ;;  %v9681_v55 = vpop.f32.mrb[27].mxu1 }
0x1250   :  { %13497 = vst [vmem:[#allocation36_spill] sm:$0xff] %v12114_v54  ;;  %2354 = vrot.lane.b32.xlu0 %v12114_v54, %s11177_s22  ;;  %v12122_v31 = vadd.f32 %v11110_v50, %v12114_v54 }
0x12c2   :  { %v2355_v1 = vpop.permute.xlu0 %2354 }
0x12c3   :  { %v2357_v33 = vsel %vm433_vm5, %v12122_v31, %v2355_v1 }
0x12c4   :  { %9685 = vmatmul.mubr.msk.f32.vlgmr.msra.gmra.mrb[40].mxu0 %vm163_vm1, %v2357_v33 }
0x12c5   :  { %10328 = vmatpush3.bf16.msra.mxu0 %v11362_v46  ;;  %9714 = vmatprep.mubr.msk.f32.mxu0 %vm11172_vm2, %v13494_v27 }
0x12c6   :  { %10329 = vmatprep.subr.bf16.mxu0 %v13495_v12 }
0x12c9   :  { %10331 = vmatpush3.bf16.msra.mxu0 %v11369_v49 }
0x12ca   :  { %9717 = vmatprep.subr.mxu0 %v13494_v27 }
0x1397   :  { %v2427_v3 = vpop.f32.mrb[40].mxu0 }
0x1398   :  { %v12134_v22 = vadd.f32 %v2427_v3, %v11326_v20  ;;  %v9686_v39 = vpop.f32.mrb[41].mxu0  ;;  %v12169_v3 = vld [vmem:[%s13347_s4 + $0x20] ss:$0 sm:$0xff]  ;;  %v13523_v20 = vld [vmem:[#allocation35_spill] sm:$0xff] }
0x1399   :  { %13500 = vst [vmem:[#allocation39_spill] sm:$0xff] %v12169_v3 }
0x139a   :  { %v13405_v24 = vmax.f32 %v12134_v22, 0.0 }
0x139c   :  { %v2435_v14 = vsel %vm246_vm3, %v13405_v24, %v2433_v34 }
0x139d   :  { %9704 = vmatmul.mubr.msk.f32.vlgmr.msra.gmra.mrb[28].mxu1 %vm252_vm4, %v2435_v14 }
0x139e   :  { %9729 = vmatprep.mubr.msk.f32.mxu1 %vm11172_vm2, %v13494_v27 }
0x1470   :  { %v2505_v32 = vpop.f32.mrb[28].mxu1 }
0x1471   :  { %v2506_v25 = vadd.f32 %v2505_v32, %v11345_v29  ;;  %v9705_v18 = vpop.f32.mrb[29].mxu1 }
0x1473   :  { %10927 = vtanh.f32 %v2506_v25  ;;  %v8754_v62 = vmul.f32 -1.442695, %v2506_v25 }
0x1475   :  { %10929 = vpow2.f32 %v8754_v62 }
0x147d   :  { %v10928_v0 = vpop.eup %10927 }
0x147e   :  { %2518 = vrot.lane.b32.xlu0 %v10928_v0, %s11175_s23 }
0x147f   :  { %v10930_v19 = vpop.eup %10929 }
0x1480   :  { %v2512_v5 = vadd.f32 1.0, %v10930_v19  ;;  %v12192_v19 = vld [vmem:[%s13351_s8 + $0x8] ss:$0 sm:$0xff] }
0x1481   :  { %13501 = vst [vmem:[#allocation40_spill] sm:$0xff] %v12192_v19 }
0x1482   :  { %10931 = vrcp.f32 %v2512_v5 }
0x148c   :  { %v10932_v26 = vpop.eup %10931 }
0x148d   :  { %v2516_v15 = vmul.f32 %v10932_v26, %v11350_v42  ;;  %v12159_v42 = vld [vmem:[%s13351_s8] sm:$0xff] }
0x148e   :  { %13499 = vst [vmem:[#allocation38_spill] sm:$0xff] %v12159_v42 }
0x14f0   :  { %v2519_v6 = vpop.permute.xlu0 %2518 }
0x14f1   :  { %v2521_v38 = vmul.f32 %v10932_v26, %v2519_v6  ;;  %v12199_v6 = vld [vmem:[%s13354_s11] sm:$0xff] }
0x14f3   :  { %2523 = vrot.lane.b32.xlu1 %v2521_v38, %s11173_s19  ;;  %v12211_v38 = vld [vmem:[%s13354_s11 + $0x8] sm:$0xff] }
0x1565   :  { %v2524_v9 = vpop.permute.xlu1 %2523 }
0x1566   :  { %v12147_v17 = vadd.f32 %v2524_v9, %v2516_v15  ;;  %v12220_v15 = vld [vmem:[%s13354_s11 + $0x10] sm:$0x3]  ;;  %v12229_v9 = vld [vmem:[%s13353_s10] sm:$0xff] }
0x1568   :  { %13498 = vst [vmem:[#allocation37_spill] sm:$0xff] %v12147_v17  ;;  %10933 = vtanh.f32 %v12147_v17  ;;  %v13522_v17 = vld [vmem:[#allocation34_spill] sm:$0xff] }
0x1572   :  { %v10934_v52 = vpop.eup %10933 }
0x1573   :  { %2529 = vrot.lane.b32.xlu0 %v10934_v52, %s11175_s23  ;;  %v12240_v52 = vld [vmem:[%s13353_s10 + $0x8] sm:$0xff] }
0x15e5   :  { %v2530_v55 = vpop.permute.xlu0 %2529 }
0x15e6   :  { %v12151_v50 = vmul.f32 %v10932_v26, %v2530_v55  ;;  %v13502_v55 = vld [vmem:[#allocation13_spill] sm:$0xff] }
0x15e8   :  { %2534 = vrot.lane.b32.xlu1 %v12151_v50, %s11173_s19  ;;  %v4022_v14 = vsub.f32 %v12151_v50, %v12088_v21 }
0x165a   :  { %v2535_v1 = vpop.permute.xlu1 %2534 }
0x165b   :  { %9715 = vmatmul.mubr.msk.f32.vlgmr.msra.gmra.mrb[42].mxu0 %vm246_vm3, %v2535_v1 }
0x165c   :  { %9718 = vmatpush3.msk.msra.mxu0 %vm167_vm0, %v12159_v42  ;;  %9719 = vmatprep.mubr.msk.f32.mxu0 %vm11172_vm2, %v13494_v27 }
0x165d   :  { %9722 = vmatprep.subr.mxu0 %v13494_v27 }
0x172e   :  { %v2604_v33 = vpop.f32.mrb[42].mxu0 }
0x172f   :  { %v2605_v39 = vadd.f32 %v12169_v3, %v2604_v33  ;;  %v9716_v34 = vpop.f32.mrb[43].mxu0  ;;  %v12251_v33 = vld [vmem:[%s13353_s10 + $0x10] sm:$0x3] }
0x1730   :  { %v13504_v34 = vld [vmem:[#allocation15_spill] sm:$0xff] }
0x1731   :  { %2609 = vrot.lane.b32.xlu0 %v2605_v39, %s11177_s22  ;;  %v13503_v39 = vld [vmem:[#allocation14_spill] sm:$0xff] }
0x1735   :  { %4024 = vrot.lane.b32.xlu0 %v4022_v14, %s11173_s19  ;;  %v13505_v14 = vld [vmem:[#allocation16_spill] sm:$0xff] }
0x17a3   :  { %v2610_v32 = vpop.permute.xlu0 %2609 }
0x17a4   :  { %v2612_v25 = vsel %vm433_vm5, %v12122_v31, %v2610_v32 }
0x17a5   :  { %9720 = vmatmul.mubr.msk.f32.vlgmr.msra.gmra.mrb[44].mxu0 %vm163_vm1, %v2612_v25 }
0x17a6   :  { %9723 = vmatpush3.msk.msra.mxu0 %vm167_vm0, %v11401_v61  ;;  %9724 = vmatprep.mubr.msk.f32.mxu0 %vm11172_vm2, %v13494_v27 }
0x17a7   :  { %10332 = vmatprep.subr.bf16.mxu0 %v13495_v12 }
0x17a9   :  { %9725 = vmatmul.mubr.msk.f32.vlgmr.msra.gmra.mrb[46].mxu0 %vm163_vm1, %v2612_v25 }
0x17aa   :  { %10334 = vmatpush3.bf16.msra.mxu0 %v11557_v56  ;;  %9753 = vmatprep.mubr.msk.f32.mxu0 %vm11172_vm2, %v13494_v27 }
0x17ab   :  { %10336 = vmatprep.subr.bf16.mxu0 %v11582_v47 }
0x1878   :  { %v2682_v18 = vpop.f32.mrb[44].mxu0 }
0x1879   :  { %v9721_v0 = vpop.f32.mrb[45].mxu0  ;;  %v2683_v5 = vadd.f32 %v12192_v19, %v2682_v18 }
0x187c   :  { %v2752_v62 = vpop.f32.mrb[46].mxu0 }
0x187d   :  { %v9726_v26 = vpop.f32.mrb[47].mxu0  ;;  %9728 = vmatpush3.msk.msra.mxu1 %vm598_vm6, %v2752_v62 }
0x187e   :  { %9730 = vmatmul.mubr.msk.f32.vlgmr.msra.gmra.mrb[30].mxu1 %vm588_vm7, %v12199_v6  ;;  %9738 = vmatprep.subr.mxu1 %v13494_v27 }
0x187f   :  { %9739 = vmatpush3.msk.msra.mxu1 %vm598_vm6, %v2683_v5  ;;  %9732 = vmatprep.mubr.msk.f32.mxu1 %vm11172_vm2, %v13494_v27 }
0x1880   :  { %10352 = vmatprep.subr.bf16.mxu1 %v11428_v11 }
0x1882   :  { %9733 = vmatmul.mubr.msk.f32.gmra.mrb[32].mxu1 %vm588_vm7, %v12211_v38 }
0x1883   :  { %9735 = vmatprep.mubr.msk.f32.mxu1 %vm11172_vm2, %v13494_v27 }
0x1886   :  { %9736 = vmatmul.mubr.msk.f32.gmra.mrb[34].mxu1 %vm588_vm7, %v12220_v15 }
0x1887   :  { %9740 = vmatprep.mubr.msk.f32.mxu1 %vm11172_vm2, %v13494_v27 }
0x188a   :  { %9741 = vmatmul.mubr.msk.f32.vlgmr.msra.gmra.mrb[30].mxu1 %vm588_vm7, %v12229_v9 }
0x188b   :  { %9743 = vmatprep.mubr.msk.f32.mxu1 %vm11172_vm2, %v13494_v27  ;;  %10354 = vmatpush1.bf16.msra.mxu1 %v11473_v28 }
0x188c   :  { %10356 = vmatprep.subr.bf16.mxu1 %v11475_v30 }
0x188e   :  { %9744 = vmatmul.mubr.msk.f32.gmra.mrb[32].mxu1 %vm588_vm7, %v12240_v52 }
0x188f   :  { %9746 = vmatprep.mubr.msk.f32.mxu1 %vm11172_vm2, %v13494_v27  ;;  %10358 = vmatpush1.bf16.msra.mxu1 %v11499_v36 }
0x1890   :  { %10368 = vmatprep.subr.bf16.mxu1 %v13502_v55 }
0x1892   :  { %9747 = vmatmul.mubr.msk.f32.gmra.mrb[34].mxu1 %vm588_vm7, %v12251_v33 }
0x1893   :  { %3203 = vmatprep.mubr.f32.mxu1 %v13494_v27 }
0x1896   :  { %8780 = vmatmul.mubr.msk.f32.vlgmr.msra.gmra.mrb[36].mxu1 %vm246_vm3, %v12094_v59 }
0x1897   :  { %10370 = vmatpush1.bf16.msra.mxu1 %v13503_v39  ;;  %3345 = vmatprep.mubr.f32.mxu1 %v13494_v27 }
0x1898   :  { %10372 = vmatprep.subr.bf16.mxu1 %v13504_v34 }
0x189b   :  { %10374 = vmatpush1.bf16.msra.mxu1 %v13505_v14 }
0x189e   :  { %8782 = vmatmul.mubr.msk.f32.vlgmr.msra.gmra.mrb[38].mxu1 %vm246_vm3, %v2535_v1 }
0x189f   :  { %3498 = vmatprep.mubr.f32.mxu1 %v13494_v27 }
0x195d   :  { %v2908_v32 = vpop.f32.mrb[30].mxu1 }
0x195e   :  { %v2925_v25 = vmin.f32 %v2908_v32, 0.0  ;;  %v9742_v18 = vpop.f32.mrb[31].mxu1  ;;  %vm2922_vm14 = vcmp.gt.f32.partialorder %v2908_v32, 0.0 }
0x1960   :  { %v2928_v0 = vmul.f32 1.442695, %v2925_v25 }
0x1961   :  { %v2913_v62 = vpop.f32.mrb[32].mxu1 }
0x1962   :  { %10935 = vpow2.f32 %v2928_v0  ;;  %v2926_v5 = vmin.f32 %v2913_v62, 0.0  ;;  %v9745_v26 = vpop.f32.mrb[33].mxu1  ;;  %vm2923_vm15 = vcmp.gt.f32.partialorder %v2913_v62, 0.0 }
0x1964   :  { %v2930_v24 = vmul.f32 1.442695, %v2926_v5  ;;  %v13509_v5 = vld [vmem:[#allocation22_spill] sm:$0xff] }
0x1965   :  { %v2918_v54 = vpop.f32.mrb[34].mxu1 }
0x1966   :  { %10937 = vpow2.f32 %v2930_v24  ;;  %v2927_v36 = vmin.f32 %v2918_v54, 0.0  ;;  %v9748_v30 = vpop.f32.mrb[35].mxu1  ;;  %vm2924_vm9 = vcmp.gt.f32.partialorder %v2918_v54, 0.0 }
0x1967   :  { %v13506_v30 = vld [vmem:[#allocation19_spill] sm:$0xff] }
0x1968   :  { %v2932_v28 = vmul.f32 1.442695, %v2927_v36 }
0x1969   :  { %v12264_v11 = vpop.f32.mrb[36].mxu1 }
0x196a   :  { %10939 = vpow2.f32 %v2932_v28  ;;  %v12266_v1 = vpop.f32.mrb[37].mxu1  ;;  %v13507_v28 = vld [vmem:[#allocation20_spill] sm:$0xff] }
0x196c   :  { %v10936_v19 = vpop.eup %10935 }
0x196d   :  { %v8768_v47 = vadd.f32 -1.0, %v10936_v19 }
0x196f   :  { %v2937_v18 = vsel %vm2922_vm14, %v2908_v32, %v8768_v47  ;;  %v13508_v32 = vld [vmem:[#allocation21_spill] sm:$0xff] }
0x1970   :  { %v10938_v25 = vpop.eup %10937  ;;  %9754 = vmatmul.mubr.msk.f32.vlgmr.msra.gmra.mrb[48].mxu0 %vm796_vm8, %v2937_v18 }
0x1971   :  { %v8769_v0 = vadd.f32 -1.0, %v10938_v25  ;;  %v12269_v26 = vpop.f32.mrb[38].mxu1  ;;  %9756 = vmatprep.mubr.msk.f32.mxu0 %vm11172_vm2, %v13494_v27  ;;  %10338 = vmatpush1.bf16.msra.mxu0 %v13506_v30  ;;  %v13510_v25 = vld [vmem:[#allocation23_spill] sm:$0xff] }
0x1972   :  { %v12274_v36 = vpop.f32.mrb[39].mxu1  ;;  %10340 = vmatprep.subr.bf16.mxu0 %v13507_v28 }
0x1973   :  { %v2938_v24 = vsel %vm2923_vm15, %v2913_v62, %v8769_v0  ;;  %v13511_v62 = vld [vmem:[#allocation24_spill] sm:$0xff]  ;;  %v13512_v0 = vld [vmem:[#allocation25_spill] sm:$0xff] }
0x1974   :  { %v10940_v19 = vpop.eup %10939  ;;  %9757 = vmatmul.mubr.msk.f32.gmra.mrb[50].mxu0 %vm796_vm8, %v2938_v24 }
0x1975   :  { %v8770_v47 = vadd.f32 -1.0, %v10940_v19  ;;  %9759 = vmatprep.mubr.msk.f32.mxu0 %vm11172_vm2, %v13494_v27  ;;  %10342 = vmatpush1.bf16.msra.mxu0 %v13508_v32  ;;  %v12291_v19 = vld [vmem:[%s13352_s9 + $0x10] ss:$0 sm:$0xff] }
0x1976   :  { %10344 = vmatprep.subr.bf16.mxu0 %v13509_v5  ;;  %13513 = vst [vmem:[#allocation41_spill] sm:$0xff] %v12291_v19 }
0x1977   :  { %v2939_v18 = vsel %vm2924_vm9, %v2918_v54, %v8770_v47 }
0x1978   :  { %9760 = vmatmul.mubr.msk.f32.gmra.mrb[52].mxu0 %vm796_vm8, %v2939_v18 }
0x1979   :  { %10346 = vmatpush1.bf16.msra.mxu0 %v13510_v25  ;;  %3120 = vmatprep.mubr.f32.mxu0 %v13494_v27 }
0x197a   :  { %10348 = vmatprep.subr.bf16.mxu0 %v13511_v62 }
0x197d   :  { %10350 = vmatpush1.bf16.msra.mxu0 %v13512_v0 }
0x197e   :  { %10360 = vmatprep.subr.bf16.mxu0 %v13502_v55 }
0x1a43   :  { %v3015_v24 = vpop.f32.mrb[48].mxu0 }
0x1a44   :  { %v3016_v54 = vadd.f32 %v12291_v19, %v3015_v24  ;;  %v9755_v47 = vpop.f32.mrb[49].mxu0 }
0x1a46   :  { %v8774_v18 = vmul.f32 -1.442695, %v3016_v54 }
0x1a47   :  { %v3020_v5 = vpop.f32.mrb[50].mxu0 }
0x1a48   :  { %10941 = vpow2.f32 %v8774_v18  ;;  %v3021_v25 = vadd.f32 %v12291_v19, %v3020_v5  ;;  %v9758_v32 = vpop.f32.mrb[51].mxu0  ;;  %v13519_v5 = vld [vmem:[#allocation31_spill] sm:$0xff] }
0x1a49   :  { %v13518_v32 = vld [vmem:[#allocation30_spill] sm:$0xff] }
0x1a4a   :  { %v8775_v62 = vmul.f32 -1.442695, %v3021_v25  ;;  %v13520_v25 = vld [vmem:[#allocation32_spill] sm:$0xff] }
0x1a4b   :  { %v3025_v28 = vpop.f32.mrb[52].mxu0 }
0x1a4c   :  { %10943 = vpow2.f32 %v8775_v62  ;;  %v3026_v0 = vadd.f32 %v12291_v19, %v3025_v28  ;;  %v9761_v30 = vpop.f32.mrb[53].mxu0  ;;  %v13517_v28 = vld [vmem:[#allocation29_spill] sm:$0xff] }
0x1a4d   :  { %v13521_v62 = vld [vmem:[#allocation33_spill] sm:$0xff] }
0x1a4e   :  { %v8776_v55 = vmul.f32 -1.442695, %v3026_v0 }
0x1a50   :  { %10945 = vpow2.f32 %v8776_v55  ;;  %v13516_v55 = vld [vmem:[#allocation28_spill] sm:$0xff] }
0x1a52   :  { %v10942_v56 = vpop.eup %10941 }
0x1a53   :  { %v3038_v61 = vadd.f32 1.0, %v10942_v56  ;;  %v13514_v56 = vld [vmem:[#allocation26_spill] sm:$0xff] }
0x1a55   :  { %10947 = vrcp.f32 %v3038_v61 }
0x1a56   :  { %v10944_v3 = vpop.eup %10943 }
0x1a57   :  { %v3039_v24 = vadd.f32 1.0, %v10944_v3  ;;  %v13515_v3 = vld [vmem:[#allocation27_spill] sm:$0xff] }
0x1a59   :  { %10949 = vrcp.f32 %v3039_v24 }
0x1a5a   :  { %v10946_v54 = vpop.eup %10945 }
0x1a5b   :  { %v3040_v47 = vadd.f32 1.0, %v10946_v54 }
0x1a5d   :  { %10951 = vrcp.f32 %v3040_v47 }
0x1a5f   :  { %v10948_v18 = vpop.eup %10947 }
0x1a60   :  { %8777 = vmatmul.mubr.msk.f32.vlgmr.msra.gmra.mrb[54].mxu0 %vm252_vm4, %v10948_v18 }
0x1a61   :  { %3126 = vmatprep.mubr.f32.mxu0 %v13494_v27  ;;  %10362 = vmatpush1.bf16.msra.mxu0 %v13503_v39 }
0x1a62   :  { %10364 = vmatprep.subr.bf16.mxu0 %v13504_v34 }
0x1a63   :  { %v10950_v30 = vpop.eup %10949 }
0x1a64   :  { %8778 = vmatmul.mubr.msk.f32.gmra.mrb[56].mxu0 %vm252_vm4, %v10950_v30 }
0x1a65   :  { %3132 = vmatprep.mubr.f32.mxu0 %v13494_v27  ;;  %10366 = vmatpush1.bf16.msra.mxu0 %v13505_v14 }
0x1a66   :  { %10376 = vmatprep.subr.bf16.mxu0 %v11662_v41 }
0x1a67   :  { %v10952_v61 = vpop.eup %10951 }
0x1a68   :  { %8779 = vmatmul.mubr.msk.f32.gmra.mrb[58].mxu0 %vm252_vm4, %v10952_v61 }
0x1a69   :  { %3274 = vmatprep.mubr.f32.mxu0 %v13494_v27 }
0x1a6c   :  { %8781 = vmatmul.mubr.msk.f32.vlgmr.msra.gmra.mrb[60].mxu0 %vm246_vm3, %v12094_v59 }
0x1a6d   :  { %10378 = vmatpush3.bf16.msra.mxu0 %v11676_v58 }
0x1a6e   :  { %10380 = vmatprep.subr.bf16.mxu0 %v11687_v63 }
0x1a71   :  { %10382 = vmatpush3.bf16.msra.mxu0 %v11695_v4 }
0x1a72   :  { %10384 = vmatprep.subr.bf16.mxu0 %v11705_v23 }
0x1a75   :  { %10386 = vmatpush3.bf16.msra.mxu0 %v11713_v40 }
0x1a76   :  { %10388 = vmatprep.subr.bf16.mxu0 %v11723_v48 }
0x1a79   :  { %10390 = vmatpush3.bf16.msra.mxu0 %v11731_v60 }
0x1a7a   :  { %10392 = vmatprep.subr.bf16.mxu0 %v13514_v56 }
0x1a7d   :  { %10394 = vmatpush3.bf16.msra.mxu0 %v13515_v3 }
0x1a7e   :  { %10396 = vmatprep.subr.bf16.mxu0 %v13516_v55 }
0x1a81   :  { %10398 = vmatpush3.bf16.msra.mxu0 %v13517_v28 }
0x1a82   :  { %10400 = vmatprep.subr.bf16.mxu0 %v13518_v32 }
0x1a85   :  { %10402 = vmatpush3.bf16.msra.mxu0 %v13519_v5 }
0x1a86   :  { %10404 = vmatprep.subr.bf16.mxu0 %v13520_v25 }
0x1a89   :  { %10406 = vmatpush3.bf16.msra.mxu0 %v13521_v62 }
0x1a8a   :  { %10439 = vmatprep.subr.bf16.mxu0 %v13495_v12 }
0x1b33   :  { %v12324_v0 = vpop.f32.mrb[54].mxu0 }
0x1b34   :  { %v12326_v24 = vpop.f32.mrb[55].mxu0 }
0x1b37   :  { %v12328_v54 = vpop.f32.mrb[56].mxu0 }
0x1b38   :  { %v12330_v47 = vpop.f32.mrb[57].mxu0 }
0x1b3b   :  { %v12332_v18 = vpop.f32.mrb[58].mxu0 }
0x1b3c   :  { %v12334_v30 = vpop.f32.mrb[59].mxu0 }
0x1b3f   :  { %v3276_v61 = vpop.f32.mrb[60].mxu0 }
0x1b40   :  { %v3352_v19 = vadd.f32 %v3276_v61, %v12264_v11  ;;  %v3606_v14 = vsub.f32 %v12269_v26, %v3276_v61  ;;  %v3278_v34 = vpop.f32.mrb[61].mxu0 }
0x1b41   :  { %v3353_v39 = vadd.f32 %v3278_v34, %v12266_v1  ;;  %v3607_v42 = vsub.f32 %v12274_v36, %v3278_v34  ;;  %8783 = vmatprep.subr.msk.mxu1 %vm598_vm6, %v3278_v34 }
0x1b42   :  { %v3354_v29 = vadd.f32 %v3352_v19, %v13522_v17  ;;  %8784 = vmatpush1.msk.msra.mxu1 %vm598_vm6, %v3276_v61 }
0x1b43   :  { %v3355_v49 = vadd.f32 %v3353_v39, %v13523_v20  ;;  %8785 = vmatmul.mubr.msk.f32.vlgmr.msra.gmra.mrb[40].mxu1 %vm588_vm7, %v12199_v6  ;;  %8788 = vmatprep.subr.msk.mxu1 %vm598_vm6, %v12266_v1 }
0x1b44   :  { %8789 = vmatpush1.msk.msra.mxu1 %vm598_vm6, %v12264_v11  ;;  %3504 = vmatprep.mubr.f32.mxu1 %v13494_v27 }
0x1b45   :  { %10953 = vtanh.f32 %v3355_v49  ;;  %8793 = vmatprep.subr.msk.mxu1 %vm598_vm6, %v3607_v42  ;;  %v12384_v49 = vld [vmem:[%s13355_s12 + $0x8] sm:$0xff]  ;;  %v12394_v42 = vld [vmem:[%s13355_s12 + $0x10] sm:$0x3] }
0x1b46   :  { %10955 = vtanh.f32 %v3354_v29  ;;  %v12374_v29 = vld [vmem:[%s13355_s12] sm:$0xff] }
0x1b47   :  { %8786 = vmatmul.mubr.msk.f32.gmra.mrb[42].mxu1 %vm588_vm7, %v12211_v38 }
0x1b48   :  { %3510 = vmatprep.mubr.f32.mxu1 %v13494_v27 }
0x1b4b   :  { %8787 = vmatmul.mubr.msk.f32.gmra.mrb[44].mxu1 %vm588_vm7, %v12220_v15 }
0x1b4c   :  { %3587 = vmatprep.mubr.f32.mxu1 %v13494_v27 }
0x1b4f   :  { %v10954_v39 = vpop.eup %10953  ;;  %8790 = vmatmul.mubr.msk.f32.vlgmr.msra.gmra.mrb[40].mxu1 %vm588_vm7, %v12229_v9 }
0x1b50   :  { %v10956_v11 = vpop.eup %10955  ;;  %8794 = vmatpush1.msk.msra.mxu1 %vm598_vm6, %v3606_v14  ;;  %3422 = vmatprep.mubr.f32.mxu0 %v10954_v39 }
0x1b51   :  { %3423 = vmatmul.mubr.f32.vlgmr.msra.gmra.mrb[62].mxu0 %v10956_v11  ;;  %3593 = vmatprep.mubr.f32.mxu1 %v13494_v27 }
0x1b52   :  { %10408 = vmatprep.subr.bf16.mxu1 %v11662_v41  ;;  %9768 = vmatprep.mubr.msk.f32.mxu0 %vm11172_vm2, %v13494_v27 }
0x1b53   :  { %8791 = vmatmul.mubr.msk.f32.gmra.mrb[42].mxu1 %vm588_vm7, %v12240_v52 }
0x1b54   :  { %3599 = vmatprep.mubr.f32.mxu1 %v13494_v27 }
0x1b57   :  { %8792 = vmatmul.mubr.msk.f32.gmra.mrb[44].mxu1 %vm588_vm7, %v12251_v33 }
0x1b58   :  { %3678 = vmatprep.mubr.f32.mxu1 %v13494_v27 }
0x1b5b   :  { %8795 = vmatmul.mubr.msk.f32.vlgmr.msra.gmra.mrb[40].mxu1 %vm588_vm7, %v12374_v29 }
0x1b5c   :  { %3684 = vmatprep.mubr.f32.mxu1 %v13494_v27  ;;  %10410 = vmatpush3.bf16.msra.mxu1 %v11676_v58 }
0x1b5d   :  { %10412 = vmatprep.subr.bf16.mxu1 %v11687_v63 }
0x1b5f   :  { %8796 = vmatmul.mubr.msk.f32.gmra.mrb[42].mxu1 %vm588_vm7, %v12384_v49 }
0x1b60   :  { %3690 = vmatprep.mubr.f32.mxu1 %v13494_v27  ;;  %10414 = vmatpush3.bf16.msra.mxu1 %v11695_v4 }
0x1b61   :  { %10416 = vmatprep.subr.bf16.mxu1 %v11705_v23 }
0x1b63   :  { %8797 = vmatmul.mubr.msk.f32.gmra.mrb[44].mxu1 %vm588_vm7, %v12394_v42 }
0x1b64   :  { %10418 = vmatpush3.bf16.msra.mxu1 %v11713_v40 }
0x1b65   :  { %10420 = vmatprep.subr.bf16.mxu1 %v11723_v48 }
0x1b68   :  { %10422 = vmatpush3.bf16.msra.mxu1 %v11731_v60 }
0x1b69   :  { %10424 = vmatprep.subr.bf16.mxu1 %v13514_v56 }
0x1b6c   :  { %10426 = vmatpush3.bf16.msra.mxu1 %v13515_v3 }
0x1b6d   :  { %10428 = vmatprep.subr.bf16.mxu1 %v13516_v55 }
0x1b70   :  { %10430 = vmatpush3.bf16.msra.mxu1 %v13517_v28 }
0x1b71   :  { %10432 = vmatprep.subr.bf16.mxu1 %v13518_v32 }
0x1b74   :  { %10434 = vmatpush3.bf16.msra.mxu1 %v13519_v5 }
0x1b75   :  { %10436 = vmatprep.subr.bf16.mxu1 %v13520_v25 }
0x1b78   :  { %10438 = vmatpush3.bf16.msra.mxu1 %v13521_v62 }
0x1b79   :  { %10442 = vmatprep.subr.bf16.mxu1 %v13495_v12 }
0x1c24   :  { %v9157_v34 = vpop.f32.mrb[62].mxu0 }
0x1c25   :  { %v9158_v14 = vpop.f32.mrb[63].mxu0 }
0x1c26   :  { %v9159_v1 = vadd.f32 %v9158_v14, %v9157_v34 }
0x1c28   :  { %vm3801_vm14 = vcmp.gt.f32.partialorder %v9159_v1, 0.0 }
0x1c2e   :  { %v3680_v26 = vpop.f32.mrb[40].mxu1 }
0x1c2f   :  { %v3703_v36 = vadd.f32 %v3680_v26, %v13522_v17  ;;  %v3682_v19 = vpop.f32.mrb[41].mxu1 }
0x1c30   :  { %v3704_v61 = vadd.f32 %v3682_v19, %v13523_v20 }
0x1c31   :  { %10957 = vtanh.f32 %v3703_v36 }
0x1c32   :  { %10959 = vtanh.f32 %v3704_v61  ;;  %v3686_v39 = vpop.f32.mrb[42].mxu1 }
0x1c33   :  { %v3705_v11 = vadd.f32 %v3686_v39, %v13522_v17  ;;  %v3688_v5 = vpop.f32.mrb[43].mxu1 }
0x1c34   :  { %v3706_v25 = vadd.f32 %v3688_v5, %v13523_v20 }
0x1c35   :  { %10961 = vtanh.f32 %v3705_v11 }
0x1c36   :  { %10963 = vtanh.f32 %v3706_v25  ;;  %v3692_v62 = vpop.f32.mrb[44].mxu1 }
0x1c37   :  { %v3707_v32 = vadd.f32 %v3692_v62, %v13522_v17  ;;  %v3694_v34 = vpop.f32.mrb[45].mxu1 }
0x1c38   :  { %v3708_v14 = vadd.f32 %v3694_v34, %v13523_v20 }
0x1c39   :  { %10965 = vtanh.f32 %v3707_v32 }
0x1c3a   :  { %10967 = vtanh.f32 %v3708_v14 }
0x1c3b   :  { %v10958_v26 = vpop.eup %10957 }
0x1c3c   :  { %v10960_v19 = vpop.eup %10959  ;;  %v3715_v36 = vmul.f32 %v10958_v26, %v12324_v0  ;;  %v3802_v0 = vmul.f32 0.2, %v9159_v1 }
0x1c3d   :  { %v3716_v61 = vmul.f32 %v10960_v19, %v12326_v24 }
0x1c3f   :  { %v10962_v39 = vpop.eup %10961  ;;  %3785 = vmatprep.mubr.f32.mxu1 %v3716_v61 }
0x1c40   :  { %v10964_v28 = vpop.eup %10963  ;;  %3786 = vmatmul.mubr.f32.vlgmr.msra.gmra.mrb[46].mxu1 %v3715_v36  ;;  %v3717_v5 = vmul.f32 %v10962_v39, %v12328_v54  ;;  %v3803_v54 = vsel %vm3801_vm14, %v9159_v1, %v3802_v0 }
0x1c41   :  { %v3718_v25 = vmul.f32 %v10964_v28, %v12330_v47  ;;  %v3813_v47 = vsel %vm1691_vm13, %v3803_v54, -inf }
0x1c43   :  { %v10966_v62 = vpop.eup %10965  ;;  %3790 = vmatprep.mubr.f32.mxu1 %v3718_v25 }
0x1c44   :  { %v10968_v11 = vpop.eup %10967  ;;  %3791 = vmatmul.mubr.f32.gmra.mrb[48].mxu1 %v3717_v5  ;;  %v3719_v32 = vmul.f32 %v10966_v62, %v12332_v18  ;;  %v3814_v18 = vrot.slane %v3813_v47, 4 }
0x1c45   :  { %v3720_v34 = vmul.f32 %v10968_v11, %v12334_v30 }
0x1c47   :  { %3795 = vmatprep.mubr.f32.mxu1 %v3720_v34  ;;  %v3815_v34 = vmax.f32 %v3813_v47, %v3814_v18 }
0x1c48   :  { %3796 = vmatmul.mubr.f32.gmra.mrb[50].mxu1 %v3719_v32 }
0x1c49   :  { %9810 = vmatprep.mubr.msk.f32.mxu1 %vm11172_vm2, %v13494_v27  ;;  %v3816_v20 = vrot.slane %v3815_v34, 2 }
0x1c4b   :  { %v3817_v55 = vmax.f32 %v3815_v34, %v3816_v20 }
0x1d13   :  { %v9192_v24 = vpop.f32.mrb[46].mxu1 }
0x1d14   :  { %v9193_v14 = vpop.f32.mrb[47].mxu1 }
0x1d15   :  { %v9194_v26 = vadd.f32 %v9193_v14, %v9192_v24 }
0x1d17   :  { %v9195_v28 = vpop.f32.mrb[48].mxu1  ;;  %v3807_v36 = vmul.f32 0.2, %v9194_v26  ;;  %vm3804_vm15 = vcmp.gt.f32.partialorder %v9194_v26, 0.0 }
0x1d18   :  { %v9196_v19 = vpop.f32.mrb[49].mxu1 }
0x1d19   :  { %v9197_v61 = vadd.f32 %v9196_v19, %v9195_v28  ;;  %v3810_v25 = vsel %vm3804_vm15, %v9194_v26, %v3807_v36  ;;  %v3818_v26 = vrot.slane %v3817_v55, 1 }
0x1d1a   :  { %v3820_v0 = vsel %vm163_vm1, %v3810_v25, -inf }
0x1d1b   :  { %vm3805_vm9 = vcmp.gt.f32.partialorder %v9197_v61, 0.0  ;;  %v3808_v30 = vmul.f32 0.2, %v9197_v61  ;;  %v9198_v39 = vpop.f32.mrb[50].mxu1 }
0x1d1c   :  { %v9199_v5 = vpop.f32.mrb[51].mxu1 }
0x1d1d   :  { %v3811_v62 = vsel %vm3805_vm9, %v9197_v61, %v3808_v30  ;;  %v9200_v11 = vadd.f32 %v9199_v5, %v9198_v39  ;;  %v3819_v30 = vmax.f32 %v3817_v55, %v3818_v26  ;;  %v12434_v55 = vld [vmem:[%s13356_s13] sm:$0x3f] }
0x1d1e   :  { %v3821_v32 = vsel %vm163_vm1, %v3811_v62, -inf }
0x1d1f   :  { %vm3806_vm14 = vcmp.gt.f32.partialorder %v9200_v11, 0.0  ;;  %v3809_v1 = vmul.f32 0.2, %v9200_v11  ;;  %v3823_v24 = vmax.f32 %v3820_v0, %v3821_v32 }
0x1d21   :  { %v3812_v14 = vsel %vm3806_vm14, %v9200_v11, %v3809_v1 }
0x1d22   :  { %v3822_v28 = vsel %vm1701_vm10, %v3812_v14, -inf }
0x1d23   :  { %v3824_v19 = vmax.f32 %v3823_v24, %v3822_v28 }
0x1d25   :  { %v3825_v17 = vrot.slane %v3824_v19, 4 }
0x1d27   :  { %v3826_v3 = vmax.f32 %v3824_v19, %v3825_v17 }
0x1d29   :  { %v3827_v56 = vrot.slane %v3826_v3, 2 }
0x1d2b   :  { %v3828_v36 = vmax.f32 %v3826_v3, %v3827_v56 }
0x1d2d   :  { %v3829_v61 = vrot.slane %v3828_v36, 1 }
0x1d2f   :  { %v3830_v39 = vmax.f32 %v3828_v36, %v3829_v61 }
0x1d31   :  { %v3831_v47 = vmax.f32 %v3819_v30, %v3830_v39  ;;  %v4025_v30 = vpop.permute.xlu0 %4024 }
0x1d33   :  { %v3832_v18 = vsel %vm163_vm1, %v3831_v47, -inf }
0x1d34   :  { %3833 = vmax.xlane.f32.xlu1 %v3832_v18 }
0x1dc1   :  { %v3834_v5 = vpop.xlane.xlu1 %3833 }
0x1dc2   :  { %v3838_v32 = vsub.f32 %v3810_v25, %v3834_v5  ;;  %v3839_v11 = vsub.f32 %v3811_v62, %v3834_v5  ;;  %v3840_v24 = vsub.f32 %v3812_v14, %v3834_v5  ;;  %v3835_v25 = vsub.f32 %v3803_v54, %v3834_v5 }
0x1dc4   :  { %v3841_v1 = vmul.f32 1.442695, %v3838_v32  ;;  %v3843_v0 = vmul.f32 1.442695, %v3839_v11  ;;  %v3845_v20 = vmul.f32 1.442695, %v3840_v24 }
0x1dc5   :  { %v3836_v62 = vmul.f32 1.442695, %v3835_v25 }
0x1dc6   :  { %10969 = vpow2.f32 %v3841_v1 }
0x1dc7   :  { %10971 = vpow2.f32 %v3843_v0 }
0x1dc8   :  { %10973 = vpow2.f32 %v3845_v20 }
0x1dc9   :  { %10975 = vpow2.f32 %v3836_v62 }
0x1dd0   :  { %v10970_v17 = vpop.eup %10969 }
0x1dd1   :  { %v10972_v34 = vpop.eup %10971 }
0x1dd2   :  { %v10440_v56 = vpack.c.bf16 %v10972_v34, %v10970_v17  ;;  %v10974_v3 = vpop.eup %10973 }
0x1dd3   :  { %v10976_v14 = vpop.eup %10975 }
0x1dd4   :  { %10441 = vmatpush3.bf16.msra.mxu0 %v10440_v56 }
0x1dd5   :  { %9766 = vmatprep.subr.mxu0 %v13494_v27 }
0x1dd8   :  { %9767 = vmatpush3.msk.msra.mxu0 %vm1731_vm11, %v10974_v3 }
0x1dd9   :  { %9769 = vmatmul.mubr.msk.f32.vlgmr.msra.gmra.mrb[64].mxu0 %vm1727_vm12, %v12434_v55  ;;  %9771 = vmatprep.subr.mxu0 %v13494_v27 }
0x1dda   :  { %9773 = vmatprep.mubr.msk.f32.mxu0 %vm11172_vm2, %v13494_v27 }
0x1eac   :  { %v3916_v28 = vpop.f32.mrb[64].mxu0 }
0x1ead   :  { %v3920_v19 = vadd.f32 %v10976_v14, %v3916_v28  ;;  %v9770_v26 = vpop.f32.mrb[65].mxu0 }
0x1eaf   :  { %10977 = vrcp.f32 %v3920_v19 }
0x1eb9   :  { %v10978_v36 = vpop.eup %10977 }
0x1eba   :  { %9772 = vmatpush3.msk.msra.mxu0 %vm598_vm6, %v10978_v36  ;;  %v3923_v61 = vmul.f32 %v10978_v36, %v10976_v14 }
0x1ebb   :  { %9774 = vmatmul.mubr.msk.f32.vlgmr.msra.gmra.mrb[66].mxu0 %vm588_vm7, %v12229_v9  ;;  %9782 = vmatprep.subr.mxu0 %v13494_v27 }
0x1ebc   :  { %9783 = vmatpush3.msk.msra.mxu0 %vm598_vm6, %v4025_v30  ;;  %9776 = vmatprep.mubr.msk.f32.mxu0 %vm11172_vm2, %v13494_v27  ;;  %v3924_v56 = vsel %vm1691_vm13, %v3923_v61, 0.0 }
0x1ebd   :  { %9793 = vmatprep.subr.mxu0 %v13494_v27 }
0x1ebf   :  { %9777 = vmatmul.mubr.msk.f32.gmra.mrb[68].mxu0 %vm588_vm7, %v12240_v52 }
0x1ec0   :  { %9779 = vmatprep.mubr.msk.f32.mxu0 %vm11172_vm2, %v13494_v27 }
0x1ec3   :  { %9780 = vmatmul.mubr.msk.f32.gmra.mrb[70].mxu0 %vm588_vm7, %v12251_v33 }
0x1ec4   :  { %9784 = vmatprep.mubr.msk.f32.mxu0 %vm11172_vm2, %v13494_v27 }
0x1ec7   :  { %9785 = vmatmul.mubr.msk.f32.vlgmr.msra.gmra.mrb[72].mxu0 %vm588_vm7, %v12374_v29 }
0x1ec8   :  { %9794 = vmatpush3.msk.msra.mxu0 %vm598_vm6, %v12094_v59  ;;  %9787 = vmatprep.mubr.msk.f32.mxu0 %vm11172_vm2, %v13494_v27 }
0x1ec9   :  { %10445 = vmatprep.subr.bf16.mxu0 %v13495_v12 }
0x1ecb   :  { %9788 = vmatmul.mubr.msk.f32.gmra.mrb[74].mxu0 %vm588_vm7, %v12384_v49 }
0x1ecc   :  { %9790 = vmatprep.mubr.msk.f32.mxu0 %vm11172_vm2, %v13494_v27 }
0x1ecf   :  { %9791 = vmatmul.mubr.msk.f32.gmra.mrb[76].mxu0 %vm588_vm7, %v12394_v42 }
0x1ed0   :  { %9795 = vmatprep.mubr.msk.f32.mxu0 %vm11172_vm2, %v13494_v27 }
0x1ed3   :  { %9796 = vmatmul.mubr.msk.f32.vlgmr.msra.gmra.mrb[72].mxu0 %vm588_vm7, %v12199_v6 }
0x1ed4   :  { %9798 = vmatprep.mubr.msk.f32.mxu0 %vm11172_vm2, %v13494_v27  ;;  %10447 = vmatpush3.bf16.msra.mxu0 %v12005_v43 }
0x1ed5   :  { %10448 = vmatprep.subr.bf16.mxu0 %v13495_v12 }
0x1ed7   :  { %9799 = vmatmul.mubr.msk.f32.gmra.mrb[74].mxu0 %vm588_vm7, %v12211_v38 }
0x1ed8   :  { %9801 = vmatprep.mubr.msk.f32.mxu0 %vm11172_vm2, %v13494_v27  ;;  %10450 = vmatpush3.bf16.msra.mxu0 %v12016_v45 }
0x1ed9   :  { %10451 = vmatprep.subr.bf16.mxu0 %v13495_v12 }
0x1edb   :  { %9802 = vmatmul.mubr.msk.f32.gmra.mrb[76].mxu0 %vm588_vm7, %v12220_v15 }
0x1edc   :  { %10453 = vmatpush3.bf16.msra.mxu0 %v12029_v35  ;;  %9829 = vmatprep.mubr.msk.f32.mxu0 %vm11172_vm2, %v13494_v27 }
0x1edd   :  { %10454 = vmatprep.subr.bf16.mxu0 %v13495_v12 }
0x1ee0   :  { %10456 = vmatpush3.bf16.msra.mxu0 %v12039_v2 }
0x1ee1   :  { %10463 = vmatprep.subr.bf16.mxu0 %v13495_v12 }
0x1f8e   :  { %v3996_v59 = vpop.f32.mrb[66].mxu0 }
0x1f8f   :  { %v4010_v54 = vmul.f32 %v10970_v17, %v3996_v59  ;;  %v9775_v39 = vpop.f32.mrb[67].mxu0 }
0x1f91   :  { %v4013_v47 = vsel %vm163_vm1, %v4010_v54, 0.0 }
0x1f92   :  { %4014 = vadd.xlane.f32.xlu0 %v4013_v47  ;;  %v4001_v18 = vpop.f32.mrb[68].mxu0 }
0x1f93   :  { %v4011_v5 = vmul.f32 %v10972_v34, %v4001_v18  ;;  %v9778_v32 = vpop.f32.mrb[69].mxu0 }
0x1f95   :  { %v4016_v11 = vsel %vm163_vm1, %v4011_v5, 0.0 }
0x1f96   :  { %4017 = vadd.xlane.f32.xlu1 %v4016_v11  ;;  %v4006_v1 = vpop.f32.mrb[70].mxu0 }
0x1f97   :  { %v4012_v0 = vmul.f32 %v10974_v3, %v4006_v1  ;;  %v9781_v24 = vpop.f32.mrb[71].mxu0 }
0x1f99   :  { %v4019_v20 = vsel %vm1701_vm10, %v4012_v0, 0.0 }
0x1f9a   :  { %4020 = vadd.xlane.f32.xlu0 %v4019_v20  ;;  %3925 = vadd.xlane.f32.xlu1 %v3924_v56  ;;  %v13524_v20 = vmax.f32 %v12134_v22, 0.0 }
0x1fa6   :  { %v4176_v17 = vpop.f32.mrb[72].mxu0 }
0x1fa7   :  { %v9797_v25 = vpop.f32.mrb[73].mxu0 }
0x1faa   :  { %v4181_v62 = vpop.f32.mrb[74].mxu0 }
0x1fab   :  { %v9800_v14 = vpop.f32.mrb[75].mxu0  ;;  %4274 = vrot.lane.b32.xlu1 %v12013_v57, %s11176_s16 }
0x1fae   :  { %v4186_v34 = vpop.f32.mrb[76].mxu0 }
0x1faf   :  { %v9803_v28 = vpop.f32.mrb[77].mxu0 }
0x201f   :  { %v4015_v19 = vpop.xlane.xlu0 %4014 }
0x2020   :  { %v4191_v36 = vmul.f32 %v4176_v17, %v4015_v19 }
0x2023   :  { %v4018_v26 = vpop.xlane.xlu1 %4017 }
0x2024   :  { %v4192_v3 = vmul.f32 %v4181_v62, %v4018_v26 }
0x2026   :  { %v10443_v30 = vpack.c.bf16 %v4192_v3, %v4191_v36 }
0x2027   :  { %v4021_v59 = vpop.xlane.xlu0 %4020  ;;  %v3926_v39 = vpop.xlane.xlu1 %3925 }
0x2028   :  { %10444 = vmatpush3.bf16.msra.mxu1 %v10443_v30  ;;  %v4193_v61 = vmul.f32 %v4186_v34, %v4021_v59  ;;  %v4190_v47 = vmul.f32 %v3926_v39, %v12088_v21 }
0x2029   :  { %9808 = vmatprep.subr.mxu1 %v13494_v27 }
0x202b   :  { %v12511_v11 = vpop.permute.xlu1 %4274 }
0x202c   :  { %9809 = vmatpush3.msk.msra.mxu1 %vm1731_vm11, %v4193_v61 }
0x202d   :  { %9811 = vmatmul.mubr.msk.f32.vlgmr.msra.gmra.mrb[52].mxu1 %vm1727_vm12, %v12434_v55  ;;  %10457 = vmatprep.subr.bf16.mxu1 %v13495_v12 }
0x202e   :  { %10459 = vmatpush3.bf16.msra.mxu1 %v12076_v37  ;;  %9840 = vmatprep.mubr.msk.f32.mxu1 %vm11172_vm2, %v13494_v27 }
0x202f   :  { %10460 = vmatprep.subr.bf16.mxu1 %v13495_v12 }
0x2032   :  { %10462 = vmatpush3.bf16.msra.mxu1 %v12082_v44 }
0x2033   :  { %9843 = vmatprep.subr.mxu1 %v13494_v27 }
0x2100   :  { %v4263_v57 = vpop.f32.mrb[52].mxu1 }
0x2101   :  { %4268 = vrot.lane.b32.xlu0 %v4263_v57, %s11176_s16  ;;  %v9812_v54 = vpop.f32.mrb[53].mxu1 }
0x2173   :  { %v4269_v18 = vpop.permute.xlu0 %4268 }
0x2174   :  { %v4271_v5 = vadd.f32 %v4269_v18, %v4190_v47 }
0x2176   :  { %v4272_v32 = vmul.f32 0.25, %v4271_v5 }
0x2178   :  { %v4273_v1 = vmax.f32 %v4272_v32, 0.0 }
0x217a   :  { %v4277_v0 = vadd.f32 %v12511_v11, %v4273_v1  ;;  %v13527_v1 = vld [vmem:[#allocation5_spill] sm:$0xff] }
0x217c   :  { %4279 = vrot.lane.b32.xlu1 %v4277_v0, %s11175_s23 }
0x21ee   :  { %v4280_v24 = vpop.permute.xlu1 %4279 }
0x21ef   :  { %v4282_v56 = vsel %vm246_vm3, %v13524_v20, %v4280_v24 }
0x21f0   :  { %9830 = vmatmul.mubr.msk.f32.vlgmr.msra.gmra.mrb[78].mxu0 %vm252_vm4, %v4282_v56 }
0x21f1   :  { %10465 = vmatpush3.bf16.msra.mxu0 %v11287_v8  ;;  %9864 = vmatprep.mubr.msk.f32.mxu0 %vm11172_vm2, %v13494_v27 }
0x21f2   :  { %10466 = vmatprep.subr.bf16.mxu0 %v13495_v12 }
0x21f5   :  { %10468 = vmatpush3.bf16.msra.mxu0 %v11296_v10 }
0x21f6   :  { %10469 = vmatprep.subr.bf16.mxu0 %v13495_v12 }
0x21f9   :  { %10471 = vmatpush3.bf16.msra.mxu0 %v11308_v13 }
0x21fa   :  { %10472 = vmatprep.subr.bf16.mxu0 %v13495_v12 }
0x21fd   :  { %10474 = vmatpush3.bf16.msra.mxu0 %v11319_v16 }
0x21fe   :  { %9888 = vmatprep.subr.mxu0 %v13494_v27 }
0x22c3   :  { %v4352_v21 = vpop.f32.mrb[78].mxu0 }
0x22c4   :  { %v4353_v22 = vadd.f32 %v4352_v21, %v12059_v7  ;;  %v9831_v17 = vpop.f32.mrb[79].mxu0 }
0x22c5   :  { %v13528_v17 = vld [vmem:[#allocation6_spill] sm:$0xff] }
0x22c6   :  { %10979 = vtanh.f32 %v4353_v22  ;;  %v8815_v62 = vmul.f32 -1.442695, %v4353_v22 }
0x22c8   :  { %10981 = vpow2.f32 %v8815_v62 }
0x22d0   :  { %v10980_v25 = vpop.eup %10979 }
0x22d1   :  { %4365 = vrot.lane.b32.xlu0 %v10980_v25, %s11175_s23 }
0x22d2   :  { %v10982_v14 = vpop.eup %10981 }
0x22d3   :  { %v4359_v34 = vadd.f32 1.0, %v10982_v14 }
0x22d5   :  { %10983 = vrcp.f32 %v4359_v34 }
0x22df   :  { %v10984_v28 = vpop.eup %10983 }
0x22e0   :  { %v4363_v36 = vmul.f32 %v10984_v28, %v12064_v53  ;;  %v12550_v53 = vld [vmem:[%s13346_s3] sm:$0x3f] }
0x2343   :  { %v4366_v19 = vpop.permute.xlu0 %4365 }
0x2344   :  { %v4368_v26 = vmul.f32 %v10984_v28, %v4366_v19 }
0x2346   :  { %4370 = vrot.lane.b32.xlu1 %v4368_v26, %s11173_s19 }
0x23b8   :  { %v4371_v3 = vpop.permute.xlu1 %4370 }
0x23b9   :  { %v12533_v30 = vadd.f32 %v4371_v3, %v4363_v36 }
0x23bb   :  { %10985 = vtanh.f32 %v12533_v30 }
0x23c5   :  { %v10986_v59 = vpop.eup %10985 }
0x23c6   :  { %4376 = vrot.lane.b32.xlu0 %v10986_v59, %s11175_s23  ;;  %v13529_v59 = vld [vmem:[#allocation37_spill] sm:$0xff] }
0x2438   :  { %v4377_v61 = vpop.permute.xlu0 %4376 }
0x2439   :  { %v12537_v57 = vmul.f32 %v10984_v28, %v4377_v61 }
0x243b   :  { %4381 = vrot.lane.b32.xlu1 %v12537_v57, %s11173_s19 }
0x243f   :  { %4535 = vrot.lane.b32.xlu1 %v12151_v50, %s11175_s23 }
0x24ad   :  { %v12543_v54 = vpop.permute.xlu1 %4381 }
0x24ae   :  { %9841 = vmatmul.mubr.msk.f32.vlgmr.msra.gmra.mrb[54].mxu1 %vm246_vm3, %v12543_v54 }
0x24af   :  { %9844 = vmatpush3.msk.msra.mxu1 %vm167_vm0, %v12550_v53  ;;  %9845 = vmatprep.mubr.msk.f32.mxu1 %vm11172_vm2, %v13494_v27 }
0x24b0   :  { %10475 = vmatprep.subr.bf16.mxu1 %v13495_v12 }
0x24b1   :  { %v4536_v56 = vpop.permute.xlu1 %4535 }
0x2581   :  { %v4451_v39 = vpop.f32.mrb[54].mxu1 }
0x2582   :  { %v4452_v50 = vadd.f32 %v12111_v51, %v4451_v39  ;;  %v9842_v47 = vpop.f32.mrb[55].mxu1  ;;  %v13526_v51 = vld [vmem:[#allocation7_spill] sm:$0xff] }
0x2584   :  { %4457 = vrot.lane.b32.xlu0 %v4452_v50, %s11177_s22  ;;  %v12560_v18 = vadd.f32 %v4452_v50, %v12122_v31 }
0x25f6   :  { %v12562_v5 = vpop.permute.xlu0 %4457 }
0x25f7   :  { %13525 = vst [vmem:[#allocation42_spill] sm:$0xff] %v12562_v5  ;;  %v4460_v32 = vsel %vm433_vm5, %v12560_v18, %v12562_v5 }
0x25f8   :  { %9846 = vmatmul.mubr.msk.f32.vlgmr.msra.gmra.mrb[56].mxu1 %vm163_vm1, %v4460_v32 }
0x25f9   :  { %10477 = vmatpush3.bf16.msra.mxu1 %v11362_v46  ;;  %9875 = vmatprep.mubr.msk.f32.mxu1 %vm11172_vm2, %v13494_v27 }
0x25fa   :  { %10478 = vmatprep.subr.bf16.mxu1 %v13495_v12 }
0x25fd   :  { %10480 = vmatpush3.bf16.msra.mxu1 %v13526_v51 }
0x25fe   :  { %9878 = vmatprep.subr.mxu1 %v13494_v27 }
0x26cb   :  { %v4530_v31 = vpop.f32.mrb[56].mxu1 }
0x26cc   :  { %v12575_v0 = vadd.f32 %v4530_v31, %v13527_v1  ;;  %v9847_v24 = vpop.f32.mrb[57].mxu1  ;;  %v12738_v1 = vld [vmem:[%s13354_s11] sm:$0xff] }
0x26ce   :  { %v13447_v20 = vmax.f32 %v12575_v0, 0.0 }
0x26d0   :  { %v4538_v21 = vsel %vm246_vm3, %v13447_v20, %v4536_v56  ;;  %v13531_v56 = vld [vmem:[#allocation38_spill] sm:$0xff] }
0x26d1   :  { %9865 = vmatmul.mubr.msk.f32.vlgmr.msra.gmra.mrb[80].mxu0 %vm252_vm4, %v4538_v21 }
0x26d2   :  { %9890 = vmatprep.mubr.msk.f32.mxu0 %vm11172_vm2, %v13494_v27 }
0x27a4   :  { %v4608_v22 = vpop.f32.mrb[80].mxu0 }
0x27a5   :  { %v4609_v25 = vadd.f32 %v4608_v22, %v13528_v17  ;;  %v9866_v62 = vpop.f32.mrb[81].mxu0  ;;  %v13532_v22 = vld [vmem:[#allocation39_spill] sm:$0xff] }
0x27a7   :  { %10987 = vtanh.f32 %v4609_v25  ;;  %v8820_v34 = vmul.f32 -1.442695, %v4609_v25 }
0x27a9   :  { %10989 = vpow2.f32 %v8820_v34 }
0x27b1   :  { %v10988_v14 = vpop.eup %10987 }
0x27b2   :  { %4621 = vrot.lane.b32.xlu0 %v10988_v14, %s11175_s23 }
0x27b3   :  { %v10990_v28 = vpop.eup %10989 }
0x27b4   :  { %v4615_v19 = vadd.f32 1.0, %v10990_v28 }
0x27b6   :  { %10991 = vrcp.f32 %v4615_v19  ;;  %v13533_v19 = vld [vmem:[#allocation8_spill] sm:$0xff] }
0x27c0   :  { %v10992_v26 = vpop.eup %10991 }
0x27c1   :  { %v4619_v61 = vmul.f32 %v10992_v26, %v13529_v59 }
0x2824   :  { %v4622_v36 = vpop.permute.xlu0 %4621 }
0x2825   :  { %v4624_v3 = vmul.f32 %v10992_v26, %v4622_v36  ;;  %v13535_v36 = vld [vmem:[#allocation18_spill] sm:$0xff] }
0x2827   :  { %4626 = vrot.lane.b32.xlu1 %v4624_v3, %s11173_s19 }
0x2899   :  { %v4627_v39 = vpop.permute.xlu1 %4626 }
0x289a   :  { %v12588_v50 = vadd.f32 %v4627_v39, %v4619_v61  ;;  %v13536_v39 = vld [vmem:[#allocation40_spill] sm:$0xff] }
0x289c   :  { %13530 = vst [vmem:[#allocation7_spill] sm:$0xff] %v12588_v50  ;;  %10993 = vtanh.f32 %v12588_v50  ;;  %v13562_v50 = vld [vmem:[#allocation35_spill] sm:$0xff] }
0x28a6   :  { %v10994_v47 = vpop.eup %10993 }
0x28a7   :  { %4632 = vrot.lane.b32.xlu0 %v10994_v47, %s11175_s23 }
0x2919   :  { %v4633_v32 = vpop.permute.xlu0 %4632 }
0x291a   :  { %v12592_v31 = vmul.f32 %v10992_v26, %v4633_v32  ;;  %v13534_v26 = vld [vmem:[#allocation17_spill] sm:$0xff] }
0x291c   :  { %4637 = vrot.lane.b32.xlu1 %v12592_v31, %s11173_s19  ;;  %v6125_v14 = vsub.f32 %v12592_v31, %v12537_v57 }
0x298e   :  { %v4638_v24 = vpop.permute.xlu1 %4637 }
0x298f   :  { %9876 = vmatmul.mubr.msk.f32.vlgmr.msra.gmra.mrb[58].mxu1 %vm246_vm3, %v4638_v24 }
0x2990   :  { %9879 = vmatpush3.msk.msra.mxu1 %vm167_vm0, %v13531_v56  ;;  %9880 = vmatprep.mubr.msk.f32.mxu1 %vm11172_vm2, %v13494_v27  ;;  %v13537_v56 = vld [vmem:[#allocation9_spill] sm:$0xff] }
0x2991   :  { %9883 = vmatprep.subr.mxu1 %v13494_v27 }
0x2a62   :  { %v4707_v21 = vpop.f32.mrb[58].mxu1 }
0x2a63   :  { %v4708_v25 = vadd.f32 %v13532_v22, %v4707_v21  ;;  %v9877_v62 = vpop.f32.mrb[59].mxu1  ;;  %v13539_v21 = vld [vmem:[#allocation11_spill] sm:$0xff]  ;;  %v13544_v22 = vld [vmem:[#allocation16_spill] sm:$0xff] }
0x2a65   :  { %4712 = vrot.lane.b32.xlu0 %v4708_v25, %s11177_s22 }
0x2a69   :  { %6127 = vrot.lane.b32.xlu0 %v6125_v14, %s11173_s19 }
0x2ad7   :  { %v4713_v34 = vpop.permute.xlu0 %4712 }
0x2ad8   :  { %v4715_v28 = vsel %vm433_vm5, %v12560_v18, %v4713_v34 }
0x2ad9   :  { %9881 = vmatmul.mubr.msk.f32.vlgmr.msra.gmra.mrb[60].mxu1 %vm163_vm1, %v4715_v28 }
0x2ada   :  { %9884 = vmatpush3.msk.msra.mxu1 %vm167_vm0, %v13533_v19  ;;  %9885 = vmatprep.mubr.msk.f32.mxu1 %vm11172_vm2, %v13494_v27 }
0x2adb   :  { %10481 = vmatprep.subr.bf16.mxu1 %v13495_v12 }
0x2add   :  { %9886 = vmatmul.mubr.msk.f32.vlgmr.msra.gmra.mrb[62].mxu1 %vm163_vm1, %v4715_v28 }
0x2ade   :  { %10483 = vmatpush3.bf16.msra.mxu1 %v13534_v26  ;;  %9914 = vmatprep.mubr.msk.f32.mxu1 %vm11172_vm2, %v13494_v27  ;;  %v13561_v26 = vld [vmem:[#allocation34_spill] sm:$0xff] }
0x2adf   :  { %10485 = vmatprep.subr.bf16.mxu1 %v13535_v36 }
0x2bac   :  { %v4785_v3 = vpop.f32.mrb[60].mxu1 }
0x2bad   :  { %v9882_v59 = vpop.f32.mrb[61].mxu1  ;;  %v4786_v47 = vadd.f32 %v13536_v39, %v4785_v3 }
0x2bb0   :  { %v4855_v61 = vpop.f32.mrb[62].mxu1 }
0x2bb1   :  { %v9887_v32 = vpop.f32.mrb[63].mxu1  ;;  %9889 = vmatpush3.msk.msra.mxu0 %vm598_vm6, %v4855_v61 }
0x2bb2   :  { %9891 = vmatmul.mubr.msk.f32.vlgmr.msra.gmra.mrb[82].mxu0 %vm588_vm7, %v12199_v6  ;;  %9899 = vmatprep.subr.mxu0 %v13494_v27  ;;  %v13538_v6 = vld [vmem:[#allocation10_spill] sm:$0xff] }
0x2bb3   :  { %9900 = vmatpush3.msk.msra.mxu0 %vm598_vm6, %v4786_v47  ;;  %9893 = vmatprep.mubr.msk.f32.mxu0 %vm11172_vm2, %v13494_v27 }
0x2bb4   :  { %10501 = vmatprep.subr.bf16.mxu0 %v13537_v56 }
0x2bb6   :  { %9894 = vmatmul.mubr.msk.f32.gmra.mrb[84].mxu0 %vm588_vm7, %v12211_v38  ;;  %v13540_v38 = vld [vmem:[#allocation12_spill] sm:$0xff] }
0x2bb7   :  { %9896 = vmatprep.mubr.msk.f32.mxu0 %vm11172_vm2, %v13494_v27 }
0x2bba   :  { %9897 = vmatmul.mubr.msk.f32.gmra.mrb[86].mxu0 %vm588_vm7, %v12220_v15  ;;  %v13541_v15 = vld [vmem:[#allocation13_spill] sm:$0xff] }
0x2bbb   :  { %9901 = vmatprep.mubr.msk.f32.mxu0 %vm11172_vm2, %v13494_v27 }
0x2bbe   :  { %9902 = vmatmul.mubr.msk.f32.vlgmr.msra.gmra.mrb[82].mxu0 %vm588_vm7, %v12229_v9  ;;  %v13542_v9 = vld [vmem:[#allocation14_spill] sm:$0xff] }
0x2bbf   :  { %9904 = vmatprep.mubr.msk.f32.mxu0 %vm11172_vm2, %v13494_v27  ;;  %10503 = vmatpush1.bf16.msra.mxu0 %v13538_v6 }
0x2bc0   :  { %10505 = vmatprep.subr.bf16.mxu0 %v13539_v21 }
0x2bc2   :  { %9905 = vmatmul.mubr.msk.f32.gmra.mrb[84].mxu0 %vm588_vm7, %v12240_v52  ;;  %v13543_v52 = vld [vmem:[#allocation15_spill] sm:$0xff] }
0x2bc3   :  { %9907 = vmatprep.mubr.msk.f32.mxu0 %vm11172_vm2, %v13494_v27  ;;  %10507 = vmatpush1.bf16.msra.mxu0 %v13540_v38 }
0x2bc4   :  { %10517 = vmatprep.subr.bf16.mxu0 %v13541_v15 }
0x2bc6   :  { %9908 = vmatmul.mubr.msk.f32.gmra.mrb[86].mxu0 %vm588_vm7, %v12251_v33 }
0x2bc7   :  { %5306 = vmatprep.mubr.f32.mxu0 %v13494_v27 }
0x2bca   :  { %8846 = vmatmul.mubr.msk.f32.vlgmr.msra.gmra.mrb[88].mxu0 %vm246_vm3, %v12543_v54 }
0x2bcb   :  { %10519 = vmatpush1.bf16.msra.mxu0 %v13542_v9  ;;  %5448 = vmatprep.mubr.f32.mxu0 %v13494_v27 }
0x2bcc   :  { %10521 = vmatprep.subr.bf16.mxu0 %v13543_v52 }
0x2bcf   :  { %10523 = vmatpush1.bf16.msra.mxu0 %v13544_v22 }
0x2bd2   :  { %8848 = vmatmul.mubr.msk.f32.vlgmr.msra.gmra.mrb[90].mxu0 %vm246_vm3, %v4638_v24 }
0x2bd3   :  { %5601 = vmatprep.mubr.f32.mxu0 %v13494_v27 }
0x2c91   :  { %v5011_v25 = vpop.f32.mrb[82].mxu0 }
0x2c92   :  { %v5028_v62 = vmin.f32 %v5011_v25, 0.0  ;;  %v9903_v33 = vpop.f32.mrb[83].mxu0  ;;  %vm5025_vm15 = vcmp.gt.f32.partialorder %v5011_v25, 0.0 }
0x2c94   :  { %v5031_v14 = vmul.f32 1.442695, %v5028_v62 }
0x2c95   :  { %v5016_v34 = vpop.f32.mrb[84].mxu0 }
0x2c96   :  { %10995 = vpow2.f32 %v5031_v14  ;;  %v5029_v28 = vmin.f32 %v5016_v34, 0.0  ;;  %v9906_v3 = vpop.f32.mrb[85].mxu0  ;;  %vm5026_vm9 = vcmp.gt.f32.partialorder %v5016_v34, 0.0 }
0x2c98   :  { %v5033_v59 = vmul.f32 1.442695, %v5029_v28  ;;  %v13545_v28 = vld [vmem:[#allocation19_spill] sm:$0xff] }
0x2c99   :  { %v5021_v61 = vpop.f32.mrb[86].mxu0 }
0x2c9a   :  { %10997 = vpow2.f32 %v5033_v59  ;;  %v5030_v39 = vmin.f32 %v5021_v61, 0.0  ;;  %v9909_v47 = vpop.f32.mrb[87].mxu0  ;;  %vm5027_vm14 = vcmp.gt.f32.partialorder %v5021_v61, 0.0 }
0x2c9c   :  { %v5035_v32 = vmul.f32 1.442695, %v5030_v39  ;;  %v13546_v39 = vld [vmem:[#allocation20_spill] sm:$0xff] }
0x2c9d   :  { %v12660_v20 = vpop.f32.mrb[88].mxu0 }
0x2c9e   :  { %10999 = vpow2.f32 %v5035_v32  ;;  %v12662_v24 = vpop.f32.mrb[89].mxu0  ;;  %v13548_v32 = vld [vmem:[#allocation22_spill] sm:$0xff] }
0x2ca0   :  { %v10996_v5 = vpop.eup %10995 }
0x2ca1   :  { %v8834_v38 = vadd.f32 -1.0, %v10996_v5 }
0x2ca3   :  { %v5040_v33 = vsel %vm5025_vm15, %v5011_v25, %v8834_v38  ;;  %v13547_v25 = vld [vmem:[#allocation21_spill] sm:$0xff] }
0x2ca4   :  { %v10998_v62 = vpop.eup %10997  ;;  %9915 = vmatmul.mubr.msk.f32.vlgmr.msra.gmra.mrb[64].mxu1 %vm796_vm8, %v5040_v33 }
0x2ca5   :  { %v8835_v14 = vadd.f32 -1.0, %v10998_v62  ;;  %v12665_v3 = vpop.f32.mrb[90].mxu0  ;;  %9917 = vmatprep.mubr.msk.f32.mxu1 %vm11172_vm2, %v13494_v27  ;;  %10487 = vmatpush1.bf16.msra.mxu1 %v13545_v28  ;;  %v13549_v62 = vld [vmem:[#allocation23_spill] sm:$0xff] }
0x2ca6   :  { %v12670_v59 = vpop.f32.mrb[91].mxu0  ;;  %10489 = vmatprep.subr.bf16.mxu1 %v13546_v39 }
0x2ca7   :  { %v5041_v47 = vsel %vm5026_vm9, %v5016_v34, %v8835_v14  ;;  %v13550_v34 = vld [vmem:[#allocation24_spill] sm:$0xff]  ;;  %v13551_v14 = vld [vmem:[#allocation25_spill] sm:$0xff] }
0x2ca8   :  { %v11000_v5 = vpop.eup %10999  ;;  %9918 = vmatmul.mubr.msk.f32.gmra.mrb[66].mxu1 %vm796_vm8, %v5041_v47 }
0x2ca9   :  { %v8836_v38 = vadd.f32 -1.0, %v11000_v5  ;;  %9920 = vmatprep.mubr.msk.f32.mxu1 %vm11172_vm2, %v13494_v27  ;;  %10491 = vmatpush1.bf16.msra.mxu1 %v13547_v25  ;;  %v13552_v5 = vld [vmem:[#allocation41_spill] sm:$0xff] }
0x2caa   :  { %10493 = vmatprep.subr.bf16.mxu1 %v13548_v32 }
0x2cab   :  { %v5042_v33 = vsel %vm5027_vm14, %v5021_v61, %v8836_v38 }
0x2cac   :  { %9921 = vmatmul.mubr.msk.f32.gmra.mrb[68].mxu1 %vm796_vm8, %v5042_v33 }
0x2cad   :  { %10495 = vmatpush1.bf16.msra.mxu1 %v13549_v62  ;;  %5223 = vmatprep.mubr.f32.mxu1 %v13494_v27 }
0x2cae   :  { %10497 = vmatprep.subr.bf16.mxu1 %v13550_v34 }
0x2cb1   :  { %10499 = vmatpush1.bf16.msra.mxu1 %v13551_v14 }
0x2cb2   :  { %10509 = vmatprep.subr.bf16.mxu1 %v13541_v15 }
0x2d77   :  { %v5118_v47 = vpop.f32.mrb[64].mxu1 }
0x2d78   :  { %v5119_v39 = vadd.f32 %v13552_v5, %v5118_v47  ;;  %v9916_v25 = vpop.f32.mrb[65].mxu1 }
0x2d7a   :  { %v8840_v28 = vmul.f32 -1.442695, %v5119_v39 }
0x2d7b   :  { %v5123_v21 = vpop.f32.mrb[66].mxu1 }
0x2d7c   :  { %11001 = vpow2.f32 %v8840_v28  ;;  %v5124_v61 = vadd.f32 %v13552_v5, %v5123_v21  ;;  %v9919_v38 = vpop.f32.mrb[67].mxu1 }
0x2d7e   :  { %v8841_v33 = vmul.f32 -1.442695, %v5124_v61  ;;  %v13560_v61 = vld [vmem:[#allocation33_spill] sm:$0xff] }
0x2d7f   :  { %v5128_v62 = vpop.f32.mrb[68].mxu1 }
0x2d80   :  { %11003 = vpow2.f32 %v8841_v33  ;;  %v5129_v32 = vadd.f32 %v13552_v5, %v5128_v62  ;;  %v9922_v34 = vpop.f32.mrb[69].mxu1  ;;  %v13556_v62 = vld [vmem:[#allocation29_spill] sm:$0xff]  ;;  %v13559_v5 = vld [vmem:[#allocation32_spill] sm:$0xff] }
0x2d81   :  { %v13557_v34 = vld [vmem:[#allocation30_spill] sm:$0xff] }
0x2d82   :  { %v8842_v6 = vmul.f32 -1.442695, %v5129_v32  ;;  %v13555_v32 = vld [vmem:[#allocation28_spill] sm:$0xff] }
0x2d84   :  { %11005 = vpow2.f32 %v8842_v6  ;;  %v13553_v6 = vld [vmem:[#allocation26_spill] sm:$0xff] }
0x2d86   :  { %v11002_v14 = vpop.eup %11001 }
0x2d87   :  { %v5141_v15 = vadd.f32 1.0, %v11002_v14  ;;  %v13558_v14 = vld [vmem:[#allocation31_spill] sm:$0xff] }
0x2d89   :  { %11007 = vrcp.f32 %v5141_v15  ;;  %v13554_v15 = vld [vmem:[#allocation27_spill] sm:$0xff] }
0x2d8a   :  { %v11004_v56 = vpop.eup %11003 }
0x2d8b   :  { %v5142_v47 = vadd.f32 1.0, %v11004_v56 }
0x2d8d   :  { %11009 = vrcp.f32 %v5142_v47 }
0x2d8e   :  { %v11006_v39 = vpop.eup %11005 }
0x2d8f   :  { %v5143_v25 = vadd.f32 1.0, %v11006_v39 }
0x2d91   :  { %11011 = vrcp.f32 %v5143_v25 }
0x2d93   :  { %v11008_v28 = vpop.eup %11007 }
0x2d94   :  { %8843 = vmatmul.mubr.msk.f32.vlgmr.msra.gmra.mrb[70].mxu1 %vm252_vm4, %v11008_v28 }
0x2d95   :  { %5229 = vmatprep.mubr.f32.mxu1 %v13494_v27  ;;  %10511 = vmatpush1.bf16.msra.mxu1 %v13542_v9 }
0x2d96   :  { %10513 = vmatprep.subr.bf16.mxu1 %v13543_v52 }
0x2d97   :  { %v11010_v21 = vpop.eup %11009 }
0x2d98   :  { %8844 = vmatmul.mubr.msk.f32.gmra.mrb[72].mxu1 %vm252_vm4, %v11010_v21 }
0x2d99   :  { %5235 = vmatprep.mubr.f32.mxu1 %v13494_v27  ;;  %10515 = vmatpush1.bf16.msra.mxu1 %v13544_v22 }
0x2d9a   :  { %10525 = vmatprep.subr.bf16.mxu1 %v11662_v41 }
0x2d9b   :  { %v11012_v56 = vpop.eup %11011 }
0x2d9c   :  { %8845 = vmatmul.mubr.msk.f32.gmra.mrb[74].mxu1 %vm252_vm4, %v11012_v56 }
0x2d9d   :  { %5377 = vmatprep.mubr.f32.mxu1 %v13494_v27 }
0x2da0   :  { %8847 = vmatmul.mubr.msk.f32.vlgmr.msra.gmra.mrb[76].mxu1 %vm246_vm3, %v12543_v54 }
0x2da1   :  { %10527 = vmatpush3.bf16.msra.mxu1 %v11676_v58 }
0x2da2   :  { %10529 = vmatprep.subr.bf16.mxu1 %v11687_v63 }
0x2da5   :  { %10531 = vmatpush3.bf16.msra.mxu1 %v11695_v4 }
0x2da6   :  { %10533 = vmatprep.subr.bf16.mxu1 %v11705_v23 }
0x2da9   :  { %10535 = vmatpush3.bf16.msra.mxu1 %v11713_v40 }
0x2daa   :  { %10537 = vmatprep.subr.bf16.mxu1 %v11723_v48 }
0x2dad   :  { %10539 = vmatpush3.bf16.msra.mxu1 %v11731_v60 }
0x2dae   :  { %10541 = vmatprep.subr.bf16.mxu1 %v13553_v6 }
0x2db1   :  { %10543 = vmatpush3.bf16.msra.mxu1 %v13554_v15 }
0x2db2   :  { %10545 = vmatprep.subr.bf16.mxu1 %v13555_v32 }
0x2db5   :  { %10547 = vmatpush3.bf16.msra.mxu1 %v13556_v62 }
0x2db6   :  { %10549 = vmatprep.subr.bf16.mxu1 %v13557_v34 }
0x2db9   :  { %10551 = vmatpush3.bf16.msra.mxu1 %v13558_v14 }
0x2dba   :  { %10553 = vmatprep.subr.bf16.mxu1 %v13559_v5 }
0x2dbd   :  { %10555 = vmatpush3.bf16.msra.mxu1 %v13560_v61 }
0x2dbe   :  { %10588 = vmatprep.subr.bf16.mxu1 %v13495_v12 }
0x2e67   :  { %v12715_v38 = vpop.f32.mrb[70].mxu1 }
0x2e68   :  { %v12717_v33 = vpop.f32.mrb[71].mxu1 }
0x2e6b   :  { %v12719_v47 = vpop.f32.mrb[72].mxu1 }
0x2e6c   :  { %v12721_v39 = vpop.f32.mrb[73].mxu1 }
0x2e6f   :  { %v12723_v25 = vpop.f32.mrb[74].mxu1 }
0x2e70   :  { %v12725_v28 = vpop.f32.mrb[75].mxu1 }
0x2e73   :  { %v5379_v21 = vpop.f32.mrb[76].mxu1 }
0x2e74   :  { %v5455_v56 = vadd.f32 %v5379_v21, %v12660_v20  ;;  %v5709_v22 = vsub.f32 %v12665_v3, %v5379_v21  ;;  %v5381_v52 = vpop.f32.mrb[77].mxu1 }
0x2e75   :  { %v5456_v9 = vadd.f32 %v5381_v52, %v12662_v24  ;;  %v5710_v36 = vsub.f32 %v12670_v59, %v5381_v52  ;;  %8849 = vmatprep.subr.msk.mxu0 %vm598_vm6, %v5381_v52  ;;  %v12779_v52 = vld [vmem:[%s13353_s10 + $0x8] sm:$0xff] }
0x2e76   :  { %v5457_v19 = vadd.f32 %v5455_v56, %v13561_v26  ;;  %8850 = vmatpush1.msk.msra.mxu0 %vm598_vm6, %v5379_v21 }
0x2e77   :  { %v5458_v17 = vadd.f32 %v5456_v9, %v13562_v50  ;;  %8851 = vmatmul.mubr.msk.f32.vlgmr.msra.gmra.mrb[92].mxu0 %vm588_vm7, %v12738_v1  ;;  %8854 = vmatprep.subr.msk.mxu0 %vm598_vm6, %v12662_v24  ;;  %v12751_v9 = vld [vmem:[%s13354_s11 + $0x8] sm:$0xff] }
0x2e78   :  { %8855 = vmatpush1.msk.msra.mxu0 %vm598_vm6, %v12660_v20  ;;  %5607 = vmatprep.mubr.f32.mxu0 %v13494_v27  ;;  %v12759_v20 = vld [vmem:[%s13354_s11 + $0x10] sm:$0x3] }
0x2e79   :  { %11013 = vtanh.f32 %v5458_v17  ;;  %8859 = vmatprep.subr.msk.mxu0 %vm598_vm6, %v5710_v36 }
0x2e7a   :  { %11015 = vtanh.f32 %v5457_v19  ;;  %v12767_v19 = vld [vmem:[%s13353_s10] sm:$0xff] }
0x2e7b   :  { %8852 = vmatmul.mubr.msk.f32.gmra.mrb[94].mxu0 %vm588_vm7, %v12751_v9 }
0x2e7c   :  { %5613 = vmatprep.mubr.f32.mxu0 %v13494_v27 }
0x2e7f   :  { %8853 = vmatmul.mubr.msk.f32.gmra.mrb[96].mxu0 %vm588_vm7, %v12759_v20 }
0x2e80   :  { %5690 = vmatprep.mubr.f32.mxu0 %v13494_v27 }
0x2e83   :  { %v11014_v17 = vpop.eup %11013  ;;  %8856 = vmatmul.mubr.msk.f32.vlgmr.msra.gmra.mrb[92].mxu0 %vm588_vm7, %v12767_v19 }
0x2e84   :  { %v11016_v36 = vpop.eup %11015  ;;  %8860 = vmatpush1.msk.msra.mxu0 %vm598_vm6, %v5709_v22  ;;  %5525 = vmatprep.mubr.f32.mxu1 %v11014_v17  ;;  %v12787_v22 = vld [vmem:[%s13353_s10 + $0x10] sm:$0x3] }
0x2e85   :  { %5526 = vmatmul.mubr.f32.vlgmr.msra.gmra.mrb[78].mxu1 %v11016_v36  ;;  %5696 = vmatprep.mubr.f32.mxu0 %v13494_v27 }
0x2e86   :  { %10557 = vmatprep.subr.bf16.mxu0 %v11662_v41  ;;  %9929 = vmatprep.mubr.msk.f32.mxu1 %vm11172_vm2, %v13494_v27 }
0x2e87   :  { %8857 = vmatmul.mubr.msk.f32.gmra.mrb[94].mxu0 %vm588_vm7, %v12779_v52 }
0x2e88   :  { %5702 = vmatprep.mubr.f32.mxu0 %v13494_v27 }
0x2e8b   :  { %8858 = vmatmul.mubr.msk.f32.gmra.mrb[96].mxu0 %vm588_vm7, %v12787_v22 }
0x2e8c   :  { %5781 = vmatprep.mubr.f32.mxu0 %v13494_v27 }
0x2e8f   :  { %8861 = vmatmul.mubr.msk.f32.vlgmr.msra.gmra.mrb[92].mxu0 %vm588_vm7, %v12374_v29 }
0x2e90   :  { %5787 = vmatprep.mubr.f32.mxu0 %v13494_v27  ;;  %10559 = vmatpush3.bf16.msra.mxu0 %v11676_v58 }
0x2e91   :  { %10561 = vmatprep.subr.bf16.mxu0 %v11687_v63 }
0x2e93   :  { %8862 = vmatmul.mubr.msk.f32.gmra.mrb[94].mxu0 %vm588_vm7, %v12384_v49 }
0x2e94   :  { %5793 = vmatprep.mubr.f32.mxu0 %v13494_v27  ;;  %10563 = vmatpush3.bf16.msra.mxu0 %v11695_v4 }
0x2e95   :  { %10565 = vmatprep.subr.bf16.mxu0 %v11705_v23 }
0x2e97   :  { %8863 = vmatmul.mubr.msk.f32.gmra.mrb[96].mxu0 %vm588_vm7, %v12394_v42 }
0x2e98   :  { %10567 = vmatpush3.bf16.msra.mxu0 %v11713_v40 }
0x2e99   :  { %10569 = vmatprep.subr.bf16.mxu0 %v11723_v48 }
0x2e9c   :  { %10571 = vmatpush3.bf16.msra.mxu0 %v11731_v60 }
0x2e9d   :  { %10573 = vmatprep.subr.bf16.mxu0 %v13553_v6 }
0x2ea0   :  { %10575 = vmatpush3.bf16.msra.mxu0 %v13554_v15 }
0x2ea1   :  { %10577 = vmatprep.subr.bf16.mxu0 %v13555_v32 }
0x2ea4   :  { %10579 = vmatpush3.bf16.msra.mxu0 %v13556_v62 }
0x2ea5   :  { %10581 = vmatprep.subr.bf16.mxu0 %v13557_v34 }
0x2ea8   :  { %10583 = vmatpush3.bf16.msra.mxu0 %v13558_v14 }
0x2ea9   :  { %10585 = vmatprep.subr.bf16.mxu0 %v13559_v5 }
0x2eac   :  { %10587 = vmatpush3.bf16.msra.mxu0 %v13560_v61 }
0x2ead   :  { %10591 = vmatprep.subr.bf16.mxu0 %v13495_v12 }
0x2f58   :  { %v9300_v29 = vpop.f32.mrb[78].mxu1 }
0x2f59   :  { %v9301_v49 = vpop.f32.mrb[79].mxu1 }
0x2f5a   :  { %v9302_v42 = vadd.f32 %v9301_v49, %v9300_v29 }
0x2f5c   :  { %vm5904_vm15 = vcmp.gt.f32.partialorder %v9302_v42, 0.0 }
0x2f62   :  { %v5783_v24 = vpop.f32.mrb[92].mxu0 }
0x2f63   :  { %v5806_v3 = vadd.f32 %v5783_v24, %v13561_v26  ;;  %v5785_v59 = vpop.f32.mrb[93].mxu0 }
0x2f64   :  { %v5807_v21 = vadd.f32 %v5785_v59, %v13562_v50 }
0x2f65   :  { %11017 = vtanh.f32 %v5806_v3 }
0x2f66   :  { %11019 = vtanh.f32 %v5807_v21  ;;  %v5789_v56 = vpop.f32.mrb[94].mxu0 }
0x2f67   :  { %v5808_v17 = vadd.f32 %v5789_v56, %v13561_v26  ;;  %v5791_v36 = vpop.f32.mrb[95].mxu0 }
0x2f68   :  { %v5809_v5 = vadd.f32 %v5791_v36, %v13562_v50 }
0x2f69   :  { %11021 = vtanh.f32 %v5808_v17 }
0x2f6a   :  { %11023 = vtanh.f32 %v5809_v5  ;;  %v5795_v61 = vpop.f32.mrb[96].mxu0 }
0x2f6b   :  { %v5810_v14 = vadd.f32 %v5795_v61, %v13561_v26  ;;  %v5797_v29 = vpop.f32.mrb[97].mxu0 }
0x2f6c   :  { %v5811_v49 = vadd.f32 %v5797_v29, %v13562_v50 }
0x2f6d   :  { %11025 = vtanh.f32 %v5810_v14 }
0x2f6e   :  { %11027 = vtanh.f32 %v5811_v49 }
0x2f6f   :  { %v11018_v24 = vpop.eup %11017 }
0x2f70   :  { %v11020_v59 = vpop.eup %11019  ;;  %v5818_v3 = vmul.f32 %v11018_v24, %v12715_v38  ;;  %v5905_v38 = vmul.f32 0.2, %v9302_v42 }
0x2f71   :  { %v5819_v21 = vmul.f32 %v11020_v59, %v12717_v33 }
0x2f73   :  { %v11022_v56 = vpop.eup %11021  ;;  %5888 = vmatprep.mubr.f32.mxu0 %v5819_v21 }
0x2f74   :  { %v11024_v34 = vpop.eup %11023  ;;  %5889 = vmatmul.mubr.f32.vlgmr.msra.gmra.mrb[98].mxu0 %v5818_v3  ;;  %v5820_v5 = vmul.f32 %v11022_v56, %v12719_v47  ;;  %v5906_v47 = vsel %vm5904_vm15, %v9302_v42, %v5905_v38 }
0x2f75   :  { %v5821_v17 = vmul.f32 %v11024_v34, %v12721_v39  ;;  %v5916_v39 = vsel %vm1691_vm13, %v5906_v47, -inf }
0x2f77   :  { %v11026_v61 = vpop.eup %11025  ;;  %5893 = vmatprep.mubr.f32.mxu0 %v5821_v17 }
0x2f78   :  { %v11028_v36 = vpop.eup %11027  ;;  %5894 = vmatmul.mubr.f32.gmra.mrb[100].mxu0 %v5820_v5  ;;  %v5822_v14 = vmul.f32 %v11026_v61, %v12723_v25  ;;  %v5917_v25 = vrot.slane %v5916_v39, 4 }
0x2f79   :  { %v5823_v29 = vmul.f32 %v11028_v36, %v12725_v28 }
0x2f7b   :  { %5898 = vmatprep.mubr.f32.mxu0 %v5823_v29  ;;  %v5918_v29 = vmax.f32 %v5916_v39, %v5917_v25 }
0x2f7c   :  { %5899 = vmatmul.mubr.f32.gmra.mrb[102].mxu0 %v5822_v14 }
0x2f7d   :  { %9971 = vmatprep.mubr.msk.f32.mxu0 %vm11172_vm2, %v13494_v27  ;;  %v5919_v50 = vrot.slane %v5918_v29, 2 }
0x2f7f   :  { %v5920_v62 = vmax.f32 %v5918_v29, %v5919_v50 }
0x3047   :  { %v9335_v33 = vpop.f32.mrb[98].mxu0 }
0x3048   :  { %v9336_v49 = vpop.f32.mrb[99].mxu0 }
0x3049   :  { %v9337_v24 = vadd.f32 %v9336_v49, %v9335_v33 }
0x304b   :  { %v9338_v34 = vpop.f32.mrb[100].mxu0  ;;  %v5910_v3 = vmul.f32 0.2, %v9337_v24  ;;  %vm5907_vm9 = vcmp.gt.f32.partialorder %v9337_v24, 0.0 }
0x304c   :  { %v9339_v59 = vpop.f32.mrb[101].mxu0 }
0x304d   :  { %v9340_v21 = vadd.f32 %v9339_v59, %v9338_v34  ;;  %v5913_v17 = vsel %vm5907_vm9, %v9337_v24, %v5910_v3  ;;  %v5921_v24 = vrot.slane %v5920_v62, 1 }
0x304e   :  { %v5923_v38 = vsel %vm163_vm1, %v5913_v17, -inf }
0x304f   :  { %vm5908_vm14 = vcmp.gt.f32.partialorder %v9340_v21, 0.0  ;;  %v5911_v28 = vmul.f32 0.2, %v9340_v21  ;;  %v9341_v56 = vpop.f32.mrb[102].mxu0 }
0x3050   :  { %v9342_v5 = vpop.f32.mrb[103].mxu0 }
0x3051   :  { %v5914_v61 = vsel %vm5908_vm14, %v9340_v21, %v5911_v28  ;;  %v9343_v36 = vadd.f32 %v9342_v5, %v9341_v56  ;;  %v5922_v28 = vmax.f32 %v5920_v62, %v5921_v24 }
0x3052   :  { %v5924_v14 = vsel %vm163_vm1, %v5914_v61, -inf }
0x3053   :  { %vm5909_vm15 = vcmp.gt.f32.partialorder %v9343_v36, 0.0  ;;  %v5912_v42 = vmul.f32 0.2, %v9343_v36  ;;  %v5926_v33 = vmax.f32 %v5923_v38, %v5924_v14 }
0x3055   :  { %v5915_v49 = vsel %vm5909_vm15, %v9343_v36, %v5912_v42 }
0x3056   :  { %v5925_v34 = vsel %vm1701_vm10, %v5915_v49, -inf }
0x3057   :  { %v5927_v59 = vmax.f32 %v5926_v33, %v5925_v34 }
0x3059   :  { %v5928_v26 = vrot.slane %v5927_v59, 4 }
0x305b   :  { %v5929_v32 = vmax.f32 %v5927_v59, %v5928_v26 }
0x305d   :  { %v5930_v15 = vrot.slane %v5929_v32, 2 }
0x305f   :  { %v5931_v3 = vmax.f32 %v5929_v32, %v5930_v15 }
0x3061   :  { %v5932_v21 = vrot.slane %v5931_v3, 1 }
0x3063   :  { %v5933_v56 = vmax.f32 %v5931_v3, %v5932_v21  ;;  %v6128_v21 = vpop.permute.xlu0 %6127 }
0x3065   :  { %v5934_v39 = vmax.f32 %v5922_v28, %v5933_v56 }
0x3067   :  { %v5935_v25 = vsel %vm163_vm1, %v5934_v39, -inf }
0x3068   :  { %5936 = vmax.xlane.f32.xlu1 %v5935_v25 }
0x30f5   :  { %v5937_v5 = vpop.xlane.xlu1 %5936 }
0x30f6   :  { %v5941_v14 = vsub.f32 %v5913_v17, %v5937_v5  ;;  %v5942_v36 = vsub.f32 %v5914_v61, %v5937_v5  ;;  %v5943_v33 = vsub.f32 %v5915_v49, %v5937_v5  ;;  %v5938_v62 = vsub.f32 %v5906_v47, %v5937_v5  ;;  %v12873_v47 = vld [vmem:[%s13355_s12 + $0x8] sm:$0xff] }
0x30f8   :  { %v5944_v42 = vmul.f32 1.442695, %v5941_v14  ;;  %v5946_v38 = vmul.f32 1.442695, %v5942_v36  ;;  %v5948_v50 = vmul.f32 1.442695, %v5943_v33 }
0x30f9   :  { %v5939_v17 = vmul.f32 1.442695, %v5938_v62 }
0x30fa   :  { %11029 = vpow2.f32 %v5944_v42 }
0x30fb   :  { %11031 = vpow2.f32 %v5946_v38 }
0x30fc   :  { %11033 = vpow2.f32 %v5948_v50 }
0x30fd   :  { %11035 = vpow2.f32 %v5939_v17 }
0x3104   :  { %v11030_v26 = vpop.eup %11029 }
0x3105   :  { %v11032_v29 = vpop.eup %11031 }
0x3106   :  { %v10589_v15 = vpack.c.bf16 %v11032_v29, %v11030_v26  ;;  %v11034_v32 = vpop.eup %11033 }
0x3107   :  { %v11036_v61 = vpop.eup %11035 }
0x3108   :  { %10590 = vmatpush3.bf16.msra.mxu1 %v10589_v15 }
0x3109   :  { %9927 = vmatprep.subr.mxu1 %v13494_v27 }
0x310c   :  { %9928 = vmatpush3.msk.msra.mxu1 %vm1731_vm11, %v11034_v32 }
0x310d   :  { %9930 = vmatmul.mubr.msk.f32.vlgmr.msra.gmra.mrb[80].mxu1 %vm1727_vm12, %v12434_v55  ;;  %9932 = vmatprep.subr.mxu1 %v13494_v27  ;;  %v12861_v55 = vld [vmem:[%s13355_s12] sm:$0xff] }
0x310e   :  { %9934 = vmatprep.mubr.msk.f32.mxu1 %vm11172_vm2, %v13494_v27 }
0x31e0   :  { %v6019_v49 = vpop.f32.mrb[80].mxu1 }
0x31e1   :  { %v6023_v34 = vadd.f32 %v11036_v61, %v6019_v49  ;;  %v9931_v59 = vpop.f32.mrb[81].mxu1 }
0x31e3   :  { %11037 = vrcp.f32 %v6023_v34 }
0x31ed   :  { %v11038_v24 = vpop.eup %11037 }
0x31ee   :  { %9933 = vmatpush3.msk.msra.mxu1 %vm598_vm6, %v11038_v24  ;;  %v6026_v3 = vmul.f32 %v11038_v24, %v11036_v61 }
0x31ef   :  { %9935 = vmatmul.mubr.msk.f32.vlgmr.msra.gmra.mrb[82].mxu1 %vm588_vm7, %v12767_v19  ;;  %9943 = vmatprep.subr.mxu1 %v13494_v27 }
0x31f0   :  { %9944 = vmatpush3.msk.msra.mxu1 %vm598_vm6, %v6128_v21  ;;  %9937 = vmatprep.mubr.msk.f32.mxu1 %vm11172_vm2, %v13494_v27  ;;  %v6027_v62 = vsel %vm1691_vm13, %v6026_v3, 0.0  ;;  %v12917_v3 = vld [vmem:[%s13356_s13] sm:$0x3f] }
0x31f1   :  { %9954 = vmatprep.subr.mxu1 %v13494_v27 }
0x31f3   :  { %9938 = vmatmul.mubr.msk.f32.gmra.mrb[84].mxu1 %vm588_vm7, %v12779_v52 }
0x31f4   :  { %9940 = vmatprep.mubr.msk.f32.mxu1 %vm11172_vm2, %v13494_v27 }
0x31f7   :  { %9941 = vmatmul.mubr.msk.f32.gmra.mrb[86].mxu1 %vm588_vm7, %v12787_v22 }
0x31f8   :  { %9945 = vmatprep.mubr.msk.f32.mxu1 %vm11172_vm2, %v13494_v27 }
0x31fb   :  { %9946 = vmatmul.mubr.msk.f32.vlgmr.msra.gmra.mrb[88].mxu1 %vm588_vm7, %v12861_v55 }
0x31fc   :  { %9955 = vmatpush3.msk.msra.mxu1 %vm598_vm6, %v12543_v54  ;;  %9948 = vmatprep.mubr.msk.f32.mxu1 %vm11172_vm2, %v13494_v27  ;;  %v12882_v54 = vld [vmem:[%s13355_s12 + $0x10] sm:$0x3] }
0x31fd   :  { %10594 = vmatprep.subr.bf16.mxu1 %v13495_v12 }
0x31ff   :  { %9949 = vmatmul.mubr.msk.f32.gmra.mrb[90].mxu1 %vm588_vm7, %v12873_v47 }
0x3200   :  { %9951 = vmatprep.mubr.msk.f32.mxu1 %vm11172_vm2, %v13494_v27 }
0x3203   :  { %9952 = vmatmul.mubr.msk.f32.gmra.mrb[92].mxu1 %vm588_vm7, %v12882_v54 }
0x3204   :  { %9956 = vmatprep.mubr.msk.f32.mxu1 %vm11172_vm2, %v13494_v27 }
0x3207   :  { %9957 = vmatmul.mubr.msk.f32.vlgmr.msra.gmra.mrb[88].mxu1 %vm588_vm7, %v12738_v1 }
0x3208   :  { %9959 = vmatprep.mubr.msk.f32.mxu1 %vm11172_vm2, %v13494_v27  ;;  %10596 = vmatpush3.bf16.msra.mxu1 %v12005_v43 }
0x3209   :  { %10597 = vmatprep.subr.bf16.mxu1 %v13495_v12 }
0x320b   :  { %9960 = vmatmul.mubr.msk.f32.gmra.mrb[90].mxu1 %vm588_vm7, %v12751_v9 }
0x320c   :  { %9962 = vmatprep.mubr.msk.f32.mxu1 %vm11172_vm2, %v13494_v27  ;;  %10599 = vmatpush3.bf16.msra.mxu1 %v12016_v45 }
0x320d   :  { %10600 = vmatprep.subr.bf16.mxu1 %v13495_v12 }
0x320f   :  { %9963 = vmatmul.mubr.msk.f32.gmra.mrb[92].mxu1 %vm588_vm7, %v12759_v20 }
0x3210   :  { %10602 = vmatpush3.bf16.msra.mxu1 %v12029_v35  ;;  %9990 = vmatprep.mubr.msk.f32.mxu1 %vm11172_vm2, %v13494_v27 }
0x3211   :  { %10603 = vmatprep.subr.bf16.mxu1 %v13495_v12 }
0x3214   :  { %10605 = vmatpush3.bf16.msra.mxu1 %v12039_v2 }
0x3215   :  { %10612 = vmatprep.subr.bf16.mxu1 %v13495_v12 }
0x32c2   :  { %v6099_v28 = vpop.f32.mrb[82].mxu1 }
0x32c3   :  { %v6113_v56 = vmul.f32 %v11030_v26, %v6099_v28  ;;  %v9936_v39 = vpop.f32.mrb[83].mxu1 }
0x32c5   :  { %v6116_v25 = vsel %vm163_vm1, %v6113_v56, 0.0 }
0x32c6   :  { %6117 = vadd.xlane.f32.xlu0 %v6116_v25  ;;  %v6104_v5 = vpop.f32.mrb[84].mxu1 }
0x32c7   :  { %v6114_v14 = vmul.f32 %v11032_v29, %v6104_v5  ;;  %v9939_v36 = vpop.f32.mrb[85].mxu1 }
0x32c9   :  { %v6119_v42 = vsel %vm163_vm1, %v6114_v14, 0.0 }
0x32ca   :  { %6120 = vadd.xlane.f32.xlu1 %v6119_v42  ;;  %v6109_v38 = vpop.f32.mrb[86].mxu1 }
0x32cb   :  { %v6115_v33 = vmul.f32 %v11034_v32, %v6109_v38  ;;  %v9942_v50 = vpop.f32.mrb[87].mxu1 }
0x32cd   :  { %v6122_v15 = vsel %vm1701_vm10, %v6115_v33, 0.0 }
0x32ce   :  { %6123 = vadd.xlane.f32.xlu0 %v6122_v15  ;;  %6028 = vadd.xlane.f32.xlu1 %v6027_v62 }
0x32da   :  { %v6279_v26 = vpop.f32.mrb[88].mxu1 }
0x32db   :  { %v9958_v17 = vpop.f32.mrb[89].mxu1 }
0x32de   :  { %v6284_v61 = vpop.f32.mrb[90].mxu1 }
0x32df   :  { %v9961_v49 = vpop.f32.mrb[91].mxu1 }
0x32e2   :  { %v6289_v34 = vpop.f32.mrb[92].mxu1 }
0x32e3   :  { %v9964_v59 = vpop.f32.mrb[93].mxu1 }
0x3353   :  { %v6118_v29 = vpop.xlane.xlu0 %6117 }
0x3354   :  { %v6294_v21 = vmul.f32 %v6279_v26, %v6118_v29  ;;  %v13563_v26 = vmax.f32 %v12575_v0, 0.0 }
0x3357   :  { %v6121_v24 = vpop.xlane.xlu1 %6120 }
0x3358   :  { %v6295_v28 = vmul.f32 %v6284_v61, %v6121_v24 }
0x335a   :  { %v10592_v56 = vpack.c.bf16 %v6295_v28, %v6294_v21 }
0x335b   :  { %v6124_v39 = vpop.xlane.xlu0 %6123  ;;  %v6029_v14 = vpop.xlane.xlu1 %6028 }
0x335c   :  { %10593 = vmatpush3.bf16.msra.mxu0 %v10592_v56  ;;  %v6296_v32 = vmul.f32 %v6289_v34, %v6124_v39  ;;  %v6293_v36 = vmul.f32 %v6029_v14, %v12537_v57 }
0x335d   :  { %9969 = vmatprep.subr.mxu0 %v13494_v27 }
0x3360   :  { %9970 = vmatpush3.msk.msra.mxu0 %vm1731_vm11, %v6296_v32 }
0x3361   :  { %9972 = vmatmul.mubr.msk.f32.vlgmr.msra.gmra.mrb[104].mxu0 %vm1727_vm12, %v12917_v3  ;;  %10606 = vmatprep.subr.bf16.mxu0 %v13495_v12 }
0x3362   :  { %10608 = vmatpush3.bf16.msra.mxu0 %v12076_v37  ;;  %10001 = vmatprep.mubr.msk.f32.mxu0 %vm11172_vm2, %v13494_v27 }
0x3363   :  { %10609 = vmatprep.subr.bf16.mxu0 %v13495_v12 }
0x3366   :  { %10611 = vmatpush3.bf16.msra.mxu0 %v12082_v44 }
0x3367   :  { %10004 = vmatprep.subr.mxu0 %v13494_v27 }
0x3434   :  { %v6366_v25 = vpop.f32.mrb[104].mxu0 }
0x3435   :  { %6371 = vrot.lane.b32.xlu0 %v6366_v25, %s11176_s16  ;;  %v9973_v5 = vpop.f32.mrb[105].mxu0  ;;  %v12972_v25 = vld [vmem:[%s13348_s5 + $0x20] ss:$0 sm:$0xff] }
0x34a7   :  { %v6372_v42 = vpop.permute.xlu0 %6371 }
0x34a8   :  { %v6374_v38 = vadd.f32 %v6372_v42, %v6293_v36 }
0x34aa   :  { %v6375_v33 = vmul.f32 0.25, %v6374_v38  ;;  %v13564_v38 = vld [vmem:[#allocation5_spill] sm:$0xff] }
0x34ac   :  { %v6376_v50 = vmax.f32 %v6375_v33, 0.0 }
0x34ae   :  { %v6377_v15 = vadd.f32 %v6376_v50, %v12511_v11 }
0x34b0   :  { %6379 = vrot.lane.b32.xlu1 %v6377_v15, %s11175_s23 }
0x3522   :  { %v6380_v62 = vpop.permute.xlu1 %6379 }
0x3523   :  { %v6382_v17 = vsel %vm246_vm3, %v13563_v26, %v6380_v62  ;;  %v13565_v62 = vld [vmem:[#allocation6_spill] sm:$0xff] }
0x3524   :  { %9991 = vmatmul.mubr.msk.f32.vlgmr.msra.gmra.mrb[94].mxu1 %vm252_vm4, %v6382_v17 }
0x3525   :  { %10614 = vmatpush3.bf16.msra.mxu1 %v11287_v8  ;;  %10025 = vmatprep.mubr.msk.f32.mxu1 %vm11172_vm2, %v13494_v27 }
0x3526   :  { %10615 = vmatprep.subr.bf16.mxu1 %v13495_v12 }
0x3529   :  { %10617 = vmatpush3.bf16.msra.mxu1 %v11296_v10 }
0x352a   :  { %10618 = vmatprep.subr.bf16.mxu1 %v13495_v12 }
0x352d   :  { %10620 = vmatpush3.bf16.msra.mxu1 %v11308_v13 }
0x352e   :  { %10621 = vmatprep.subr.bf16.mxu1 %v13495_v12 }
0x3531   :  { %10623 = vmatpush3.bf16.msra.mxu1 %v11319_v16 }
0x3532   :  { %10049 = vmatprep.subr.mxu1 %v13494_v27 }
0x35f7   :  { %v6452_v57 = vpop.f32.mrb[94].mxu1 }
0x35f8   :  { %v6453_v8 = vadd.f32 %v6452_v57, %v12059_v7  ;;  %v9992_v0 = vpop.f32.mrb[95].mxu1 }
0x35fa   :  { %11039 = vtanh.f32 %v6453_v8  ;;  %v8881_v49 = vmul.f32 -1.442695, %v6453_v8 }
0x35fc   :  { %11041 = vpow2.f32 %v8881_v49 }
0x3604   :  { %v11040_v61 = vpop.eup %11039 }
0x3605   :  { %6465 = vrot.lane.b32.xlu1 %v11040_v61, %s11175_s23 }
0x3606   :  { %v11042_v10 = vpop.eup %11041 }
0x3607   :  { %v6459_v34 = vadd.f32 1.0, %v11042_v10 }
0x3609   :  { %11043 = vrcp.f32 %v6459_v34 }
0x3613   :  { %v11044_v13 = vpop.eup %11043 }
0x3614   :  { %v6463_v16 = vmul.f32 %v11044_v13, %v12533_v30 }
0x3677   :  { %v6466_v59 = vpop.permute.xlu1 %6465 }
0x3678   :  { %v6468_v29 = vmul.f32 %v11044_v13, %v6466_v59 }
0x367a   :  { %6470 = vrot.lane.b32.xlu0 %v6468_v29, %s11173_s19 }
0x36ec   :  { %v6471_v24 = vpop.permute.xlu0 %6470 }
0x36ed   :  { %v12950_v21 = vadd.f32 %v6471_v24, %v6463_v16 }
0x36ef   :  { %11045 = vtanh.f32 %v12950_v21 }
0x36f9   :  { %v11046_v28 = vpop.eup %11045 }
0x36fa   :  { %6476 = vrot.lane.b32.xlu1 %v11046_v28, %s11175_s23 }
0x376c   :  { %v6477_v56 = vpop.permute.xlu1 %6476 }
0x376d   :  { %v12954_v39 = vmul.f32 %v11044_v13, %v6477_v56  ;;  %v13566_v13 = vld [vmem:[#allocation7_spill] sm:$0xff] }
0x376f   :  { %6481 = vrot.lane.b32.xlu0 %v12954_v39, %s11173_s19 }
0x3773   :  { %6635 = vrot.lane.b32.xlu0 %v12592_v31, %s11175_s23 }
0x37e1   :  { %v12960_v32 = vpop.permute.xlu0 %6481 }
0x37e2   :  { %10002 = vmatmul.mubr.msk.f32.vlgmr.msra.gmra.mrb[106].mxu0 %vm246_vm3, %v12960_v32 }
0x37e3   :  { %10005 = vmatpush3.msk.msra.mxu0 %vm167_vm0, %v12550_v53  ;;  %10006 = vmatprep.mubr.msk.f32.mxu0 %vm11172_vm2, %v13494_v27 }
0x37e4   :  { %10624 = vmatprep.subr.bf16.mxu0 %v13495_v12 }
0x37e5   :  { %v6636_v15 = vpop.permute.xlu0 %6635 }
0x38b5   :  { %v6551_v30 = vpop.f32.mrb[106].mxu0 }
0x38b6   :  { %v12975_v31 = vadd.f32 %v12972_v25, %v6551_v30  ;;  %v10003_v5 = vpop.f32.mrb[107].mxu0 }
0x38b7   :  { %v11137_v5 = vld [vmem:[%s13351_s8] sm:$0xff] }
0x38b8   :  { %6557 = vrot.lane.b32.xlu1 %v12975_v31, %s11177_s22  ;;  %v6555_v53 = vadd.f32 %v12975_v31, %v12560_v18 }
0x392a   :  { %v6558_v14 = vpop.permute.xlu1 %6557 }
0x392b   :  { %v6560_v36 = vsel %vm433_vm5, %v6555_v53, %v6558_v14 }
0x392c   :  { %10007 = vmatmul.mubr.msk.f32.vlgmr.msra.gmra.mrb[108].mxu0 %vm163_vm1, %v6560_v36  ;;  %v11138_v36 = vld [vmem:[%s13347_s4 + $0x20] ss:$0 sm:$0xff] }
0x392d   :  { %10626 = vmatpush3.bf16.msra.mxu0 %v11362_v46  ;;  %10036 = vmatprep.mubr.msk.f32.mxu0 %vm11172_vm2, %v13494_v27 }
0x392e   :  { %10627 = vmatprep.subr.bf16.mxu0 %v13495_v12 }
0x3931   :  { %10629 = vmatpush3.bf16.msra.mxu0 %v13526_v51 }
0x3932   :  { %10039 = vmatprep.subr.mxu0 %v13494_v27 }
0x39ff   :  { %v6630_v42 = vpop.f32.mrb[108].mxu0 }
0x3a00   :  { %v12990_v33 = vadd.f32 %v6630_v42, %v13564_v38  ;;  %v10008_v18 = vpop.f32.mrb[109].mxu0 }
0x3a02   :  { %v6634_v50 = vmax.f32 %v12990_v33, 0.0 }
0x3a04   :  { %v6638_v46 = vsel %vm246_vm3, %v6634_v50, %v6636_v15 }
0x3a05   :  { %10026 = vmatmul.mubr.msk.f32.vlgmr.msra.gmra.mrb[96].mxu1 %vm252_vm4, %v6638_v46 }
0x3a06   :  { %10051 = vmatprep.mubr.msk.f32.mxu1 %vm11172_vm2, %v13494_v27 }
0x3ad8   :  { %v6708_v51 = vpop.f32.mrb[96].mxu1 }
0x3ad9   :  { %v6709_v26 = vadd.f32 %v6708_v51, %v13565_v62  ;;  %v10027_v17 = vpop.f32.mrb[97].mxu1  ;;  %v13567_v51 = vld [vmem:[#allocation8_spill] sm:$0xff]  ;;  %v13568_v62 = vld [vmem:[#allocation17_spill] sm:$0xff] }
0x3adb   :  { %11047 = vtanh.f32 %v6709_v26  ;;  %v8886_v8 = vmul.f32 -1.442695, %v6709_v26  ;;  %v13569_v26 = vld [vmem:[#allocation18_spill] sm:$0xff] }
0x3add   :  { %11049 = vpow2.f32 %v8886_v8  ;;  %v11139_v8 = vld [vmem:[%s13351_s8 + $0x8] ss:$0 sm:$0xff] }
0x3ae5   :  { %v11048_v57 = vpop.eup %11047 }
0x3ae6   :  { %6721 = vrot.lane.b32.xlu1 %v11048_v57, %s11175_s23 }
0x3ae7   :  { %v11050_v0 = vpop.eup %11049 }
0x3ae8   :  { %v6715_v61 = vadd.f32 1.0, %v11050_v0 }
0x3aea   :  { %11051 = vrcp.f32 %v6715_v61 }
0x3af4   :  { %v11052_v49 = vpop.eup %11051 }
0x3af5   :  { %v6719_v59 = vmul.f32 %v11052_v49, %v13566_v13  ;;  %v13573_v13 = vld [vmem:[#allocation12_spill] sm:$0xff] }
0x3b58   :  { %v6722_v10 = vpop.permute.xlu1 %6721 }
0x3b59   :  { %v6724_v34 = vmul.f32 %v11052_v49, %v6722_v10  ;;  %v13571_v10 = vld [vmem:[#allocation10_spill] sm:$0xff] }
0x3b5b   :  { %6726 = vrot.lane.b32.xlu0 %v6724_v34, %s11173_s19  ;;  %v13572_v34 = vld [vmem:[#allocation11_spill] sm:$0xff] }
0x3bcd   :  { %v6727_v29 = vpop.permute.xlu0 %6726 }
0x3bce   :  { %v6729_v16 = vadd.f32 %v6727_v29, %v6719_v59  ;;  %v13574_v59 = vld [vmem:[#allocation13_spill] sm:$0xff]  ;;  %v13575_v29 = vld [vmem:[#allocation14_spill] sm:$0xff] }
0x3bd0   :  { %11053 = vtanh.f32 %v6729_v16  ;;  %v13576_v16 = vld [vmem:[#allocation15_spill] sm:$0xff] }
0x3bda   :  { %v11054_v24 = vpop.eup %11053 }
0x3bdb   :  { %6732 = vrot.lane.b32.xlu1 %v11054_v24, %s11175_s23  ;;  %v13577_v24 = vld [vmem:[#allocation16_spill] sm:$0xff] }
0x3c4d   :  { %v6733_v28 = vpop.permute.xlu1 %6732 }
0x3c4e   :  { %v6735_v56 = vmul.f32 %v11052_v49, %v6733_v28  ;;  %v13570_v49 = vld [vmem:[#allocation9_spill] sm:$0xff] }
0x3c50   :  { %6737 = vrot.lane.b32.xlu0 %v6735_v56, %s11173_s19  ;;  %v8225_v18 = vsub.f32 %v6735_v56, %v12954_v39 }
0x3cc2   :  { %v6738_v30 = vpop.permute.xlu0 %6737 }
0x3cc3   :  { %10037 = vmatmul.mubr.msk.f32.vlgmr.msra.gmra.mrb[110].mxu0 %vm246_vm3, %v6738_v30 }
0x3cc4   :  { %10040 = vmatpush3.msk.msra.mxu0 %vm167_vm0, %v11137_v5  ;;  %10041 = vmatprep.mubr.msk.f32.mxu0 %vm11172_vm2, %v13494_v27 }
0x3cc5   :  { %10044 = vmatprep.subr.mxu0 %v13494_v27 }
0x3d96   :  { %v6807_v14 = vpop.f32.mrb[110].mxu0 }
0x3d97   :  { %v6808_v42 = vadd.f32 %v11138_v36, %v6807_v14  ;;  %v10038_v38 = vpop.f32.mrb[111].mxu0 }
0x3d99   :  { %6812 = vrot.lane.b32.xlu1 %v6808_v42, %s11177_s22 }
0x3d9d   :  { %8227 = vrot.lane.b32.xlu1 %v8225_v18, %s11173_s19 }
0x3e0b   :  { %v6813_v15 = vpop.permute.xlu1 %6812 }
0x3e0c   :  { %v6815_v46 = vsel %vm433_vm5, %v6555_v53, %v6813_v15 }
0x3e0d   :  { %10042 = vmatmul.mubr.msk.f32.vlgmr.msra.gmra.mrb[112].mxu0 %vm163_vm1, %v6815_v46 }
0x3e0e   :  { %10045 = vmatpush3.msk.msra.mxu0 %vm167_vm0, %v13567_v51  ;;  %10046 = vmatprep.mubr.msk.f32.mxu0 %vm11172_vm2, %v13494_v27 }
0x3e0f   :  { %10630 = vmatprep.subr.bf16.mxu0 %v13495_v12 }
0x3e11   :  { %10047 = vmatmul.mubr.msk.f32.vlgmr.msra.gmra.mrb[114].mxu0 %vm163_vm1, %v6815_v46 }
0x3e12   :  { %10632 = vmatpush3.bf16.msra.mxu0 %v13568_v62  ;;  %10075 = vmatprep.mubr.msk.f32.mxu0 %vm11172_vm2, %v13494_v27 }
0x3e13   :  { %10634 = vmatprep.subr.bf16.mxu0 %v13569_v26 }
0x3ee0   :  { %v6885_v53 = vpop.f32.mrb[112].mxu0 }
0x3ee1   :  { %v10043_v17 = vpop.f32.mrb[113].mxu0  ;;  %v6886_v0 = vadd.f32 %v11139_v8, %v6885_v53 }
0x3ee4   :  { %v6955_v57 = vpop.f32.mrb[114].mxu0 }
0x3ee5   :  { %v10048_v61 = vpop.f32.mrb[115].mxu0  ;;  %10050 = vmatpush3.msk.msra.mxu1 %vm598_vm6, %v6955_v57 }
0x3ee6   :  { %10052 = vmatmul.mubr.msk.f32.vlgmr.msra.gmra.mrb[98].mxu1 %vm588_vm7, %v12738_v1  ;;  %10060 = vmatprep.subr.mxu1 %v13494_v27 }
0x3ee7   :  { %10061 = vmatpush3.msk.msra.mxu1 %vm598_vm6, %v6886_v0  ;;  %10054 = vmatprep.mubr.msk.f32.mxu1 %vm11172_vm2, %v13494_v27 }
0x3ee8   :  { %10650 = vmatprep.subr.bf16.mxu1 %v13570_v49  ;;  %v13578_v49 = vld [vmem:[#allocation19_spill] sm:$0xff] }
0x3eea   :  { %10055 = vmatmul.mubr.msk.f32.gmra.mrb[100].mxu1 %vm588_vm7, %v12751_v9 }
0x3eeb   :  { %10057 = vmatprep.mubr.msk.f32.mxu1 %vm11172_vm2, %v13494_v27 }
0x3eee   :  { %10058 = vmatmul.mubr.msk.f32.gmra.mrb[102].mxu1 %vm588_vm7, %v12759_v20 }
0x3eef   :  { %10062 = vmatprep.mubr.msk.f32.mxu1 %vm11172_vm2, %v13494_v27 }
0x3ef2   :  { %10063 = vmatmul.mubr.msk.f32.vlgmr.msra.gmra.mrb[98].mxu1 %vm588_vm7, %v12767_v19 }
0x3ef3   :  { %10065 = vmatprep.mubr.msk.f32.mxu1 %vm11172_vm2, %v13494_v27  ;;  %10652 = vmatpush1.bf16.msra.mxu1 %v13571_v10 }
0x3ef4   :  { %10654 = vmatprep.subr.bf16.mxu1 %v13572_v34  ;;  %v13579_v34 = vld [vmem:[#allocation20_spill] sm:$0xff] }
0x3ef6   :  { %10066 = vmatmul.mubr.msk.f32.gmra.mrb[100].mxu1 %vm588_vm7, %v12779_v52 }
0x3ef7   :  { %10068 = vmatprep.mubr.msk.f32.mxu1 %vm11172_vm2, %v13494_v27  ;;  %10656 = vmatpush1.bf16.msra.mxu1 %v13573_v13 }
0x3ef8   :  { %10666 = vmatprep.subr.bf16.mxu1 %v13574_v59 }
0x3efa   :  { %10069 = vmatmul.mubr.msk.f32.gmra.mrb[102].mxu1 %vm588_vm7, %v12787_v22 }
0x3efb   :  { %7406 = vmatprep.mubr.f32.mxu1 %v13494_v27 }
0x3efe   :  { %8912 = vmatmul.mubr.msk.f32.vlgmr.msra.gmra.mrb[104].mxu1 %vm246_vm3, %v12960_v32 }
0x3eff   :  { %10668 = vmatpush1.bf16.msra.mxu1 %v13575_v29  ;;  %7548 = vmatprep.mubr.f32.mxu1 %v13494_v27 }
0x3f00   :  { %10670 = vmatprep.subr.bf16.mxu1 %v13576_v16 }
0x3f03   :  { %10672 = vmatpush1.bf16.msra.mxu1 %v13577_v24 }
0x3f06   :  { %8914 = vmatmul.mubr.msk.f32.vlgmr.msra.gmra.mrb[106].mxu1 %vm246_vm3, %v6738_v30 }
0x3f07   :  { %7701 = vmatprep.mubr.f32.mxu1 %v13494_v27 }
0x3fc5   :  { %v7111_v28 = vpop.f32.mrb[98].mxu1 }
0x3fc6   :  { %v7128_v56 = vmin.f32 %v7111_v28, 0.0  ;;  %v10064_v5 = vpop.f32.mrb[99].mxu1  ;;  %vm7125_vm0 = vcmp.gt.f32.partialorder %v7111_v28, 0.0 }
0x3fc7   :  { %v13580_v5 = vld [vmem:[#allocation21_spill] sm:$0xff] }
0x3fc8   :  { %v7131_v14 = vmul.f32 1.442695, %v7128_v56 }
0x3fc9   :  { %v7116_v36 = vpop.f32.mrb[100].mxu1 }
0x3fca   :  { %11055 = vpow2.f32 %v7131_v14  ;;  %v7129_v42 = vmin.f32 %v7116_v36, 0.0  ;;  %v10067_v38 = vpop.f32.mrb[101].mxu1  ;;  %vm7126_vm9 = vcmp.gt.f32.partialorder %v7116_v36, 0.0  ;;  %v13581_v14 = vld [vmem:[#allocation22_spill] sm:$0xff] }
0x3fcb   :  { %v13582_v38 = vld [vmem:[#allocation23_spill] sm:$0xff] }
0x3fcc   :  { %v7133_v18 = vmul.f32 1.442695, %v7129_v42 }
0x3fcd   :  { %v7121_v15 = vpop.f32.mrb[102].mxu1 }
0x3fce   :  { %11057 = vpow2.f32 %v7133_v18  ;;  %v7130_v46 = vmin.f32 %v7121_v15, 0.0  ;;  %v10070_v51 = vpop.f32.mrb[103].mxu1  ;;  %vm7127_vm14 = vcmp.gt.f32.partialorder %v7121_v15, 0.0  ;;  %v13584_v18 = vld [vmem:[#allocation25_spill] sm:$0xff] }
0x3fcf   :  { %v11140_v51 = vld [vmem:[%s13352_s9 + $0x10] ss:$0 sm:$0xff] }
0x3fd0   :  { %v7135_v62 = vmul.f32 1.442695, %v7130_v46 }
0x3fd1   :  { %v13073_v26 = vpop.f32.mrb[104].mxu1 }
0x3fd2   :  { %11059 = vpow2.f32 %v7135_v62  ;;  %v13075_v30 = vpop.f32.mrb[105].mxu1 }
0x3fd4   :  { %v11056_v53 = vpop.eup %11055 }
0x3fd5   :  { %v8900_v17 = vadd.f32 -1.0, %v11056_v53 }
0x3fd7   :  { %v7140_v57 = vsel %vm7125_vm0, %v7111_v28, %v8900_v17 }
0x3fd8   :  { %v11058_v8 = vpop.eup %11057  ;;  %10076 = vmatmul.mubr.msk.f32.vlgmr.msra.gmra.mrb[116].mxu0 %vm796_vm8, %v7140_v57 }
0x3fd9   :  { %v8901_v0 = vadd.f32 -1.0, %v11058_v8  ;;  %v13078_v61 = vpop.f32.mrb[106].mxu1  ;;  %10078 = vmatprep.mubr.msk.f32.mxu0 %vm11172_vm2, %v13494_v27  ;;  %10636 = vmatpush1.bf16.msra.mxu0 %v13578_v49 }
0x3fda   :  { %v13083_v10 = vpop.f32.mrb[107].mxu1  ;;  %10638 = vmatprep.subr.bf16.mxu0 %v13579_v34 }
0x3fdb   :  { %v7141_v13 = vsel %vm7126_vm9, %v7116_v36, %v8901_v0  ;;  %v13583_v36 = vld [vmem:[#allocation24_spill] sm:$0xff] }
0x3fdc   :  { %v11060_v56 = vpop.eup %11059  ;;  %10079 = vmatmul.mubr.msk.f32.gmra.mrb[118].mxu0 %vm796_vm8, %v7141_v13 }
0x3fdd   :  { %v8902_v28 = vadd.f32 -1.0, %v11060_v56  ;;  %10081 = vmatprep.mubr.msk.f32.mxu0 %vm11172_vm2, %v13494_v27  ;;  %10640 = vmatpush1.bf16.msra.mxu0 %v13580_v5 }
0x3fde   :  { %10642 = vmatprep.subr.bf16.mxu0 %v13581_v14 }
0x3fdf   :  { %v7142_v42 = vsel %vm7127_vm14, %v7121_v15, %v8902_v28 }
0x3fe0   :  { %10082 = vmatmul.mubr.msk.f32.gmra.mrb[120].mxu0 %vm796_vm8, %v7142_v42 }
0x3fe1   :  { %10644 = vmatpush1.bf16.msra.mxu0 %v13582_v38  ;;  %7323 = vmatprep.mubr.f32.mxu0 %v13494_v27 }
0x3fe2   :  { %10646 = vmatprep.subr.bf16.mxu0 %v13583_v36 }
0x3fe5   :  { %10648 = vmatpush1.bf16.msra.mxu0 %v13584_v18 }
0x3fe6   :  { %10658 = vmatprep.subr.bf16.mxu0 %v13574_v59 }
0x40ab   :  { %v7218_v46 = vpop.f32.mrb[116].mxu0 }
0x40ac   :  { %v7219_v62 = vadd.f32 %v11140_v51, %v7218_v46  ;;  %v10077_v53 = vpop.f32.mrb[117].mxu0 }
0x40ad   :  { %v13590_v53 = vld [vmem:[#allocation32_spill] sm:$0xff] }
0x40ae   :  { %v8906_v15 = vmul.f32 -1.442695, %v7219_v62  ;;  %v13589_v62 = vld [vmem:[#allocation31_spill] sm:$0xff] }
0x40af   :  { %v7223_v17 = vpop.f32.mrb[118].mxu0 }
0x40b0   :  { %11061 = vpow2.f32 %v8906_v15  ;;  %v7224_v57 = vadd.f32 %v11140_v51, %v7223_v17  ;;  %v10080_v8 = vpop.f32.mrb[119].mxu0  ;;  %v13591_v15 = vld [vmem:[#allocation33_spill] sm:$0xff] }
0x40b2   :  { %v8907_v0 = vmul.f32 -1.442695, %v7224_v57 }
0x40b3   :  { %v7228_v49 = vpop.f32.mrb[120].mxu0 }
0x40b4   :  { %11063 = vpow2.f32 %v8907_v0  ;;  %v7229_v34 = vadd.f32 %v11140_v51, %v7228_v49  ;;  %v10083_v13 = vpop.f32.mrb[121].mxu0  ;;  %v13588_v51 = vld [vmem:[#allocation30_spill] sm:$0xff] }
0x40b6   :  { %v8908_v56 = vmul.f32 -1.442695, %v7229_v34 }
0x40b8   :  { %11065 = vpow2.f32 %v8908_v56 }
0x40ba   :  { %v11062_v59 = vpop.eup %11061 }
0x40bb   :  { %v7241_v28 = vadd.f32 1.0, %v11062_v59 }
0x40bd   :  { %11067 = vrcp.f32 %v7241_v28 }
0x40be   :  { %v11064_v5 = vpop.eup %11063 }
0x40bf   :  { %v7242_v14 = vadd.f32 1.0, %v11064_v5 }
0x40c1   :  { %11069 = vrcp.f32 %v7242_v14 }
0x40c2   :  { %v11066_v42 = vpop.eup %11065 }
0x40c3   :  { %v7243_v38 = vadd.f32 1.0, %v11066_v42  ;;  %v13592_v42 = vld [vmem:[#allocation34_spill] sm:$0xff] }
0x40c5   :  { %11071 = vrcp.f32 %v7243_v38 }
0x40c7   :  { %v11068_v36 = vpop.eup %11067 }
0x40c8   :  { %8909 = vmatmul.mubr.msk.f32.vlgmr.msra.gmra.mrb[122].mxu0 %vm252_vm4, %v11068_v36  ;;  %v13593_v36 = vld [vmem:[#allocation35_spill] sm:$0xff] }
0x40c9   :  { %7329 = vmatprep.mubr.f32.mxu0 %v13494_v27  ;;  %10660 = vmatpush1.bf16.msra.mxu0 %v13575_v29  ;;  %v13585_v29 = vld [vmem:[#allocation27_spill] sm:$0xff] }
0x40ca   :  { %10662 = vmatprep.subr.bf16.mxu0 %v13576_v16  ;;  %v13586_v16 = vld [vmem:[#allocation28_spill] sm:$0xff] }
0x40cb   :  { %v11070_v18 = vpop.eup %11069 }
0x40cc   :  { %8910 = vmatmul.mubr.msk.f32.gmra.mrb[124].mxu0 %vm252_vm4, %v11070_v18 }
0x40cd   :  { %7335 = vmatprep.mubr.f32.mxu0 %v13494_v27  ;;  %10664 = vmatpush1.bf16.msra.mxu0 %v13577_v24  ;;  %v13587_v24 = vld [vmem:[#allocation29_spill] sm:$0xff] }
0x40ce   :  { %10674 = vmatprep.subr.bf16.mxu0 %v11662_v41 }
0x40cf   :  { %v11072_v46 = vpop.eup %11071 }
0x40d0   :  { %8911 = vmatmul.mubr.msk.f32.gmra.mrb[126].mxu0 %vm252_vm4, %v11072_v46 }
0x40d1   :  { %7477 = vmatprep.mubr.f32.mxu0 %v13494_v27 }
0x40d4   :  { %8913 = vmatmul.mubr.msk.f32.vlgmr.msra.gmra.mrb[128].mxu0 %vm246_vm3, %v12960_v32 }
0x40d5   :  { %10676 = vmatpush3.bf16.msra.mxu0 %v11676_v58 }
0x40d6   :  { %10678 = vmatprep.subr.bf16.mxu0 %v11687_v63 }
0x40d9   :  { %10680 = vmatpush3.bf16.msra.mxu0 %v11695_v4 }
0x40da   :  { %10682 = vmatprep.subr.bf16.mxu0 %v11705_v23 }
0x40dd   :  { %10684 = vmatpush3.bf16.msra.mxu0 %v11713_v40 }
0x40de   :  { %10686 = vmatprep.subr.bf16.mxu0 %v11723_v48 }
0x40e1   :  { %10688 = vmatpush3.bf16.msra.mxu0 %v11731_v60 }
0x40e2   :  { %10690 = vmatprep.subr.bf16.mxu0 %v13553_v6 }
0x40e5   :  { %10692 = vmatpush3.bf16.msra.mxu0 %v13585_v29 }
0x40e6   :  { %10694 = vmatprep.subr.bf16.mxu0 %v13586_v16 }
0x40e9   :  { %10696 = vmatpush3.bf16.msra.mxu0 %v13587_v24 }
0x40ea   :  { %10698 = vmatprep.subr.bf16.mxu0 %v13588_v51 }
0x40ed   :  { %10700 = vmatpush3.bf16.msra.mxu0 %v13589_v62 }
0x40ee   :  { %10702 = vmatprep.subr.bf16.mxu0 %v13590_v53 }
0x40f1   :  { %10704 = vmatpush3.bf16.msra.mxu0 %v13591_v15 }
0x40f2   :  { %10737 = vmatprep.subr.bf16.mxu0 %v13495_v12 }
0x419b   :  { %v13128_v17 = vpop.f32.mrb[122].mxu0 }
0x419c   :  { %v13130_v57 = vpop.f32.mrb[123].mxu0 }
0x419f   :  { %v13132_v8 = vpop.f32.mrb[124].mxu0 }
0x41a0   :  { %v13134_v0 = vpop.f32.mrb[125].mxu0 }
0x41a3   :  { %v13136_v49 = vpop.f32.mrb[126].mxu0 }
0x41a4   :  { %v13138_v34 = vpop.f32.mrb[127].mxu0 }
0x41a7   :  { %v7479_v13 = vpop.f32.mrb[128].mxu0 }
0x41a8   :  { %v7555_v56 = vadd.f32 %v7479_v13, %v13073_v26  ;;  %v7809_v59 = vsub.f32 %v13078_v61, %v7479_v13  ;;  %v7481_v28 = vpop.f32.mrb[129].mxu0 }
0x41a9   :  { %v7556_v5 = vadd.f32 %v7481_v28, %v13075_v30  ;;  %v7810_v14 = vsub.f32 %v13083_v10, %v7481_v28  ;;  %8915 = vmatprep.subr.msk.mxu1 %vm598_vm6, %v7481_v28 }
0x41aa   :  { %v7557_v38 = vadd.f32 %v7555_v56, %v13592_v42  ;;  %8916 = vmatpush1.msk.msra.mxu1 %vm598_vm6, %v7479_v13 }
0x41ab   :  { %v7558_v18 = vadd.f32 %v7556_v5, %v13593_v36  ;;  %8917 = vmatmul.mubr.msk.f32.vlgmr.msra.gmra.mrb[108].mxu1 %vm588_vm7, %v12738_v1  ;;  %8920 = vmatprep.subr.msk.mxu1 %vm598_vm6, %v13075_v30 }
0x41ac   :  { %8921 = vmatpush1.msk.msra.mxu1 %vm598_vm6, %v13073_v26  ;;  %7707 = vmatprep.mubr.f32.mxu1 %v13494_v27 }
0x41ad   :  { %11073 = vtanh.f32 %v7558_v18  ;;  %8925 = vmatprep.subr.msk.mxu1 %vm598_vm6, %v7810_v14 }
0x41ae   :  { %11075 = vtanh.f32 %v7557_v38 }
0x41af   :  { %8918 = vmatmul.mubr.msk.f32.gmra.mrb[110].mxu1 %vm588_vm7, %v12751_v9 }
0x41b0   :  { %7713 = vmatprep.mubr.f32.mxu1 %v13494_v27 }
0x41b3   :  { %8919 = vmatmul.mubr.msk.f32.gmra.mrb[112].mxu1 %vm588_vm7, %v12759_v20 }
0x41b4   :  { %7790 = vmatprep.mubr.f32.mxu1 %v13494_v27 }
0x41b7   :  { %v11074_v1 = vpop.eup %11073  ;;  %8922 = vmatmul.mubr.msk.f32.vlgmr.msra.gmra.mrb[108].mxu1 %vm588_vm7, %v12767_v19 }
0x41b8   :  { %v11076_v26 = vpop.eup %11075  ;;  %8926 = vmatpush1.msk.msra.mxu1 %vm598_vm6, %v7809_v59  ;;  %7625 = vmatprep.mubr.f32.mxu0 %v11074_v1 }
0x41b9   :  { %7626 = vmatmul.mubr.f32.vlgmr.msra.gmra.mrb[130].mxu0 %v11076_v26  ;;  %7796 = vmatprep.mubr.f32.mxu1 %v13494_v27 }
0x41ba   :  { %10706 = vmatprep.subr.bf16.mxu1 %v11662_v41  ;;  %10090 = vmatprep.mubr.msk.f32.mxu0 %vm11172_vm2, %v13494_v27 }
0x41bb   :  { %8923 = vmatmul.mubr.msk.f32.gmra.mrb[110].mxu1 %vm588_vm7, %v12779_v52 }
0x41bc   :  { %7802 = vmatprep.mubr.f32.mxu1 %v13494_v27 }
0x41bf   :  { %8924 = vmatmul.mubr.msk.f32.gmra.mrb[112].mxu1 %vm588_vm7, %v12787_v22 }
0x41c0   :  { %7881 = vmatprep.mubr.f32.mxu1 %v13494_v27 }
0x41c3   :  { %8927 = vmatmul.mubr.msk.f32.vlgmr.msra.gmra.mrb[108].mxu1 %vm588_vm7, %v12861_v55 }
0x41c4   :  { %7887 = vmatprep.mubr.f32.mxu1 %v13494_v27  ;;  %10708 = vmatpush3.bf16.msra.mxu1 %v11676_v58 }
0x41c5   :  { %10710 = vmatprep.subr.bf16.mxu1 %v11687_v63 }
0x41c7   :  { %8928 = vmatmul.mubr.msk.f32.gmra.mrb[110].mxu1 %vm588_vm7, %v12873_v47 }
0x41c8   :  { %7893 = vmatprep.mubr.f32.mxu1 %v13494_v27  ;;  %10712 = vmatpush3.bf16.msra.mxu1 %v11695_v4 }
0x41c9   :  { %10714 = vmatprep.subr.bf16.mxu1 %v11705_v23 }
0x41cb   :  { %8929 = vmatmul.mubr.msk.f32.gmra.mrb[112].mxu1 %vm588_vm7, %v12882_v54 }
0x41cc   :  { %10716 = vmatpush3.bf16.msra.mxu1 %v11713_v40 }
0x41cd   :  { %10718 = vmatprep.subr.bf16.mxu1 %v11723_v48 }
0x41d0   :  { %10720 = vmatpush3.bf16.msra.mxu1 %v11731_v60 }
0x41d1   :  { %10722 = vmatprep.subr.bf16.mxu1 %v13553_v6 }
0x41d4   :  { %10724 = vmatpush3.bf16.msra.mxu1 %v13585_v29 }
0x41d5   :  { %10726 = vmatprep.subr.bf16.mxu1 %v13586_v16 }
0x41d8   :  { %10728 = vmatpush3.bf16.msra.mxu1 %v13587_v24 }
0x41d9   :  { %10730 = vmatprep.subr.bf16.mxu1 %v13588_v51 }
0x41dc   :  { %10732 = vmatpush3.bf16.msra.mxu1 %v13589_v62 }
0x41dd   :  { %10734 = vmatprep.subr.bf16.mxu1 %v13590_v53 }
0x41e0   :  { %10736 = vmatpush3.bf16.msra.mxu1 %v13591_v15 }
0x41e1   :  { %10740 = vmatprep.subr.bf16.mxu1 %v13495_v12 }
0x428c   :  { %v9443_v41 = vpop.f32.mrb[130].mxu0 }
0x428d   :  { %v9444_v58 = vpop.f32.mrb[131].mxu0 }
0x428e   :  { %v9445_v63 = vadd.f32 %v9444_v58, %v9443_v41 }
0x4290   :  { %vm8004_vm8 = vcmp.gt.f32.partialorder %v9445_v63, 0.0 }
0x4296   :  { %v7883_v4 = vpop.f32.mrb[108].mxu1 }
0x4297   :  { %v7906_v23 = vadd.f32 %v7883_v4, %v13592_v42  ;;  %v7885_v40 = vpop.f32.mrb[109].mxu1 }
0x4298   :  { %v7907_v48 = vadd.f32 %v7885_v40, %v13593_v36 }
0x4299   :  { %11077 = vtanh.f32 %v7906_v23 }
0x429a   :  { %11079 = vtanh.f32 %v7907_v48  ;;  %v7889_v60 = vpop.f32.mrb[110].mxu1 }
0x429b   :  { %v7908_v6 = vadd.f32 %v7889_v60, %v13592_v42  ;;  %v7891_v9 = vpop.f32.mrb[111].mxu1 }
0x429c   :  { %v7909_v20 = vadd.f32 %v7891_v9, %v13593_v36 }
0x429d   :  { %11081 = vtanh.f32 %v7908_v6 }
0x429e   :  { %11083 = vtanh.f32 %v7909_v20  ;;  %v7895_v19 = vpop.f32.mrb[112].mxu1 }
0x429f   :  { %v7910_v52 = vadd.f32 %v7895_v19, %v13592_v42  ;;  %v7897_v22 = vpop.f32.mrb[113].mxu1 }
0x42a0   :  { %v7911_v30 = vadd.f32 %v7897_v22, %v13593_v36 }
0x42a1   :  { %11085 = vtanh.f32 %v7910_v52 }
0x42a2   :  { %11087 = vtanh.f32 %v7911_v30 }
0x42a3   :  { %v11078_v61 = vpop.eup %11077 }
0x42a4   :  { %v11080_v10 = vpop.eup %11079  ;;  %v7918_v46 = vmul.f32 %v11078_v61, %v13128_v17  ;;  %v8005_v17 = vmul.f32 0.2, %v9445_v63 }
0x42a5   :  { %v7919_v29 = vmul.f32 %v11080_v10, %v13130_v57 }
0x42a7   :  { %v11082_v16 = vpop.eup %11081  ;;  %7988 = vmatprep.mubr.f32.mxu1 %v7919_v29 }
0x42a8   :  { %v11084_v24 = vpop.eup %11083  ;;  %7989 = vmatmul.mubr.f32.vlgmr.msra.gmra.mrb[114].mxu1 %v7918_v46  ;;  %v7920_v51 = vmul.f32 %v11082_v16, %v13132_v8  ;;  %v8006_v8 = vsel %vm8004_vm8, %v9445_v63, %v8005_v17 }
0x42a9   :  { %v7921_v62 = vmul.f32 %v11084_v24, %v13134_v0  ;;  %v8016_v5 = vsel %vm1691_vm13, %v8006_v8, -inf }
0x42ab   :  { %v11086_v53 = vpop.eup %11085  ;;  %7993 = vmatprep.mubr.f32.mxu1 %v7921_v62 }
0x42ac   :  { %v11088_v15 = vpop.eup %11087  ;;  %7994 = vmatmul.mubr.f32.gmra.mrb[116].mxu1 %v7920_v51  ;;  %v7922_v13 = vmul.f32 %v11086_v53, %v13136_v49  ;;  %v8017_v49 = vrot.slane %v8016_v5, 4 }
0x42ad   :  { %v7923_v56 = vmul.f32 %v11088_v15, %v13138_v34 }
0x42ae   :  { %v8018_v4 = vmax.f32 %v8016_v5, %v8017_v49 }
0x42af   :  { %7998 = vmatprep.mubr.f32.mxu1 %v7923_v56 }
0x42b0   :  { %7999 = vmatmul.mubr.f32.gmra.mrb[118].mxu1 %v7922_v13  ;;  %v8019_v9 = vrot.slane %v8018_v4, 2 }
0x42b1   :  { %10132 = vmatprep.mubr.msk.f32.mxu1 %vm11172_vm2, %v13494_v27 }
0x42b2   :  { %v8020_v19 = vmax.f32 %v8018_v4, %v8019_v9 }
0x42b4   :  { %v8021_v30 = vrot.slane %v8020_v19, 1 }
0x42b6   :  { %v8022_v46 = vmax.f32 %v8020_v19, %v8021_v30 }
0x437b   :  { %v9478_v57 = vpop.f32.mrb[114].mxu1 }
0x437c   :  { %v9479_v59 = vpop.f32.mrb[115].mxu1 }
0x437d   :  { %v9480_v28 = vadd.f32 %v9479_v59, %v9478_v57 }
0x437f   :  { %v9481_v0 = vpop.f32.mrb[116].mxu1  ;;  %v8010_v42 = vmul.f32 0.2, %v9480_v28  ;;  %vm8007_vm15 = vcmp.gt.f32.partialorder %v9480_v28, 0.0 }
0x4380   :  { %v9482_v14 = vpop.f32.mrb[117].mxu1 }
0x4381   :  { %v9483_v38 = vadd.f32 %v9482_v14, %v9481_v0  ;;  %v8013_v1 = vsel %vm8007_vm15, %v9480_v28, %v8010_v42 }
0x4382   :  { %v8023_v23 = vsel %vm163_vm1, %v8013_v1, -inf }
0x4383   :  { %vm8008_vm0 = vcmp.gt.f32.partialorder %v9483_v38, 0.0  ;;  %v8011_v34 = vmul.f32 0.2, %v9483_v38  ;;  %v9484_v36 = vpop.f32.mrb[118].mxu1 }
0x4384   :  { %v9485_v18 = vpop.f32.mrb[119].mxu1 }
0x4385   :  { %v8014_v26 = vsel %vm8008_vm0, %v9483_v38, %v8011_v34  ;;  %v9486_v41 = vadd.f32 %v9485_v18, %v9484_v36 }
0x4386   :  { %v8024_v58 = vsel %vm163_vm1, %v8014_v26, -inf }
0x4387   :  { %vm8009_vm9 = vcmp.gt.f32.partialorder %v9486_v41, 0.0  ;;  %v8012_v63 = vmul.f32 0.2, %v9486_v41  ;;  %v8026_v40 = vmax.f32 %v8023_v23, %v8024_v58 }
0x4389   :  { %v8015_v48 = vsel %vm8009_vm9, %v9486_v41, %v8012_v63  ;;  %v11143_v41 = vld [vmem:[%s13353_s10 + $0x10] sm:$0x3] }
0x438a   :  { %v8025_v60 = vsel %vm1701_vm10, %v8015_v48, -inf }
0x438b   :  { %v8027_v6 = vmax.f32 %v8026_v40, %v8025_v60 }
0x438d   :  { %v8028_v20 = vrot.slane %v8027_v6, 4 }
0x438f   :  { %v8029_v52 = vmax.f32 %v8027_v6, %v8028_v20 }
0x4391   :  { %v8030_v22 = vrot.slane %v8029_v52, 2 }
0x4393   :  { %v8031_v61 = vmax.f32 %v8029_v52, %v8030_v22 }
0x4395   :  { %v8032_v10 = vrot.slane %v8031_v61, 1 }
0x4397   :  { %v8033_v29 = vmax.f32 %v8031_v61, %v8032_v10 }
0x4399   :  { %v8034_v16 = vmax.f32 %v8022_v46, %v8033_v29 }
0x439b   :  { %v8035_v24 = vsel %vm163_vm1, %v8034_v16, -inf }
0x439c   :  { %8036 = vmax.xlane.f32.xlu0 %v8035_v24 }
0x4429   :  { %v8037_v51 = vpop.xlane.xlu0 %8036 }
0x442a   :  { %v8041_v62 = vsub.f32 %v8013_v1, %v8037_v51  ;;  %v8042_v53 = vsub.f32 %v8014_v26, %v8037_v51  ;;  %v8043_v56 = vsub.f32 %v8015_v48, %v8037_v51  ;;  %v8038_v5 = vsub.f32 %v8006_v8, %v8037_v51  ;;  %v8228_v1 = vpop.permute.xlu1 %8227  ;;  %v11141_v26 = vld [vmem:[%s13353_s10] sm:$0xff]  ;;  %v11142_v8 = vld [vmem:[%s13353_s10 + $0x8] sm:$0xff] }
0x442c   :  { %v8044_v15 = vmul.f32 1.442695, %v8041_v62  ;;  %v8046_v13 = vmul.f32 1.442695, %v8042_v53  ;;  %v8048_v17 = vmul.f32 1.442695, %v8043_v56 }
0x442d   :  { %v8039_v14 = vmul.f32 1.442695, %v8038_v5 }
0x442e   :  { %11089 = vpow2.f32 %v8044_v15 }
0x442f   :  { %11091 = vpow2.f32 %v8046_v13 }
0x4430   :  { %11093 = vpow2.f32 %v8048_v17 }
0x4431   :  { %11095 = vpow2.f32 %v8039_v14 }
0x4438   :  { %v11090_v57 = vpop.eup %11089 }
0x4439   :  { %v13218_v59 = vpop.eup %11091 }
0x443a   :  { %v10738_v28 = vpack.c.bf16 %v13218_v59, %v11090_v57  ;;  %v13222_v0 = vpop.eup %11093 }
0x443b   :  { %v11096_v42 = vpop.eup %11095 }
0x443c   :  { %10739 = vmatpush3.bf16.msra.mxu0 %v10738_v28 }
0x443d   :  { %10088 = vmatprep.subr.mxu0 %v13494_v27 }
0x4440   :  { %10089 = vmatpush3.msk.msra.mxu0 %vm1731_vm11, %v13222_v0 }
0x4441   :  { %10091 = vmatmul.mubr.msk.f32.vlgmr.msra.gmra.mrb[132].mxu0 %vm1727_vm12, %v12917_v3  ;;  %10093 = vmatprep.subr.mxu0 %v13494_v27 }
0x4442   :  { %10095 = vmatprep.mubr.msk.f32.mxu0 %vm11172_vm2, %v13494_v27 }
0x4514   :  { %v8119_v38 = vpop.f32.mrb[132].mxu0 }
0x4515   :  { %v8123_v49 = vadd.f32 %v11096_v42, %v8119_v38  ;;  %v10092_v34 = vpop.f32.mrb[133].mxu0 }
0x4517   :  { %11097 = vrcp.f32 %v8123_v49 }
0x4521   :  { %v11098_v36 = vpop.eup %11097 }
0x4522   :  { %10094 = vmatpush3.msk.msra.mxu0 %vm598_vm6, %v11098_v36  ;;  %v8126_v18 = vmul.f32 %v11098_v36, %v11096_v42 }
0x4523   :  { %10096 = vmatmul.mubr.msk.f32.vlgmr.msra.gmra.mrb[134].mxu0 %vm588_vm7, %v11141_v26  ;;  %10104 = vmatprep.subr.mxu0 %v13494_v27 }
0x4524   :  { %10105 = vmatpush3.msk.msra.mxu0 %vm598_vm6, %v8228_v1  ;;  %10098 = vmatprep.mubr.msk.f32.mxu0 %vm11172_vm2, %v13494_v27 }
0x4525   :  { %10115 = vmatprep.subr.mxu0 %v13494_v27 }
0x4527   :  { %10099 = vmatmul.mubr.msk.f32.gmra.mrb[136].mxu0 %vm588_vm7, %v11142_v8 }
0x4528   :  { %10101 = vmatprep.mubr.msk.f32.mxu0 %vm11172_vm2, %v13494_v27 }
0x452b   :  { %10102 = vmatmul.mubr.msk.f32.gmra.mrb[138].mxu0 %vm588_vm7, %v11143_v41  ;;  %v13594_v41 = vld [vmem:[#allocation42_spill] sm:$0xff] }
0x452c   :  { %10106 = vmatprep.mubr.msk.f32.mxu0 %vm11172_vm2, %v13494_v27 }
0x452f   :  { %10107 = vmatmul.mubr.msk.f32.vlgmr.msra.gmra.mrb[140].mxu0 %vm588_vm7, %v12861_v55  ;;  %v11144_v55 = vld [vmem:[%s13354_s11] sm:$0xff] }
0x4530   :  { %10116 = vmatpush3.msk.msra.mxu0 %vm598_vm6, %v12960_v32  ;;  %10109 = vmatprep.mubr.msk.f32.mxu0 %vm11172_vm2, %v13494_v27 }
0x4531   :  { %10743 = vmatprep.subr.bf16.mxu0 %v13495_v12 }
0x4533   :  { %10110 = vmatmul.mubr.msk.f32.gmra.mrb[142].mxu0 %vm588_vm7, %v12873_v47  ;;  %v11145_v47 = vld [vmem:[%s13354_s11 + $0x8] sm:$0xff] }
0x4534   :  { %10112 = vmatprep.mubr.msk.f32.mxu0 %vm11172_vm2, %v13494_v27 }
0x4537   :  { %10113 = vmatmul.mubr.msk.f32.gmra.mrb[144].mxu0 %vm588_vm7, %v12882_v54  ;;  %v11146_v54 = vld [vmem:[%s13354_s11 + $0x10] sm:$0x3]  ;;  %s11178_s11 = smov 4  }
0x4538   :  { %10117 = vmatprep.mubr.msk.f32.mxu0 %vm11172_vm2, %v13494_v27 }
0x453b   :  { %10118 = vmatmul.mubr.msk.f32.vlgmr.msra.gmra.mrb[140].mxu0 %vm588_vm7, %v11144_v55  ;;  %v13595_v55 = vld [vmem:[#allocation36_spill] sm:$0xff] }
0x453c   :  { %10120 = vmatprep.mubr.msk.f32.mxu0 %vm11172_vm2, %v13494_v27  ;;  %10745 = vmatpush3.bf16.msra.mxu0 %v12005_v43 }
0x453d   :  { %10746 = vmatprep.subr.bf16.mxu0 %v13495_v12 }
0x453f   :  { %10121 = vmatmul.mubr.msk.f32.gmra.mrb[142].mxu0 %vm588_vm7, %v11145_v47 }
0x4540   :  { %10123 = vmatprep.mubr.msk.f32.mxu0 %vm11172_vm2, %v13494_v27  ;;  %10748 = vmatpush3.bf16.msra.mxu0 %v12016_v45 }
0x4541   :  { %10749 = vmatprep.subr.bf16.mxu0 %v13495_v12 }
0x4543   :  { %10124 = vmatmul.mubr.msk.f32.gmra.mrb[144].mxu0 %vm588_vm7, %v11146_v54 }
0x4544   :  { %10751 = vmatpush3.bf16.msra.mxu0 %v12029_v35  ;;  %10151 = vmatprep.mubr.msk.f32.mxu0 %vm11172_vm2, %v13494_v27 }
0x4545   :  { %10752 = vmatprep.subr.bf16.mxu0 %v13495_v12 }
0x4548   :  { %10754 = vmatpush3.bf16.msra.mxu0 %v12039_v2  ;;  %v8127_v2 = vsel %vm1691_vm13, %v8126_v18, 0.0 }
0x45f6   :  { %v8199_v43 = vpop.f32.mrb[134].mxu0 }
0x45f7   :  { %v8213_v32 = vmul.f32 %v11090_v57, %v8199_v43  ;;  %v10097_v45 = vpop.f32.mrb[135].mxu0 }
0x45f9   :  { %v8216_v58 = vsel %vm163_vm1, %v8213_v32, 0.0 }
0x45fa   :  { %8217 = vadd.xlane.f32.xlu1 %v8216_v58  ;;  %v8204_v4 = vpop.f32.mrb[136].mxu0 }
0x45fb   :  { %v8214_v63 = vmul.f32 %v13218_v59, %v8204_v4  ;;  %v10100_v23 = vpop.f32.mrb[137].mxu0 }
0x45fd   :  { %v8219_v40 = vsel %vm163_vm1, %v8214_v63, 0.0 }
0x45fe   :  { %8220 = vadd.xlane.f32.xlu0 %v8219_v40  ;;  %v8209_v35 = vpop.f32.mrb[138].mxu0 }
0x45ff   :  { %v8215_v48 = vmul.f32 %v13222_v0, %v8209_v35  ;;  %v10103_v60 = vpop.f32.mrb[139].mxu0 }
0x4601   :  { %v8222_v6 = vsel %vm1701_vm10, %v8215_v48, 0.0 }
0x4602   :  { %8223 = vadd.xlane.f32.xlu0 %v8222_v6 }
0x4606   :  { %8128 = vadd.xlane.f32.xlu0 %v8127_v2 }
0x460e   :  { %v8379_v9 = vpop.f32.mrb[140].mxu0 }
0x460f   :  { %v10119_v20 = vpop.f32.mrb[141].mxu0 }
0x4612   :  { %v8384_v19 = vpop.f32.mrb[142].mxu0 }
0x4613   :  { %v10122_v52 = vpop.f32.mrb[143].mxu0 }
0x4616   :  { %v8389_v22 = vpop.f32.mrb[144].mxu0 }
0x4617   :  { %v10125_v30 = vpop.f32.mrb[145].mxu0 }
0x4687   :  { %v8218_v61 = vpop.xlane.xlu1 %8217 }
0x4688   :  { %v8394_v46 = vmul.f32 %v8379_v9, %v8218_v61 }
0x468b   :  { %v8221_v10 = vpop.xlane.xlu0 %8220 }
0x468c   :  { %v8395_v29 = vmul.f32 %v8384_v19, %v8221_v10 }
0x468e   :  { %v10741_v16 = vpack.c.bf16 %v8395_v29, %v8394_v46 }
0x468f   :  { %v8224_v24 = vpop.xlane.xlu0 %8223 }
0x4690   :  { %10742 = vmatpush3.bf16.msra.mxu1 %v10741_v16  ;;  %v8396_v51 = vmul.f32 %v8389_v22, %v8224_v24 }
0x4691   :  { %10130 = vmatprep.subr.mxu1 %v13494_v27 }
0x4693   :  { %v8129_v15 = vpop.xlane.xlu0 %8128 }
0x4694   :  { %10131 = vmatpush3.msk.msra.mxu1 %vm1731_vm11, %v8396_v51  ;;  %v8393_v13 = vmul.f32 %v8129_v15, %v12954_v39 }
0x4695   :  { %10133 = vmatmul.mubr.msk.f32.vlgmr.msra.gmra.mrb[120].mxu1 %vm1727_vm12, %v12917_v3  ;;  %10755 = vmatprep.subr.bf16.mxu1 %v13495_v12 }
0x4696   :  { %10757 = vmatpush3.bf16.msra.mxu1 %v12076_v37  ;;  %10162 = vmatprep.mubr.msk.f32.mxu1 %vm11172_vm2, %v13494_v27  ;;  %vm8665_vm2 = vcmask 62464  }
0x4697   :  { %10758 = vmatprep.subr.bf16.mxu1 %v13495_v12 }
0x469a   :  { %10760 = vmatpush3.bf16.msra.mxu1 %v12082_v44 }
0x4768   :  { %v8466_v62 = vpop.f32.mrb[120].mxu1 }
0x4769   :  { %8471 = vrot.lane.b32.xlu1 %v8466_v62, %s11176_s16  ;;  %v10134_v53 = vpop.f32.mrb[121].mxu1  ;;  %s11179_s16 = smov 6  }
0x47db   :  { %v8472_v56 = vpop.permute.xlu1 %8471 }
0x47dc   :  { %v8474_v3 = vadd.f32 %v8472_v56, %v8393_v13 }
0x47de   :  { %v8475_v17 = vmul.f32 0.25, %v8474_v3 }
0x47e0   :  { %v8476_v57 = vmax.f32 %v8475_v17, 0.0 }
0x47e2   :  { %v8477_v37 = vadd.f32 %v8476_v57, %v12511_v11 }
0x47e4   :  { %8479 = vrot.lane.b32.xlu0 %v8477_v37, %s11175_s23 }
0x4856   :  { %v8480_v27 = vpop.permute.xlu0 %8479 }
0x4857   :  { %v8482_v12 = vsel %vm246_vm3, %v6634_v50, %v8480_v27 }
0x4858   :  { %10152 = vmatmul.mubr.msk.f32.vlgmr.msra.gmra.mrb[146].mxu0 %vm252_vm4, %v8482_v12 }
0x492b   :  { %v8552_v44 = vpop.f32.mrb[146].mxu0 }
0x492c   :  { %v8553_v59 = vadd.f32 %v8552_v44, %v12059_v7  ;;  %v10153_v28 = vpop.f32.mrb[147].mxu0 }
0x492e   :  { %11099 = vtanh.f32 %v8553_v59  ;;  %v8947_v0 = vmul.f32 -1.442695, %v8553_v59 }
0x4930   :  { %11101 = vpow2.f32 %v8947_v0 }
0x4938   :  { %v11100_v39 = vpop.eup %11099 }
0x4939   :  { %8565 = vrot.lane.b32.xlu1 %v11100_v39, %s11175_s23 }
0x493a   :  { %v11102_v11 = vpop.eup %11101 }
0x493b   :  { %v8559_v5 = vadd.f32 1.0, %v11102_v11 }
0x493d   :  { %11103 = vrcp.f32 %v8559_v5 }
0x4947   :  { %v11104_v14 = vpop.eup %11103 }
0x4948   :  { %v8563_v50 = vmul.f32 %v11104_v14, %v12950_v21 }
0x49ab   :  { %v8566_v42 = vpop.permute.xlu1 %8565 }
0x49ac   :  { %v8568_v33 = vmul.f32 %v11104_v14, %v8566_v42 }
0x49ae   :  { %8570 = vrot.lane.b32.xlu1 %v8568_v33, %s11173_s19 }
0x4a20   :  { %v8571_v38 = vpop.permute.xlu1 %8570 }
0x4a21   :  { %v8573_v49 = vadd.f32 %v8571_v38, %v8563_v50 }
0x4a23   :  { %11105 = vtanh.f32 %v8573_v49 }
0x4a2d   :  { %v11106_v7 = vpop.eup %11105 }
0x4a2e   :  { %8576 = vrot.lane.b32.xlu0 %v11106_v7, %s11175_s23 }
0x4a32   :  { %8655 = vrot.lane.b32.xlu0 %v12975_v31, %s11178_s11  ;;  %v8662_v31 = vsel %vm433_vm5, %v13595_v55, %v13594_v41 }
0x4aa0   :  { %v8577_v34 = vpop.permute.xlu0 %8576 }
0x4aa1   :  { %v8579_v36 = vmul.f32 %v11104_v14, %v8577_v34 }
0x4aa3   :  { %8581 = vrot.lane.b32.xlu1 %v8579_v36, %s11173_s19  ;;  %s11147_s19 = scalar_lea.vmem %s8674_s25, 128 }
0x4aa4   :  { %v8656_v8 = vpop.permute.xlu0 %8655  ;;  %p11148_p0 = scmp.ne.s32.totalorder %s8674_s25, %s11147_s19  ;;  %p11153_p2 = scmp.lt.s32.totalorder %s11147_s19, %s11147_s19 }
0x4aa5   :  { %v8663_v47 = vsel %vm163_vm1, %v8662_v31, %v8656_v8 }
0x4aa6   :  { %p11154_p3 = por %p11153_p2, %p11152_p1 }
0x4aa8   :  { %p11155_p4 = pnand %p11154_p3, %p11148_p0 }
0x4b15   :  { %v8582_v18 = vpop.permute.xlu1 %8581 }
0x4b16   :  { %10163 = vmatmul.mubr.msk.f32.vlgmr.msra.gmra.mrb[122].mxu1 %vm246_vm3, %v8582_v18 }
0x4be9   :  { %v8651_v1 = vpop.f32.mrb[122].mxu1 }
0x4bea   :  { %v8652_v26 = vadd.f32 %v12972_v25, %v8651_v1  ;;  %v10164_v21 = vpop.f32.mrb[123].mxu1 }
0x4bec   :  { %8659 = vrot.lane.b32.xlu1 %v8652_v26, %s11179_s16 }
0x4c5e   :  { %v8660_v54 = vpop.permute.xlu1 %8659 }
0x4c5f   :  { %v8664_v43 = vsel %vm588_vm7, %v8663_v47, %v8660_v54 }
0x4c60   :  { %8666 = vst.msk [vmem:[#allocation2] sm:$0x3f] %vm8665_vm2, %v8664_v43 }
0x4c61   :  { %11158 = shalt.err (!%p11155_p4)
}
0x4c62   :  { %s11159_s3 = scalar_lea.hbm %s13357_s14, 128 }
0x4c63   :  { %p11160_p5 = scmp.ne.s32.totalorder %s13357_s14, %s11159_s3  ;;  %p11163_p6 = scmp.lt.u32.totalorder %s11159_s3, %s13357_s14 }
0x4c65   :  { %p11165_p7 = pnand %p11163_p6, %p11160_p5 }
0x4c67   :  { %11168 = shalt.err (!%p11165_p7)
}
0x4c68   :  { %8676 = dma.vmem_to_hbm [thread:$0]  %s8674_s25, 128, %s13357_s14, [#allocation3]  }
0x4c69   :  { %11169 = dma.done.wait [#allocation3], 128  }
0x4c6a   :  { %11170 = vsyncadd [#allocation3], 4294967168 }
0x4c6b   :  { %8680 = vsyncpa [#allocation3], 1 }

</bundles_post_ra>
